<compile_context>
chip_gen: v5e
topology: v5e:2x2
jax: 0.10.0
libtpu: 0.0.40
codegen_flags: <defaults>
</compile_context>

<pallas_src>
import math
import jax
import jax.numpy as jnp
from jax import lax
from jax.experimental import pallas as pl
from jax.experimental.pallas import tpu as pltpu

# ----------------------------- synthetic config -----------------------------
HIDDEN = 32
MAXLEN = 8
BATCH = 2
USER_NUM = 8
ITEM_NUM = 16
CATE_NUM = 6
YEAR_NUM = 4
MONTH_NUM = 13
DAY_NUM = 32
TIME_NUM = YEAR_NUM + MONTH_NUM + DAY_NUM
GCN_LAYER = 2          # args.gcn_layer
GCN_LAYER_C = 2        # args.gcn_layer_c   (must equal GCN_LAYER for stacking)
BETA = 0.5             # args.beta
BETA_C = 0.5           # args.beta_c
NEG_SLOPE = 0.01       # F.leaky_relu default negative slope
LN_EPS = 1e-8          # last_layernorm eps

N_UI = USER_NUM + ITEM_NUM     # 24  (UI graph size == padded graph size)
N_UC = USER_NUM + CATE_NUM     # 14  (UC graph, zero-padded to N_UI)

assert GCN_LAYER == GCN_LAYER_C, "weight stacking assumes equal layer counts"


# -----------------------------------------------------------------------------
# Kernel 1: fused NGCF GCN stack — BOTH graphs (UI, UC) in one launch,
# grid=(2,) over the graph axis (parallel -> both v7x TensorCores).
# -----------------------------------------------------------------------------
def _gcn_stack_kernel(adj_ref, ego_ref, wgc_ref, bgc_ref, wbi_ref, bbi_ref,
                      out_ref):
    # adj: (N,N)  ego: (N,H)  wgc/wbi: (L,H,H) pre-transposed  bgc/bbi: (L,1,H)
    n_layers = wgc_ref.shape[0]            # static at trace time (L=2)
    adj = adj_ref[...]
    ego = ego_ref[...]
    acc = ego                               # running sum of [ego0, norm_1, ...]
    for i in range(n_layers):               # tiny static loop, unrolled
        side = jnp.dot(adj, ego, preferred_element_type=jnp.float32)
        sum_e = jnp.dot(side, wgc_ref[i],
                        preferred_element_type=jnp.float32) + bgc_ref[i]
        sum_e = jnp.where(sum_e >= 0.0, sum_e, NEG_SLOPE * sum_e)
        bi_e = jnp.dot(ego * side, wbi_ref[i],
                       preferred_element_type=jnp.float32) + bbi_ref[i]
        bi_e = jnp.where(bi_e >= 0.0, bi_e, NEG_SLOPE * bi_e)
        ego = sum_e + bi_e
        # F.normalize(p=2, dim=1): x / max(||x||, 1e-12)  via EUP rsqrt
        sumsq = jnp.sum(ego * ego, axis=1, keepdims=True)
        acc = acc + ego * lax.rsqrt(jnp.maximum(sumsq, 1e-24))
    out_ref[...] = acc * (1.0 / float(n_layers + 1))


def gcn_stack_fused(adj_stack, ego_stack, wgc, bgc, wbi, bbi):
    # adj_stack: (G,N,N)  ego_stack: (G,N,H)  wgc/wbi: (G,L,H,H)  b*: (G,L,1,H)
    g_, n, h = ego_stack.shape
    l = wgc.shape[1]
    return pl.pallas_call(
        _gcn_stack_kernel,
        out_shape=jax.ShapeDtypeStruct((g_, n, h), jnp.float32),
        grid=(g_,),
        in_specs=[
            pl.BlockSpec((None, n, n), lambda g: (g, 0, 0)),
            pl.BlockSpec((None, n, h), lambda g: (g, 0, 0)),
            pl.BlockSpec((None, l, h, h), lambda g: (g, 0, 0, 0)),
            pl.BlockSpec((None, l, 1, h), lambda g: (g, 0, 0, 0)),
            pl.BlockSpec((None, l, h, h), lambda g: (g, 0, 0, 0)),
            pl.BlockSpec((None, l, 1, h), lambda g: (g, 0, 0, 0)),
        ],
        out_specs=pl.BlockSpec((None, n, h), lambda g: (g, 0, 0)),
        compiler_params=pltpu.CompilerParams(
            dimension_semantics=("parallel",)),
    )(adj_stack, ego_stack, wgc, bgc, wbi, bbi)


# -----------------------------------------------------------------------------
# Kernel 2: fused sequence path.
#   GRU input projection + recurrence (fused W_hh, unrolled T=8)
#   + E_recom (exactly the per-batch time-mean of seqs, see header note)
#   + last_layernorm(E_recom) + last_layernorm(Fu) + pos/neg logits.
# Whole batch in one program; logits written once as a lane-dense (B,2T) slab.
# -----------------------------------------------------------------------------
def _ln(x):
    # torch nn.LayerNorm(eps=1e-8) with default-initialized gamma=1, beta=0
    mean = jnp.mean(x, axis=-1, keepdims=True)
    var = jnp.mean((x - mean) ** 2, axis=-1, keepdims=True)
    return (x - mean) * lax.rsqrt(var + LN_EPS)


def _seq_kernel(seqs_ref, wih_ref, bih_ref, whh_ref, bhh_ref, pe_ref, ne_ref,
                logits_ref, fu_last_ref):
    B, T, H = seqs_ref.shape
    s = seqs_ref[...]                                    # (B, T, H)

    # E_recom: second softmax of the torch code is over a constant vector
    # (unsqueeze(-1).repeat(1,1,T)), hence exactly uniform 1/T, so
    # E_recom[b,t,:] == mean_k seqs[b,k,:] (same row for every t).
    er_ln = _ln(jnp.mean(s, axis=1))                     # (B, H)

    # ---- GRU input projection: one MXU matmul for all timesteps ----
    gx = jnp.dot(s.reshape(B * T, H), wih_ref[...],
                 preferred_element_type=jnp.float32) + bih_ref[...]
    gx = gx.reshape(B, T, 3 * H)                         # (B, T, 3H) gates r|z|n

    whh = whh_ref[...]                                   # (H, 3H) fused gates
    bhh = bhh_ref[...]                                   # (1, 3H)

    h = jnp.zeros((B, H), jnp.float32)
    pos_cols = []
    neg_cols = []
    for t in range(T):                                   # T=8, static unroll
        gh = jnp.dot(h, whh, preferred_element_type=jnp.float32) + bhh
        gxt = gx[:, t, :]
        r = jax.nn.sigmoid(gxt[:, :H] + gh[:, :H])
        z = jax.nn.sigmoid(gxt[:, H:2 * H] + gh[:, H:2 * H])
        n = jnp.tanh(gxt[:, 2 * H:] + r * gh[:, 2 * H:])
        h = (1.0 - z) * n + z * h                        # Fu[:, t, :]
        feat = er_ln + _ln(h)                            # log_feats row t (B,H)
        pos_cols.append(jnp.sum(feat * pe_ref[:, t, :], axis=-1, keepdims=True))
        neg_cols.append(jnp.sum(feat * ne_ref[:, t, :], axis=-1, keepdims=True))

    # single lane-dense store: [pos_logits | neg_logits]  -> (B, 2T)
    logits_ref[...] = jnp.concatenate(pos_cols + neg_cols, axis=1)
    fu_last_ref[...] = h                                 # Fu[:, -1, :] for SSL


def seq_path(seqs, wih_t, bih, whh_cat, bhh, pos_embs, neg_embs):
    B, T, H = seqs.shape
    logits, fu_last = pl.pallas_call(
        _seq_kernel,
        out_shape=(jax.ShapeDtypeStruct((B, 2 * T), jnp.float32),
                   jax.ShapeDtypeStruct((B, H), jnp.float32)),
    )(seqs, wih_t, bih, whh_cat, bhh, pos_embs, neg_embs)
    return logits[:, :T], logits[:, T:], fu_last


# -----------------------------------------------------------------------------
# JAX glue: SSL losses, full forward
# -----------------------------------------------------------------------------
def _contrast(pos, neg):
    one = jnp.ones_like(pos)
    return jnp.mean(-jnp.log(1e-8 + jax.nn.sigmoid(pos))
                    - jnp.log(1e-8 + (one - jax.nn.sigmoid(neg))))


def ssl_last(fu_last, gu_last, key):
    # SSL(Fu, Gu) of the torch code only consumes the last timestep rows.
    k1, k2 = jax.random.split(key)
    # torch.randperm replaced by deterministic permutation
    corrupted = gu_last[jax.random.permutation(k1, gu_last.shape[0])]
    corrupted = corrupted[:, jax.random.permutation(k2, gu_last.shape[1])]
    pos = jnp.mean(fu_last * gu_last, axis=1)
    neg = jnp.mean(fu_last * corrupted, axis=1)
    return _contrast(pos, neg)


def ssl_ci(u_i, u_c, key):
    corrupted = u_c[jax.random.permutation(key, u_c.shape[0])]
    pos = jnp.mean(u_i * u_c, axis=1)
    neg = jnp.mean(u_i * corrupted, axis=1)
    return _contrast(pos, neg)


def htp_forward(params, user_ids, log_seqs, year, month, day,
                pos_seqs, neg_seqs, time_int, shuffle_key):
    # year / month / day / time_int only feed provably-dead paths of the torch
    # forward (unused time_embs, and the gaussian "change" that is erased by
    # the degenerate second softmax) -> they do not affect any output.
    del year, month, day, time_int
    H = HIDDEN

    # ---- UI() / UC() graph convolutions: ONE fused Pallas launch ----
    ego_ui = jnp.concatenate([params['user_emb'], params['item_emb']], axis=0)
    ego_uc = jnp.concatenate(
        [params['user_emb'], params['cate_emb'],
         jnp.zeros((N_UI - N_UC, H), jnp.float32)], axis=0)   # pad to N_UI
    ego_stack = jnp.stack([ego_ui, ego_uc])                   # (2, N, H)

    all_out = gcn_stack_fused(params['gcn_adj'], ego_stack,
                              params['gc_wT_all'], params['gc_b_all'],
                              params['bi_wT_all'], params['bi_b_all'])
    user_emb_g = all_out[0, :USER_NUM]
    items_emb = all_out[0, USER_NUM:]
    user_emb_c = all_out[1, :USER_NUM]

    k1, k2 = jax.random.split(shuffle_key)
    con_loss2 = ssl_ci(user_emb_g, user_emb_c, k1)

    # ---- sequence assembly (embedding gathers stay in JAX) ----
    seqs = items_emb[log_seqs] * (H ** 0.5)
    abs_pos_embs = jnp.broadcast_to(params['abs_pos_emb'][None],
                                    (log_seqs.shape[0], MAXLEN, H))
    times_emb = jnp.concatenate([params['year_emb'], params['month_emb'],
                                 params['day_emb']], axis=0)
    item_time_embs = params['item_time_matrix'] @ times_emb
    item_time_emb = item_time_embs[log_seqs]
    seqs = seqs + abs_pos_embs + item_time_emb

    timeline_mask = (log_seqs == 0)
    seqs = seqs * (~timeline_mask)[..., None].astype(seqs.dtype)

    # ---- fused GRU + layernorms + logits (one Pallas launch) ----
    pos_embs = params['item_emb'][pos_seqs]
    neg_embs = params['item_emb'][neg_seqs]
    pos_logits, neg_logits, fu_last = seq_path(
        seqs, params['gru_wih_t'], params['gru_bih'],
        params['gru_whh_cat'], params['gru_bhh'], pos_embs, neg_embs)

    # Gu[:, -1, :] == user_emb_g[user_ids] (repeat along time then take last)
    gu_last = user_emb_g[user_ids]
    con_loss = ssl_last(fu_last, gu_last, k2)
    total_con_loss = BETA * con_loss + BETA_C * con_loss2
    return pos_logits, neg_logits, total_con_loss


# -----------------------------------------------------------------------------
# Deterministic parameter init (synthetic — no checkpoint load).
# Kernel-friendly layouts (transposes, stacking, padding, bias reshapes) are
# done ONCE here, never inside the forward pass.
# -----------------------------------------------------------------------------
def init_params(key):
    keys = iter(jax.random.split(key, 64))

    def nxt():
        return next(keys)

    def emb(num, dim, pad=True):
        w = jax.random.normal(nxt(), (num, dim), jnp.float32) * 0.1
        if pad:
            w = w.at[0].set(0.0)                 # padding_idx=0
        return w

    def linear_stack(n):
        ws, bs = [], []
        for _ in range(n):
            ws.append(jax.random.normal(nxt(), (HIDDEN, HIDDEN), jnp.float32) * 0.1)
            bs.append(jax.random.normal(nxt(), (HIDDEN,), jnp.float32) * 0.01)
        wT = jnp.stack([w.T for w in ws])                    # (L, H, H)
        b2 = jnp.stack([b.reshape(1, HIDDEN) for b in bs])   # (L, 1, H)
        return wT, b2

    p = {}
    p['user_emb'] = emb(USER_NUM, HIDDEN)
    p['item_emb'] = emb(ITEM_NUM, HIDDEN)
    p['cate_emb'] = emb(CATE_NUM, HIDDEN)
    p['year_emb'] = emb(YEAR_NUM, HIDDEN)
    p['month_emb'] = emb(MONTH_NUM, HIDDEN)
    p['day_emb'] = emb(DAY_NUM, HIDDEN)
    p['abs_pos_emb'] = jax.random.normal(nxt(), (MAXLEN, HIDDEN), jnp.float32) * 0.1

    # GCN weights, stacked per-graph for the fused kernel: (2, L, H, H)/(2, L, 1, H)
    gc_ui_w, gc_ui_b = linear_stack(GCN_LAYER)
    bi_ui_w, bi_ui_b = linear_stack(GCN_LAYER)
    gc_uc_w, gc_uc_b = linear_stack(GCN_LAYER_C)
    bi_uc_w, bi_uc_b = linear_stack(GCN_LAYER_C)
    p['gc_wT_all'] = jnp.stack([gc_ui_w, gc_uc_w])
    p['gc_b_all'] = jnp.stack([gc_ui_b, gc_uc_b])
    p['bi_wT_all'] = jnp.stack([bi_ui_w, bi_uc_w])
    p['bi_b_all'] = jnp.stack([bi_ui_b, bi_uc_b])

    # GRU weights: pre-transposed; W_hh kept as ONE fused (H, 3H) operand so the
    # recurrent step is a single vmatmul (gates r|z|n split by lane slices).
    w_ih = jax.random.normal(nxt(), (3 * HIDDEN, HIDDEN), jnp.float32) * 0.1
    w_hh = jax.random.normal(nxt(), (3 * HIDDEN, HIDDEN), jnp.float32) * 0.1
    b_ih = jax.random.normal(nxt(), (3 * HIDDEN,), jnp.float32) * 0.01
    b_hh = jax.random.normal(nxt(), (3 * HIDDEN,), jnp.float32) * 0.01
    p['gru_wih_t'] = w_ih.T                                   # (H, 3H)
    p['gru_bih'] = b_ih.reshape(1, 3 * HIDDEN)
    p['gru_whh_cat'] = w_hh.T                                 # (H, 3H)
    p['gru_bhh'] = b_hh.reshape(1, 3 * HIDDEN)

    # adjacencies: dense (small synthetic graphs); UC padded to UI size and
    # stacked with UI so both graphs go through one pallas_call.
    norm_adj = jax.random.uniform(nxt(), (N_UI, N_UI), jnp.float32) * (2.0 / N_UI)
    uc_adj = jax.random.uniform(nxt(), (N_UC, N_UC), jnp.float32) * (2.0 / N_UC)
    uc_pad = jnp.zeros((N_UI, N_UI), jnp.float32).at[:N_UC, :N_UC].set(uc_adj)
    p['gcn_adj'] = jnp.stack([norm_adj, uc_pad])              # (2, N, N)

    itm = jax.random.uniform(nxt(), (ITEM_NUM, TIME_NUM), jnp.float32)
    mask = (jax.random.uniform(nxt(), (ITEM_NUM, TIME_NUM), jnp.float32) < 0.25)
    p['item_time_matrix'] = itm * mask.astype(jnp.float32) * 0.2
    return p


if __name__ == "__main__":
    root = jax.random.PRNGKey(0)
    k_params, k_inputs, k_shuffle = jax.random.split(root, 3)
    params = init_params(k_params)

    ki = iter(jax.random.split(k_inputs, 16))
    user_ids = jax.random.randint(next(ki), (BATCH,), 1, USER_NUM)
    log_seqs = jax.random.randint(next(ki), (BATCH, MAXLEN), 0, ITEM_NUM)
    year = jax.random.randint(next(ki), (BATCH, MAXLEN + 1), 0, YEAR_NUM)
    month = jax.random.randint(next(ki), (BATCH, MAXLEN + 1), 0, MONTH_NUM)
    day = jax.random.randint(next(ki), (BATCH, MAXLEN + 1), 0, DAY_NUM)
    pos_seqs = jax.random.randint(next(ki), (BATCH, MAXLEN), 1, ITEM_NUM)
    neg_seqs = jax.random.randint(next(ki), (BATCH, MAXLEN), 1, ITEM_NUM)
    time_int = jax.random.uniform(next(ki), (USER_NUM, MAXLEN), jnp.float32,
                                  minval=0.0, maxval=10.0)

    fwd = jax.jit(htp_forward)
    pos_logits, neg_logits, con_loss = fwd(params, user_ids, log_seqs, year,
                                           month, day, pos_seqs, neg_seqs,
                                           time_int, k_shuffle)
    jax.block_until_ready((pos_logits, neg_logits, con_loss))
    assert pos_logits.shape == (BATCH, MAXLEN)
    assert neg_logits.shape == (BATCH, MAXLEN)
    assert jnp.isfinite(pos_logits).all() and jnp.isfinite(neg_logits).all()
    assert jnp.isfinite(con_loss)
    print("KERNEL_OK")
</pallas_src>

<mosaic_0001>
module attributes {stable_mosaic.version = 11 : i64} {
  func.func @_gcn_stack_kernel(%arg0: i32, %arg1: memref<1x24x24xf32, #tpu.memory_space<vmem>>, %arg2: memref<1x24x32xf32, #tpu.memory_space<vmem>>, %arg3: memref<1x2x32x32xf32, #tpu.memory_space<vmem>>, %arg4: memref<1x2x1x32xf32, #tpu.memory_space<vmem>>, %arg5: memref<1x2x32x32xf32, #tpu.memory_space<vmem>>, %arg6: memref<1x2x1x32xf32, #tpu.memory_space<vmem>>, %arg7: memref<1x24x32xf32, #tpu.memory_space<vmem>>) attributes {dimension_semantics = [#tpu.dimension_semantics<parallel>], iteration_bounds = array<i64: 2>, scalar_prefetch = 0 : i64, scratch_operands = 0 : i64, tpu.core_type = #tpu.core_type<tc>, window_params = [{transform_indices = @transform_0, window_bounds = array<i64: 1, 24, 24>}, {transform_indices = @transform_1, window_bounds = array<i64: 1, 24, 32>}, {transform_indices = @transform_2, window_bounds = array<i64: 1, 2, 32, 32>}, {transform_indices = @transform_3, window_bounds = array<i64: 1, 2, 1, 32>}, {transform_indices = @transform_4, window_bounds = array<i64: 1, 2, 32, 32>}, {transform_indices = @transform_5, window_bounds = array<i64: 1, 2, 1, 32>}, {transform_indices = @transform_6, window_bounds = array<i64: 1, 24, 32>}]} {
    %c0 = arith.constant 0 : index
    %c0_0 = arith.constant 0 : index
    %c0_1 = arith.constant 0 : index
    %0 = vector.load %arg1[%c0, %c0_0, %c0_1] : memref<1x24x24xf32, #tpu.memory_space<vmem>>, vector<1x24x24xf32>
    %1 = vector.shape_cast %0 : vector<1x24x24xf32> to vector<24x24xf32>
    %c0_2 = arith.constant 0 : index
    %c0_3 = arith.constant 0 : index
    %c0_4 = arith.constant 0 : index
    %2 = vector.load %arg2[%c0_2, %c0_3, %c0_4] : memref<1x24x32xf32, #tpu.memory_space<vmem>>, vector<1x24x32xf32>
    %3 = vector.shape_cast %2 : vector<1x24x32xf32> to vector<24x32xf32>
    %cst = arith.constant dense<0.000000e+00> : vector<24x32xf32>
    %4 = tpu.matmul %1, %3, %cst {dimension_numbers = #tpu.dot_dimension_numbers<[1], [0], [0], [1], [0, 0, 1, 1], [], []>} : vector<24x24xf32>, vector<24x32xf32>, vector<24x32xf32> -> vector<24x32xf32>
    %c0_5 = arith.constant 0 : index
    %c0_6 = arith.constant 0 : index
    %c0_7 = arith.constant 0 : index
    %c0_8 = arith.constant 0 : index
    %5 = vector.load %arg3[%c0_5, %c0_6, %c0_7, %c0_8] : memref<1x2x32x32xf32, #tpu.memory_space<vmem>>, vector<1x1x32x32xf32>
    %6 = vector.shape_cast %5 : vector<1x1x32x32xf32> to vector<32x32xf32>
    %cst_9 = arith.constant dense<0.000000e+00> : vector<24x32xf32>
    %7 = tpu.matmul %4, %6, %cst_9 {dimension_numbers = #tpu.dot_dimension_numbers<[1], [0], [0], [1], [0, 0, 1, 1], [], []>} : vector<24x32xf32>, vector<32x32xf32>, vector<24x32xf32> -> vector<24x32xf32>
    %c0_10 = arith.constant 0 : index
    %c0_11 = arith.constant 0 : index
    %c0_12 = arith.constant 0 : index
    %c0_13 = arith.constant 0 : index
    %8 = vector.load %arg4[%c0_10, %c0_11, %c0_12, %c0_13] : memref<1x2x1x32xf32, #tpu.memory_space<vmem>>, vector<1x1x1x32xf32>
    %9 = vector.shape_cast %8 : vector<1x1x1x32xf32> to vector<1x32xf32>
    %10 = vector.broadcast %9 : vector<1x32xf32> to vector<24x32xf32>
    %11 = arith.addf %7, %10 : vector<24x32xf32>
    %cst_14 = arith.constant 0.000000e+00 : f32
    %12 = vector.broadcast %cst_14 : f32 to vector<24x32xf32>
    %13 = arith.cmpf oge, %11, %12 : vector<24x32xf32>
    %cst_15 = arith.constant 0.00999999977 : f32
    %14 = vector.broadcast %cst_15 : f32 to vector<24x32xf32>
    %15 = arith.mulf %14, %11 : vector<24x32xf32>
    %16 = arith.select %13, %11, %15 : vector<24x32xi1>, vector<24x32xf32>
    %17 = arith.mulf %3, %4 : vector<24x32xf32>
    %c0_16 = arith.constant 0 : index
    %c0_17 = arith.constant 0 : index
    %c0_18 = arith.constant 0 : index
    %c0_19 = arith.constant 0 : index
    %18 = vector.load %arg5[%c0_16, %c0_17, %c0_18, %c0_19] : memref<1x2x32x32xf32, #tpu.memory_space<vmem>>, vector<1x1x32x32xf32>
    %19 = vector.shape_cast %18 : vector<1x1x32x32xf32> to vector<32x32xf32>
    %cst_20 = arith.constant dense<0.000000e+00> : vector<24x32xf32>
    %20 = tpu.matmul %17, %19, %cst_20 {dimension_numbers = #tpu.dot_dimension_numbers<[1], [0], [0], [1], [0, 0, 1, 1], [], []>} : vector<24x32xf32>, vector<32x32xf32>, vector<24x32xf32> -> vector<24x32xf32>
    %c0_21 = arith.constant 0 : index
    %c0_22 = arith.constant 0 : index
    %c0_23 = arith.constant 0 : index
    %c0_24 = arith.constant 0 : index
    %21 = vector.load %arg6[%c0_21, %c0_22, %c0_23, %c0_24] : memref<1x2x1x32xf32, #tpu.memory_space<vmem>>, vector<1x1x1x32xf32>
    %22 = vector.shape_cast %21 : vector<1x1x1x32xf32> to vector<1x32xf32>
    %23 = vector.broadcast %22 : vector<1x32xf32> to vector<24x32xf32>
    %24 = arith.addf %20, %23 : vector<24x32xf32>
    %cst_25 = arith.constant 0.000000e+00 : f32
    %25 = vector.broadcast %cst_25 : f32 to vector<24x32xf32>
    %26 = arith.cmpf oge, %24, %25 : vector<24x32xf32>
    %cst_26 = arith.constant 0.00999999977 : f32
    %27 = vector.broadcast %cst_26 : f32 to vector<24x32xf32>
    %28 = arith.mulf %27, %24 : vector<24x32xf32>
    %29 = arith.select %26, %24, %28 : vector<24x32xi1>, vector<24x32xf32>
    %30 = arith.addf %16, %29 : vector<24x32xf32>
    %31 = arith.mulf %30, %30 : vector<24x32xf32>
    %cst_27 = arith.constant dense<0.000000e+00> : vector<24xf32>
    %32 = vector.multi_reduction <add>, %31, %cst_27 [1] : vector<24x32xf32> to vector<24xf32>
    %33 = vector.shape_cast %32 : vector<24xf32> to vector<24x1xf32>
    %cst_28 = arith.constant 1.000000e-24 : f32
    %34 = vector.broadcast %cst_28 : f32 to vector<24x1xf32>
    %35 = arith.maximumf %33, %34 : vector<24x1xf32>
    %36 = math.rsqrt %35 : vector<24x1xf32>
    %37 = vector.broadcast %36 : vector<24x1xf32> to vector<24x32xf32>
    %38 = arith.mulf %30, %37 : vector<24x32xf32>
    %39 = arith.addf %3, %38 : vector<24x32xf32>
    %cst_29 = arith.constant dense<0.000000e+00> : vector<24x32xf32>
    %40 = tpu.matmul %1, %30, %cst_29 {dimension_numbers = #tpu.dot_dimension_numbers<[1], [0], [0], [1], [0, 0, 1, 1], [], []>} : vector<24x24xf32>, vector<24x32xf32>, vector<24x32xf32> -> vector<24x32xf32>
    %c0_30 = arith.constant 0 : index
    %c1 = arith.constant 1 : index
    %c0_31 = arith.constant 0 : index
    %c0_32 = arith.constant 0 : index
    %41 = vector.load %arg3[%c0_30, %c1, %c0_31, %c0_32] : memref<1x2x32x32xf32, #tpu.memory_space<vmem>>, vector<1x1x32x32xf32>
    %42 = vector.shape_cast %41 : vector<1x1x32x32xf32> to vector<32x32xf32>
    %cst_33 = arith.constant dense<0.000000e+00> : vector<24x32xf32>
    %43 = tpu.matmul %40, %42, %cst_33 {dimension_numbers = #tpu.dot_dimension_numbers<[1], [0], [0], [1], [0, 0, 1, 1], [], []>} : vector<24x32xf32>, vector<32x32xf32>, vector<24x32xf32> -> vector<24x32xf32>
    %c0_34 = arith.constant 0 : index
    %c1_35 = arith.constant 1 : index
    %c0_36 = arith.constant 0 : index
    %c0_37 = arith.constant 0 : index
    %44 = vector.load %arg4[%c0_34, %c1_35, %c0_36, %c0_37] : memref<1x2x1x32xf32, #tpu.memory_space<vmem>>, vector<1x1x1x32xf32>
    %45 = vector.shape_cast %44 : vector<1x1x1x32xf32> to vector<1x32xf32>
    %46 = vector.broadcast %45 : vector<1x32xf32> to vector<24x32xf32>
    %47 = arith.addf %43, %46 : vector<24x32xf32>
    %cst_38 = arith.constant 0.000000e+00 : f32
    %48 = vector.broadcast %cst_38 : f32 to vector<24x32xf32>
    %49 = arith.cmpf oge, %47, %48 : vector<24x32xf32>
    %cst_39 = arith.constant 0.00999999977 : f32
    %50 = vector.broadcast %cst_39 : f32 to vector<24x32xf32>
    %51 = arith.mulf %50, %47 : vector<24x32xf32>
    %52 = arith.select %49, %47, %51 : vector<24x32xi1>, vector<24x32xf32>
    %53 = arith.mulf %30, %40 : vector<24x32xf32>
    %c0_40 = arith.constant 0 : index
    %c1_41 = arith.constant 1 : index
    %c0_42 = arith.constant 0 : index
    %c0_43 = arith.constant 0 : index
    %54 = vector.load %arg5[%c0_40, %c1_41, %c0_42, %c0_43] : memref<1x2x32x32xf32, #tpu.memory_space<vmem>>, vector<1x1x32x32xf32>
    %55 = vector.shape_cast %54 : vector<1x1x32x32xf32> to vector<32x32xf32>
    %cst_44 = arith.constant dense<0.000000e+00> : vector<24x32xf32>
    %56 = tpu.matmul %53, %55, %cst_44 {dimension_numbers = #tpu.dot_dimension_numbers<[1], [0], [0], [1], [0, 0, 1, 1], [], []>} : vector<24x32xf32>, vector<32x32xf32>, vector<24x32xf32> -> vector<24x32xf32>
    %c0_45 = arith.constant 0 : index
    %c1_46 = arith.constant 1 : index
    %c0_47 = arith.constant 0 : index
    %c0_48 = arith.constant 0 : index
    %57 = vector.load %arg6[%c0_45, %c1_46, %c0_47, %c0_48] : memref<1x2x1x32xf32, #tpu.memory_space<vmem>>, vector<1x1x1x32xf32>
    %58 = vector.shape_cast %57 : vector<1x1x1x32xf32> to vector<1x32xf32>
    %59 = vector.broadcast %58 : vector<1x32xf32> to vector<24x32xf32>
    %60 = arith.addf %56, %59 : vector<24x32xf32>
    %cst_49 = arith.constant 0.000000e+00 : f32
    %61 = vector.broadcast %cst_49 : f32 to vector<24x32xf32>
    %62 = arith.cmpf oge, %60, %61 : vector<24x32xf32>
    %cst_50 = arith.constant 0.00999999977 : f32
    %63 = vector.broadcast %cst_50 : f32 to vector<24x32xf32>
    %64 = arith.mulf %63, %60 : vector<24x32xf32>
    %65 = arith.select %62, %60, %64 : vector<24x32xi1>, vector<24x32xf32>
    %66 = arith.addf %52, %65 : vector<24x32xf32>
    %67 = arith.mulf %66, %66 : vector<24x32xf32>
    %cst_51 = arith.constant dense<0.000000e+00> : vector<24xf32>
    %68 = vector.multi_reduction <add>, %67, %cst_51 [1] : vector<24x32xf32> to vector<24xf32>
    %69 = vector.shape_cast %68 : vector<24xf32> to vector<24x1xf32>
    %cst_52 = arith.constant 1.000000e-24 : f32
    %70 = vector.broadcast %cst_52 : f32 to vector<24x1xf32>
    %71 = arith.maximumf %69, %70 : vector<24x1xf32>
    %72 = math.rsqrt %71 : vector<24x1xf32>
    %73 = vector.broadcast %72 : vector<24x1xf32> to vector<24x32xf32>
    %74 = arith.mulf %66, %73 : vector<24x32xf32>
    %75 = arith.addf %39, %74 : vector<24x32xf32>
    %cst_53 = arith.constant 0.333333343 : f32
    %76 = vector.broadcast %cst_53 : f32 to vector<24x32xf32>
    %77 = arith.mulf %75, %76 : vector<24x32xf32>
    %c0_54 = arith.constant 0 : index
    %c0_55 = arith.constant 0 : index
    %c0_56 = arith.constant 0 : index
    %78 = vector.load %arg7[%c0_54, %c0_55, %c0_56] : memref<1x24x32xf32, #tpu.memory_space<vmem>>, vector<1x24x32xf32>
    %79 = vector.shape_cast %78 : vector<1x24x32xf32> to vector<24x32xf32>
    %80 = vector.shape_cast %77 : vector<24x32xf32> to vector<1x24x32xf32>
    tpu.vector_store %arg7[%c0_54, %c0_55, %c0_56], %80 {strides = array<i32>} : memref<1x24x32xf32, #tpu.memory_space<vmem>>, vector<1x24x32xf32>,
    return
  }
  func.func @transform_0(%arg0: i32) -> (i32, i32, i32) {
    %c0_i32 = arith.constant 0 : i32
    %c0_i32_0 = arith.constant 0 : i32
    %c0_i32_1 = arith.constant 0 : i32
    return %arg0, %c0_i32, %c0_i32_0 : i32, i32, i32
  }
  func.func @transform_1(%arg0: i32) -> (i32, i32, i32) {
    %c0_i32 = arith.constant 0 : i32
    %c0_i32_0 = arith.constant 0 : i32
    %c0_i32_1 = arith.constant 0 : i32
    return %arg0, %c0_i32, %c0_i32_0 : i32, i32, i32
  }
  func.func @transform_2(%arg0: i32) -> (i32, i32, i32, i32) {
    %c0_i32 = arith.constant 0 : i32
    %c0_i32_0 = arith.constant 0 : i32
    %c0_i32_1 = arith.constant 0 : i32
    %c0_i32_2 = arith.constant 0 : i32
    return %arg0, %c0_i32, %c0_i32_0, %c0_i32_1 : i32, i32, i32, i32
  }
  func.func @transform_3(%arg0: i32) -> (i32, i32, i32, i32) {
    %c0_i32 = arith.constant 0 : i32
    %c0_i32_0 = arith.constant 0 : i32
    %c0_i32_1 = arith.constant 0 : i32
    %c0_i32_2 = arith.constant 0 : i32
    return %arg0, %c0_i32, %c0_i32_0, %c0_i32_1 : i32, i32, i32, i32
  }
  func.func @transform_4(%arg0: i32) -> (i32, i32, i32, i32) {
    %c0_i32 = arith.constant 0 : i32
    %c0_i32_0 = arith.constant 0 : i32
    %c0_i32_1 = arith.constant 0 : i32
    %c0_i32_2 = arith.constant 0 : i32
    return %arg0, %c0_i32, %c0_i32_0, %c0_i32_1 : i32, i32, i32, i32
  }
  func.func @transform_5(%arg0: i32) -> (i32, i32, i32, i32) {
    %c0_i32 = arith.constant 0 : i32
    %c0_i32_0 = arith.constant 0 : i32
    %c0_i32_1 = arith.constant 0 : i32
    %c0_i32_2 = arith.constant 0 : i32
    return %arg0, %c0_i32, %c0_i32_0, %c0_i32_1 : i32, i32, i32, i32
  }
  func.func @transform_6(%arg0: i32) -> (i32, i32, i32) {
    %c0_i32 = arith.constant 0 : i32
    %c0_i32_0 = arith.constant 0 : i32
    %c0_i32_1 = arith.constant 0 : i32
    return %arg0, %c0_i32, %c0_i32_0 : i32, i32, i32
  }
}

module attributes {stable_mosaic.version = 11 : i64} {
  func.func @_seq_kernel(%arg0: memref<2x8x32xf32, #tpu.memory_space<vmem>>, %arg1: memref<32x96xf32, #tpu.memory_space<vmem>>, %arg2: memref<1x96xf32, #tpu.memory_space<vmem>>, %arg3: memref<32x96xf32, #tpu.memory_space<vmem>>, %arg4: memref<1x96xf32, #tpu.memory_space<vmem>>, %arg5: memref<2x8x32xf32, #tpu.memory_space<vmem>>, %arg6: memref<2x8x32xf32, #tpu.memory_space<vmem>>, %arg7: memref<2x16xf32, #tpu.memory_space<vmem>>, %arg8: memref<2x32xf32, #tpu.memory_space<vmem>>) attributes {dimension_semantics = [], scalar_prefetch = 0 : i64, scratch_operands = 0 : i64, tpu.core_type = #tpu.core_type<tc>} {
    %c0 = arith.constant 0 : index
    %c0_0 = arith.constant 0 : index
    %c0_1 = arith.constant 0 : index
    %0 = vector.load %arg0[%c0, %c0_0, %c0_1] : memref<2x8x32xf32, #tpu.memory_space<vmem>>, vector<2x8x32xf32>
    %cst = arith.constant dense<0.000000e+00> : vector<2x32xf32>
    %1 = vector.multi_reduction <add>, %0, %cst [1] : vector<2x8x32xf32> to vector<2x32xf32>
    %cst_2 = arith.constant 8.000000e+00 : f32
    %2 = vector.broadcast %cst_2 : f32 to vector<2x32xf32>
    %3 = arith.divf %1, %2 : vector<2x32xf32>
    %cst_3 = arith.constant dense<0.000000e+00> : vector<2xf32>
    %4 = vector.multi_reduction <add>, %3, %cst_3 [1] : vector<2x32xf32> to vector<2xf32>
    %5 = vector.shape_cast %4 : vector<2xf32> to vector<2x1xf32>
    %cst_4 = arith.constant 3.200000e+01 : f32
    %6 = vector.broadcast %cst_4 : f32 to vector<2x1xf32>
    %7 = arith.divf %5, %6 : vector<2x1xf32>
    %8 = vector.broadcast %7 : vector<2x1xf32> to vector<2x32xf32>
    %9 = arith.subf %3, %8 : vector<2x32xf32>
    %10 = arith.mulf %9, %9 : vector<2x32xf32>
    %cst_5 = arith.constant dense<0.000000e+00> : vector<2xf32>
    %11 = vector.multi_reduction <add>, %10, %cst_5 [1] : vector<2x32xf32> to vector<2xf32>
    %12 = vector.shape_cast %11 : vector<2xf32> to vector<2x1xf32>
    %cst_6 = arith.constant 3.200000e+01 : f32
    %13 = vector.broadcast %cst_6 : f32 to vector<2x1xf32>
    %14 = arith.divf %12, %13 : vector<2x1xf32>
    %15 = vector.broadcast %7 : vector<2x1xf32> to vector<2x32xf32>
    %16 = arith.subf %3, %15 : vector<2x32xf32>
    %cst_7 = arith.constant 9.99999993E-9 : f32
    %17 = vector.broadcast %cst_7 : f32 to vector<2x1xf32>
    %18 = arith.addf %14, %17 : vector<2x1xf32>
    %19 = math.rsqrt %18 : vector<2x1xf32>
    %20 = vector.broadcast %19 : vector<2x1xf32> to vector<2x32xf32>
    %21 = arith.mulf %16, %20 : vector<2x32xf32>
    %22 = vector.shape_cast %0 : vector<2x8x32xf32> to vector<16x32xf32>
    %c0_8 = arith.constant 0 : index
    %c0_9 = arith.constant 0 : index
    %23 = vector.load %arg1[%c0_8, %c0_9] : memref<32x96xf32, #tpu.memory_space<vmem>>, vector<32x96xf32>
    %cst_10 = arith.constant dense<0.000000e+00> : vector<16x96xf32>
    %24 = tpu.matmul %22, %23, %cst_10 {dimension_numbers = #tpu.dot_dimension_numbers<[1], [0], [0], [1], [0, 0, 1, 1], [], []>} : vector<16x32xf32>, vector<32x96xf32>, vector<16x96xf32> -> vector<16x96xf32>
    %c0_11 = arith.constant 0 : index
    %c0_12 = arith.constant 0 : index
    %25 = vector.load %arg2[%c0_11, %c0_12] : memref<1x96xf32, #tpu.memory_space<vmem>>, vector<1x96xf32>
    %26 = vector.broadcast %25 : vector<1x96xf32> to vector<16x96xf32>
    %27 = arith.addf %24, %26 : vector<16x96xf32>
    %28 = vector.shape_cast %27 : vector<16x96xf32> to vector<2x8x96xf32>
    %c0_13 = arith.constant 0 : index
    %c0_14 = arith.constant 0 : index
    %29 = vector.load %arg3[%c0_13, %c0_14] : memref<32x96xf32, #tpu.memory_space<vmem>>, vector<32x96xf32>
    %c0_15 = arith.constant 0 : index
    %c0_16 = arith.constant 0 : index
    %30 = vector.load %arg4[%c0_15, %c0_16] : memref<1x96xf32, #tpu.memory_space<vmem>>, vector<1x96xf32>
    %cst_17 = arith.constant 0.000000e+00 : f32
    %31 = vector.broadcast %cst_17 : f32 to vector<2x32xf32>
    %cst_18 = arith.constant dense<0.000000e+00> : vector<2x96xf32>
    %32 = tpu.matmul %31, %29, %cst_18 {dimension_numbers = #tpu.dot_dimension_numbers<[1], [0], [0], [1], [0, 0, 1, 1], [], []>} : vector<2x32xf32>, vector<32x96xf32>, vector<2x96xf32> -> vector<2x96xf32>
    %33 = vector.broadcast %30 : vector<1x96xf32> to vector<2x96xf32>
    %34 = arith.addf %32, %33 : vector<2x96xf32>
    %35 = vector.extract_strided_slice %28 {offsets = [0, 0, 0], sizes = [2, 1, 96], strides = [1, 1, 1]} : vector<2x8x96xf32> to vector<2x1x96xf32>
    %36 = vector.shape_cast %35 : vector<2x1x96xf32> to vector<2x96xf32>
    %37 = vector.extract_strided_slice %36 {offsets = [0, 0], sizes = [2, 32], strides = [1, 1]} : vector<2x96xf32> to vector<2x32xf32>
    %38 = vector.extract_strided_slice %34 {offsets = [0, 0], sizes = [2, 32], strides = [1, 1]} : vector<2x96xf32> to vector<2x32xf32>
    %39 = arith.addf %37, %38 : vector<2x32xf32>
    %40 = arith.negf %39 : vector<2x32xf32>
    %41 = math.exp %40 : vector<2x32xf32>
    %cst_19 = arith.constant 1.000000e+00 : f32
    %42 = vector.broadcast %cst_19 : f32 to vector<2x32xf32>
    %43 = arith.addf %42, %41 : vector<2x32xf32>
    %44 = arith.divf %42, %43 : vector<2x32xf32>
    %45 = vector.extract_strided_slice %36 {offsets = [0, 32], sizes = [2, 32], strides = [1, 1]} : vector<2x96xf32> to vector<2x32xf32>
    %46 = vector.extract_strided_slice %34 {offsets = [0, 32], sizes = [2, 32], strides = [1, 1]} : vector<2x96xf32> to vector<2x32xf32>
    %47 = arith.addf %45, %46 : vector<2x32xf32>
    %48 = arith.negf %47 : vector<2x32xf32>
    %49 = math.exp %48 : vector<2x32xf32>
    %cst_20 = arith.constant 1.000000e+00 : f32
    %50 = vector.broadcast %cst_20 : f32 to vector<2x32xf32>
    %51 = arith.addf %50, %49 : vector<2x32xf32>
    %52 = arith.divf %50, %51 : vector<2x32xf32>
    %53 = vector.extract_strided_slice %36 {offsets = [0, 64], sizes = [2, 32], strides = [1, 1]} : vector<2x96xf32> to vector<2x32xf32>
    %54 = vector.extract_strided_slice %34 {offsets = [0, 64], sizes = [2, 32], strides = [1, 1]} : vector<2x96xf32> to vector<2x32xf32>
    %55 = arith.mulf %44, %54 : vector<2x32xf32>
    %56 = arith.addf %53, %55 : vector<2x32xf32>
    %57 = math.tanh %56 : vector<2x32xf32>
    %cst_21 = arith.constant 1.000000e+00 : f32
    %58 = vector.broadcast %cst_21 : f32 to vector<2x32xf32>
    %59 = arith.subf %58, %52 : vector<2x32xf32>
    %60 = arith.mulf %59, %57 : vector<2x32xf32>
    %61 = arith.mulf %52, %31 : vector<2x32xf32>
    %62 = arith.addf %60, %61 : vector<2x32xf32>
    %cst_22 = arith.constant dense<0.000000e+00> : vector<2xf32>
    %63 = vector.multi_reduction <add>, %62, %cst_22 [1] : vector<2x32xf32> to vector<2xf32>
    %64 = vector.shape_cast %63 : vector<2xf32> to vector<2x1xf32>
    %cst_23 = arith.constant 3.200000e+01 : f32
    %65 = vector.broadcast %cst_23 : f32 to vector<2x1xf32>
    %66 = arith.divf %64, %65 : vector<2x1xf32>
    %67 = vector.broadcast %66 : vector<2x1xf32> to vector<2x32xf32>
    %68 = arith.subf %62, %67 : vector<2x32xf32>
    %69 = arith.mulf %68, %68 : vector<2x32xf32>
    %cst_24 = arith.constant dense<0.000000e+00> : vector<2xf32>
    %70 = vector.multi_reduction <add>, %69, %cst_24 [1] : vector<2x32xf32> to vector<2xf32>
    %71 = vector.shape_cast %70 : vector<2xf32> to vector<2x1xf32>
    %cst_25 = arith.constant 3.200000e+01 : f32
    %72 = vector.broadcast %cst_25 : f32 to vector<2x1xf32>
    %73 = arith.divf %71, %72 : vector<2x1xf32>
    %74 = vector.broadcast %66 : vector<2x1xf32> to vector<2x32xf32>
    %75 = arith.subf %62, %74 : vector<2x32xf32>
    %cst_26 = arith.constant 9.99999993E-9 : f32
    %76 = vector.broadcast %cst_26 : f32 to vector<2x1xf32>
    %77 = arith.addf %73, %76 : vector<2x1xf32>
    %78 = math.rsqrt %77 : vector<2x1xf32>
    %79 = vector.broadcast %78 : vector<2x1xf32> to vector<2x32xf32>
    %80 = arith.mulf %75, %79 : vector<2x32xf32>
    %81 = arith.addf %21, %80 : vector<2x32xf32>
    %c0_27 = arith.constant 0 : index
    %c0_28 = arith.constant 0 : index
    %c0_29 = arith.constant 0 : index
    %82 = vector.load %arg5[%c0_27, %c0_28, %c0_29] : memref<2x8x32xf32, #tpu.memory_space<vmem>>, vector<2x1x32xf32>
    %83 = vector.shape_cast %82 : vector<2x1x32xf32> to vector<2x32xf32>
    %84 = arith.mulf %81, %83 : vector<2x32xf32>
    %cst_30 = arith.constant dense<0.000000e+00> : vector<2xf32>
    %85 = vector.multi_reduction <add>, %84, %cst_30 [1] : vector<2x32xf32> to vector<2xf32>
    %86 = vector.shape_cast %85 : vector<2xf32> to vector<2x1xf32>
    %c0_31 = arith.constant 0 : index
    %c0_32 = arith.constant 0 : index
    %c0_33 = arith.constant 0 : index
    %87 = vector.load %arg6[%c0_31, %c0_32, %c0_33] : memref<2x8x32xf32, #tpu.memory_space<vmem>>, vector<2x1x32xf32>
    %88 = vector.shape_cast %87 : vector<2x1x32xf32> to vector<2x32xf32>
    %89 = arith.mulf %81, %88 : vector<2x32xf32>
    %cst_34 = arith.constant dense<0.000000e+00> : vector<2xf32>
    %90 = vector.multi_reduction <add>, %89, %cst_34 [1] : vector<2x32xf32> to vector<2xf32>
    %91 = vector.shape_cast %90 : vector<2xf32> to vector<2x1xf32>
    %cst_35 = arith.constant dense<0.000000e+00> : vector<2x96xf32>
    %92 = tpu.matmul %62, %29, %cst_35 {dimension_numbers = #tpu.dot_dimension_numbers<[1], [0], [0], [1], [0, 0, 1, 1], [], []>} : vector<2x32xf32>, vector<32x96xf32>, vector<2x96xf32> -> vector<2x96xf32>
    %93 = vector.broadcast %30 : vector<1x96xf32> to vector<2x96xf32>
    %94 = arith.addf %92, %93 : vector<2x96xf32>
    %95 = vector.extract_strided_slice %28 {offsets = [0, 1, 0], sizes = [2, 1, 96], strides = [1, 1, 1]} : vector<2x8x96xf32> to vector<2x1x96xf32>
    %96 = vector.shape_cast %95 : vector<2x1x96xf32> to vector<2x96xf32>
    %97 = vector.extract_strided_slice %96 {offsets = [0, 0], sizes = [2, 32], strides = [1, 1]} : vector<2x96xf32> to vector<2x32xf32>
    %98 = vector.extract_strided_slice %94 {offsets = [0, 0], sizes = [2, 32], strides = [1, 1]} : vector<2x96xf32> to vector<2x32xf32>
    %99 = arith.addf %97, %98 : vector<2x32xf32>
    %100 = arith.negf %99 : vector<2x32xf32>
    %101 = math.exp %100 : vector<2x32xf32>
    %cst_36 = arith.constant 1.000000e+00 : f32
    %102 = vector.broadcast %cst_36 : f32 to vector<2x32xf32>
    %103 = arith.addf %102, %101 : vector<2x32xf32>
    %104 = arith.divf %102, %103 : vector<2x32xf32>
    %105 = vector.extract_strided_slice %96 {offsets = [0, 32], sizes = [2, 32], strides = [1, 1]} : vector<2x96xf32> to vector<2x32xf32>
    %106 = vector.extract_strided_slice %94 {offsets = [0, 32], sizes = [2, 32], strides = [1, 1]} : vector<2x96xf32> to vector<2x32xf32>
    %107 = arith.addf %105, %106 : vector<2x32xf32>
    %108 = arith.negf %107 : vector<2x32xf32>
    %109 = math.exp %108 : vector<2x32xf32>
    %cst_37 = arith.constant 1.000000e+00 : f32
    %110 = vector.broadcast %cst_37 : f32 to vector<2x32xf32>
    %111 = arith.addf %110, %109 : vector<2x32xf32>
    %112 = arith.divf %110, %111 : vector<2x32xf32>
    %113 = vector.extract_strided_slice %96 {offsets = [0, 64], sizes = [2, 32], strides = [1, 1]} : vector<2x96xf32> to vector<2x32xf32>
    %114 = vector.extract_strided_slice %94 {offsets = [0, 64], sizes = [2, 32], strides = [1, 1]} : vector<2x96xf32> to vector<2x32xf32>
    %115 = arith.mulf %104, %114 : vector<2x32xf32>
    %116 = arith.addf %113, %115 : vector<2x32xf32>
    %117 = math.tanh %116 : vector<2x32xf32>
    %cst_38 = arith.constant 1.000000e+00 : f32
    %118 = vector.broadcast %cst_38 : f32 to vector<2x32xf32>
    %119 = arith.subf %118, %112 : vector<2x32xf32>
    %120 = arith.mulf %119, %117 : vector<2x32xf32>
    %121 = arith.mulf %112, %62 : vector<2x32xf32>
    %122 = arith.addf %120, %121 : vector<2x32xf32>
    %cst_39 = arith.constant dense<0.000000e+00> : vector<2xf32>
    %123 = vector.multi_reduction <add>, %122, %cst_39 [1] : vector<2x32xf32> to vector<2xf32>
    %124 = vector.shape_cast %123 : vector<2xf32> to vector<2x1xf32>
    %cst_40 = arith.constant 3.200000e+01 : f32
    %125 = vector.broadcast %cst_40 : f32 to vector<2x1xf32>
    %126 = arith.divf %124, %125 : vector<2x1xf32>
    %127 = vector.broadcast %126 : vector<2x1xf32> to vector<2x32xf32>
    %128 = arith.subf %122, %127 : vector<2x32xf32>
    %129 = arith.mulf %128, %128 : vector<2x32xf32>
    %cst_41 = arith.constant dense<0.000000e+00> : vector<2xf32>
    %130 = vector.multi_reduction <add>, %129, %cst_41 [1] : vector<2x32xf32> to vector<2xf32>
    %131 = vector.shape_cast %130 : vector<2xf32> to vector<2x1xf32>
    %cst_42 = arith.constant 3.200000e+01 : f32
    %132 = vector.broadcast %cst_42 : f32 to vector<2x1xf32>
    %133 = arith.divf %131, %132 : vector<2x1xf32>
    %134 = vector.broadcast %126 : vector<2x1xf32> to vector<2x32xf32>
    %135 = arith.subf %122, %134 : vector<2x32xf32>
    %cst_43 = arith.constant 9.99999993E-9 : f32
    %136 = vector.broadcast %cst_43 : f32 to vector<2x1xf32>
    %137 = arith.addf %133, %136 : vector<2x1xf32>
    %138 = math.rsqrt %137 : vector<2x1xf32>
    %139 = vector.broadcast %138 : vector<2x1xf32> to vector<2x32xf32>
    %140 = arith.mulf %135, %139 : vector<2x32xf32>
    %141 = arith.addf %21, %140 : vector<2x32xf32>
    %c0_44 = arith.constant 0 : index
    %c1 = arith.constant 1 : index
    %c0_45 = arith.constant 0 : index
    %142 = vector.load %arg5[%c0_44, %c1, %c0_45] : memref<2x8x32xf32, #tpu.memory_space<vmem>>, vector<2x1x32xf32>
    %143 = vector.shape_cast %142 : vector<2x1x32xf32> to vector<2x32xf32>
    %144 = arith.mulf %141, %143 : vector<2x32xf32>
    %cst_46 = arith.constant dense<0.000000e+00> : vector<2xf32>
    %145 = vector.multi_reduction <add>, %144, %cst_46 [1] : vector<2x32xf32> to vector<2xf32>
    %146 = vector.shape_cast %145 : vector<2xf32> to vector<2x1xf32>
    %c0_47 = arith.constant 0 : index
    %c1_48 = arith.constant 1 : index
    %c0_49 = arith.constant 0 : index
    %147 = vector.load %arg6[%c0_47, %c1_48, %c0_49] : memref<2x8x32xf32, #tpu.memory_space<vmem>>, vector<2x1x32xf32>
    %148 = vector.shape_cast %147 : vector<2x1x32xf32> to vector<2x32xf32>
    %149 = arith.mulf %141, %148 : vector<2x32xf32>
    %cst_50 = arith.constant dense<0.000000e+00> : vector<2xf32>
    %150 = vector.multi_reduction <add>, %149, %cst_50 [1] : vector<2x32xf32> to vector<2xf32>
    %151 = vector.shape_cast %150 : vector<2xf32> to vector<2x1xf32>
    %cst_51 = arith.constant dense<0.000000e+00> : vector<2x96xf32>
    %152 = tpu.matmul %122, %29, %cst_51 {dimension_numbers = #tpu.dot_dimension_numbers<[1], [0], [0], [1], [0, 0, 1, 1], [], []>} : vector<2x32xf32>, vector<32x96xf32>, vector<2x96xf32> -> vector<2x96xf32>
    %153 = vector.broadcast %30 : vector<1x96xf32> to vector<2x96xf32>
    %154 = arith.addf %152, %153 : vector<2x96xf32>
    %155 = vector.extract_strided_slice %28 {offsets = [0, 2, 0], sizes = [2, 1, 96], strides = [1, 1, 1]} : vector<2x8x96xf32> to vector<2x1x96xf32>
    %156 = vector.shape_cast %155 : vector<2x1x96xf32> to vector<2x96xf32>
    %157 = vector.extract_strided_slice %156 {offsets = [0, 0], sizes = [2, 32], strides = [1, 1]} : vector<2x96xf32> to vector<2x32xf32>
    %158 = vector.extract_strided_slice %154 {offsets = [0, 0], sizes = [2, 32], strides = [1, 1]} : vector<2x96xf32> to vector<2x32xf32>
    %159 = arith.addf %157, %158 : vector<2x32xf32>
    %160 = arith.negf %159 : vector<2x32xf32>
    %161 = math.exp %160 : vector<2x32xf32>
    %cst_52 = arith.constant 1.000000e+00 : f32
    %162 = vector.broadcast %cst_52 : f32 to vector<2x32xf32>
    %163 = arith.addf %162, %161 : vector<2x32xf32>
    %164 = arith.divf %162, %163 : vector<2x32xf32>
    %165 = vector.extract_strided_slice %156 {offsets = [0, 32], sizes = [2, 32], strides = [1, 1]} : vector<2x96xf32> to vector<2x32xf32>
    %166 = vector.extract_strided_slice %154 {offsets = [0, 32], sizes = [2, 32], strides = [1, 1]} : vector<2x96xf32> to vector<2x32xf32>
    %167 = arith.addf %165, %166 : vector<2x32xf32>
    %168 = arith.negf %167 : vector<2x32xf32>
    %169 = math.exp %168 : vector<2x32xf32>
    %cst_53 = arith.constant 1.000000e+00 : f32
    %170 = vector.broadcast %cst_53 : f32 to vector<2x32xf32>
    %171 = arith.addf %170, %169 : vector<2x32xf32>
    %172 = arith.divf %170, %171 : vector<2x32xf32>
    %173 = vector.extract_strided_slice %156 {offsets = [0, 64], sizes = [2, 32], strides = [1, 1]} : vector<2x96xf32> to vector<2x32xf32>
    %174 = vector.extract_strided_slice %154 {offsets = [0, 64], sizes = [2, 32], strides = [1, 1]} : vector<2x96xf32> to vector<2x32xf32>
    %175 = arith.mulf %164, %174 : vector<2x32xf32>
    %176 = arith.addf %173, %175 : vector<2x32xf32>
    %177 = math.tanh %176 : vector<2x32xf32>
    %cst_54 = arith.constant 1.000000e+00 : f32
    %178 = vector.broadcast %cst_54 : f32 to vector<2x32xf32>
    %179 = arith.subf %178, %172 : vector<2x32xf32>
    %180 = arith.mulf %179, %177 : vector<2x32xf32>
    %181 = arith.mulf %172, %122 : vector<2x32xf32>
    %182 = arith.addf %180, %181 : vector<2x32xf32>
    %cst_55 = arith.constant dense<0.000000e+00> : vector<2xf32>
    %183 = vector.multi_reduction <add>, %182, %cst_55 [1] : vector<2x32xf32> to vector<2xf32>
    %184 = vector.shape_cast %183 : vector<2xf32> to vector<2x1xf32>
    %cst_56 = arith.constant 3.200000e+01 : f32
    %185 = vector.broadcast %cst_56 : f32 to vector<2x1xf32>
    %186 = arith.divf %184, %185 : vector<2x1xf32>
    %187 = vector.broadcast %186 : vector<2x1xf32> to vector<2x32xf32>
    %188 = arith.subf %182, %187 : vector<2x32xf32>
    %189 = arith.mulf %188, %188 : vector<2x32xf32>
    %cst_57 = arith.constant dense<0.000000e+00> : vector<2xf32>
    %190 = vector.multi_reduction <add>, %189, %cst_57 [1] : vector<2x32xf32> to vector<2xf32>
    %191 = vector.shape_cast %190 : vector<2xf32> to vector<2x1xf32>
    %cst_58 = arith.constant 3.200000e+01 : f32
    %192 = vector.broadcast %cst_58 : f32 to vector<2x1xf32>
    %193 = arith.divf %191, %192 : vector<2x1xf32>
    %194 = vector.broadcast %186 : vector<2x1xf32> to vector<2x32xf32>
    %195 = arith.subf %182, %194 : vector<2x32xf32>
    %cst_59 = arith.constant 9.99999993E-9 : f32
    %196 = vector.broadcast %cst_59 : f32 to vector<2x1xf32>
    %197 = arith.addf %193, %196 : vector<2x1xf32>
    %198 = math.rsqrt %197 : vector<2x1xf32>
    %199 = vector.broadcast %198 : vector<2x1xf32> to vector<2x32xf32>
    %200 = arith.mulf %195, %199 : vector<2x32xf32>
    %201 = arith.addf %21, %200 : vector<2x32xf32>
    %c0_60 = arith.constant 0 : index
    %c2 = arith.constant 2 : index
    %c0_61 = arith.constant 0 : index
    %202 = vector.load %arg5[%c0_60, %c2, %c0_61] : memref<2x8x32xf32, #tpu.memory_space<vmem>>, vector<2x1x32xf32>
    %203 = vector.shape_cast %202 : vector<2x1x32xf32> to vector<2x32xf32>
    %204 = arith.mulf %201, %203 : vector<2x32xf32>
    %cst_62 = arith.constant dense<0.000000e+00> : vector<2xf32>
    %205 = vector.multi_reduction <add>, %204, %cst_62 [1] : vector<2x32xf32> to vector<2xf32>
    %206 = vector.shape_cast %205 : vector<2xf32> to vector<2x1xf32>
    %c0_63 = arith.constant 0 : index
    %c2_64 = arith.constant 2 : index
    %c0_65 = arith.constant 0 : index
    %207 = vector.load %arg6[%c0_63, %c2_64, %c0_65] : memref<2x8x32xf32, #tpu.memory_space<vmem>>, vector<2x1x32xf32>
    %208 = vector.shape_cast %207 : vector<2x1x32xf32> to vector<2x32xf32>
    %209 = arith.mulf %201, %208 : vector<2x32xf32>
    %cst_66 = arith.constant dense<0.000000e+00> : vector<2xf32>
    %210 = vector.multi_reduction <add>, %209, %cst_66 [1] : vector<2x32xf32> to vector<2xf32>
    %211 = vector.shape_cast %210 : vector<2xf32> to vector<2x1xf32>
    %cst_67 = arith.constant dense<0.000000e+00> : vector<2x96xf32>
    %212 = tpu.matmul %182, %29, %cst_67 {dimension_numbers = #tpu.dot_dimension_numbers<[1], [0], [0], [1], [0, 0, 1, 1], [], []>} : vector<2x32xf32>, vector<32x96xf32>, vector<2x96xf32> -> vector<2x96xf32>
    %213 = vector.broadcast %30 : vector<1x96xf32> to vector<2x96xf32>
    %214 = arith.addf %212, %213 : vector<2x96xf32>
    %215 = vector.extract_strided_slice %28 {offsets = [0, 3, 0], sizes = [2, 1, 96], strides = [1, 1, 1]} : vector<2x8x96xf32> to vector<2x1x96xf32>
    %216 = vector.shape_cast %215 : vector<2x1x96xf32> to vector<2x96xf32>
    %217 = vector.extract_strided_slice %216 {offsets = [0, 0], sizes = [2, 32], strides = [1, 1]} : vector<2x96xf32> to vector<2x32xf32>
    %218 = vector.extract_strided_slice %214 {offsets = [0, 0], sizes = [2, 32], strides = [1, 1]} : vector<2x96xf32> to vector<2x32xf32>
    %219 = arith.addf %217, %218 : vector<2x32xf32>
    %220 = arith.negf %219 : vector<2x32xf32>
    %221 = math.exp %220 : vector<2x32xf32>
    %cst_68 = arith.constant 1.000000e+00 : f32
    %222 = vector.broadcast %cst_68 : f32 to vector<2x32xf32>
    %223 = arith.addf %222, %221 : vector<2x32xf32>
    %224 = arith.divf %222, %223 : vector<2x32xf32>
    %225 = vector.extract_strided_slice %216 {offsets = [0, 32], sizes = [2, 32], strides = [1, 1]} : vector<2x96xf32> to vector<2x32xf32>
    %226 = vector.extract_strided_slice %214 {offsets = [0, 32], sizes = [2, 32], strides = [1, 1]} : vector<2x96xf32> to vector<2x32xf32>
    %227 = arith.addf %225, %226 : vector<2x32xf32>
    %228 = arith.negf %227 : vector<2x32xf32>
    %229 = math.exp %228 : vector<2x32xf32>
    %cst_69 = arith.constant 1.000000e+00 : f32
    %230 = vector.broadcast %cst_69 : f32 to vector<2x32xf32>
    %231 = arith.addf %230, %229 : vector<2x32xf32>
    %232 = arith.divf %230, %231 : vector<2x32xf32>
    %233 = vector.extract_strided_slice %216 {offsets = [0, 64], sizes = [2, 32], strides = [1, 1]} : vector<2x96xf32> to vector<2x32xf32>
    %234 = vector.extract_strided_slice %214 {offsets = [0, 64], sizes = [2, 32], strides = [1, 1]} : vector<2x96xf32> to vector<2x32xf32>
    %235 = arith.mulf %224, %234 : vector<2x32xf32>
    %236 = arith.addf %233, %235 : vector<2x32xf32>
    %237 = math.tanh %236 : vector<2x32xf32>
    %cst_70 = arith.constant 1.000000e+00 : f32
    %238 = vector.broadcast %cst_70 : f32 to vector<2x32xf32>
    %239 = arith.subf %238, %232 : vector<2x32xf32>
    %240 = arith.mulf %239, %237 : vector<2x32xf32>
    %241 = arith.mulf %232, %182 : vector<2x32xf32>
    %242 = arith.addf %240, %241 : vector<2x32xf32>
    %cst_71 = arith.constant dense<0.000000e+00> : vector<2xf32>
    %243 = vector.multi_reduction <add>, %242, %cst_71 [1] : vector<2x32xf32> to vector<2xf32>
    %244 = vector.shape_cast %243 : vector<2xf32> to vector<2x1xf32>
    %cst_72 = arith.constant 3.200000e+01 : f32
    %245 = vector.broadcast %cst_72 : f32 to vector<2x1xf32>
    %246 = arith.divf %244, %245 : vector<2x1xf32>
    %247 = vector.broadcast %246 : vector<2x1xf32> to vector<2x32xf32>
    %248 = arith.subf %242, %247 : vector<2x32xf32>
    %249 = arith.mulf %248, %248 : vector<2x32xf32>
    %cst_73 = arith.constant dense<0.000000e+00> : vector<2xf32>
    %250 = vector.multi_reduction <add>, %249, %cst_73 [1] : vector<2x32xf32> to vector<2xf32>
    %251 = vector.shape_cast %250 : vector<2xf32> to vector<2x1xf32>
    %cst_74 = arith.constant 3.200000e+01 : f32
    %252 = vector.broadcast %cst_74 : f32 to vector<2x1xf32>
    %253 = arith.divf %251, %252 : vector<2x1xf32>
    %254 = vector.broadcast %246 : vector<2x1xf32> to vector<2x32xf32>
    %255 = arith.subf %242, %254 : vector<2x32xf32>
    %cst_75 = arith.constant 9.99999993E-9 : f32
    %256 = vector.broadcast %cst_75 : f32 to vector<2x1xf32>
    %257 = arith.addf %253, %256 : vector<2x1xf32>
    %258 = math.rsqrt %257 : vector<2x1xf32>
    %259 = vector.broadcast %258 : vector<2x1xf32> to vector<2x32xf32>
    %260 = arith.mulf %255, %259 : vector<2x32xf32>
    %261 = arith.addf %21, %260 : vector<2x32xf32>
    %c0_76 = arith.constant 0 : index
    %c3 = arith.constant 3 : index
    %c0_77 = arith.constant 0 : index
    %262 = vector.load %arg5[%c0_76, %c3, %c0_77] : memref<2x8x32xf32, #tpu.memory_space<vmem>>, vector<2x1x32xf32>
    %263 = vector.shape_cast %262 : vector<2x1x32xf32> to vector<2x32xf32>
    %264 = arith.mulf %261, %263 : vector<2x32xf32>
    %cst_78 = arith.constant dense<0.000000e+00> : vector<2xf32>
    %265 = vector.multi_reduction <add>, %264, %cst_78 [1] : vector<2x32xf32> to vector<2xf32>
    %266 = vector.shape_cast %265 : vector<2xf32> to vector<2x1xf32>
    %c0_79 = arith.constant 0 : index
    %c3_80 = arith.constant 3 : index
    %c0_81 = arith.constant 0 : index
    %267 = vector.load %arg6[%c0_79, %c3_80, %c0_81] : memref<2x8x32xf32, #tpu.memory_space<vmem>>, vector<2x1x32xf32>
    %268 = vector.shape_cast %267 : vector<2x1x32xf32> to vector<2x32xf32>
    %269 = arith.mulf %261, %268 : vector<2x32xf32>
    %cst_82 = arith.constant dense<0.000000e+00> : vector<2xf32>
    %270 = vector.multi_reduction <add>, %269, %cst_82 [1] : vector<2x32xf32> to vector<2xf32>
    %271 = vector.shape_cast %270 : vector<2xf32> to vector<2x1xf32>
    %cst_83 = arith.constant dense<0.000000e+00> : vector<2x96xf32>
    %272 = tpu.matmul %242, %29, %cst_83 {dimension_numbers = #tpu.dot_dimension_numbers<[1], [0], [0], [1], [0, 0, 1, 1], [], []>} : vector<2x32xf32>, vector<32x96xf32>, vector<2x96xf32> -> vector<2x96xf32>
    %273 = vector.broadcast %30 : vector<1x96xf32> to vector<2x96xf32>
    %274 = arith.addf %272, %273 : vector<2x96xf32>
    %275 = vector.extract_strided_slice %28 {offsets = [0, 4, 0], sizes = [2, 1, 96], strides = [1, 1, 1]} : vector<2x8x96xf32> to vector<2x1x96xf32>
    %276 = vector.shape_cast %275 : vector<2x1x96xf32> to vector<2x96xf32>
    %277 = vector.extract_strided_slice %276 {offsets = [0, 0], sizes = [2, 32], strides = [1, 1]} : vector<2x96xf32> to vector<2x32xf32>
    %278 = vector.extract_strided_slice %274 {offsets = [0, 0], sizes = [2, 32], strides = [1, 1]} : vector<2x96xf32> to vector<2x32xf32>
    %279 = arith.addf %277, %278 : vector<2x32xf32>
    %280 = arith.negf %279 : vector<2x32xf32>
    %281 = math.exp %280 : vector<2x32xf32>
    %cst_84 = arith.constant 1.000000e+00 : f32
    %282 = vector.broadcast %cst_84 : f32 to vector<2x32xf32>
    %283 = arith.addf %282, %281 : vector<2x32xf32>
    %284 = arith.divf %282, %283 : vector<2x32xf32>
    %285 = vector.extract_strided_slice %276 {offsets = [0, 32], sizes = [2, 32], strides = [1, 1]} : vector<2x96xf32> to vector<2x32xf32>
    %286 = vector.extract_strided_slice %274 {offsets = [0, 32], sizes = [2, 32], strides = [1, 1]} : vector<2x96xf32> to vector<2x32xf32>
    %287 = arith.addf %285, %286 : vector<2x32xf32>
    %288 = arith.negf %287 : vector<2x32xf32>
    %289 = math.exp %288 : vector<2x32xf32>
    %cst_85 = arith.constant 1.000000e+00 : f32
    %290 = vector.broadcast %cst_85 : f32 to vector<2x32xf32>
    %291 = arith.addf %290, %289 : vector<2x32xf32>
    %292 = arith.divf %290, %291 : vector<2x32xf32>
    %293 = vector.extract_strided_slice %276 {offsets = [0, 64], sizes = [2, 32], strides = [1, 1]} : vector<2x96xf32> to vector<2x32xf32>
    %294 = vector.extract_strided_slice %274 {offsets = [0, 64], sizes = [2, 32], strides = [1, 1]} : vector<2x96xf32> to vector<2x32xf32>
    %295 = arith.mulf %284, %294 : vector<2x32xf32>
    %296 = arith.addf %293, %295 : vector<2x32xf32>
    %297 = math.tanh %296 : vector<2x32xf32>
    %cst_86 = arith.constant 1.000000e+00 : f32
    %298 = vector.broadcast %cst_86 : f32 to vector<2x32xf32>
    %299 = arith.subf %298, %292 : vector<2x32xf32>
    %300 = arith.mulf %299, %297 : vector<2x32xf32>
    %301 = arith.mulf %292, %242 : vector<2x32xf32>
    %302 = arith.addf %300, %301 : vector<2x32xf32>
    %cst_87 = arith.constant dense<0.000000e+00> : vector<2xf32>
    %303 = vector.multi_reduction <add>, %302, %cst_87 [1] : vector<2x32xf32> to vector<2xf32>
    %304 = vector.shape_cast %303 : vector<2xf32> to vector<2x1xf32>
    %cst_88 = arith.constant 3.200000e+01 : f32
    %305 = vector.broadcast %cst_88 : f32 to vector<2x1xf32>
    %306 = arith.divf %304, %305 : vector<2x1xf32>
    %307 = vector.broadcast %306 : vector<2x1xf32> to vector<2x32xf32>
    %308 = arith.subf %302, %307 : vector<2x32xf32>
    %309 = arith.mulf %308, %308 : vector<2x32xf32>
    %cst_89 = arith.constant dense<0.000000e+00> : vector<2xf32>
    %310 = vector.multi_reduction <add>, %309, %cst_89 [1] : vector<2x32xf32> to vector<2xf32>
    %311 = vector.shape_cast %310 : vector<2xf32> to vector<2x1xf32>
    %cst_90 = arith.constant 3.200000e+01 : f32
    %312 = vector.broadcast %cst_90 : f32 to vector<2x1xf32>
    %313 = arith.divf %311, %312 : vector<2x1xf32>
    %314 = vector.broadcast %306 : vector<2x1xf32> to vector<2x32xf32>
    %315 = arith.subf %302, %314 : vector<2x32xf32>
    %cst_91 = arith.constant 9.99999993E-9 : f32
    %316 = vector.broadcast %cst_91 : f32 to vector<2x1xf32>
    %317 = arith.addf %313, %316 : vector<2x1xf32>
    %318 = math.rsqrt %317 : vector<2x1xf32>
    %319 = vector.broadcast %318 : vector<2x1xf32> to vector<2x32xf32>
    %320 = arith.mulf %315, %319 : vector<2x32xf32>
    %321 = arith.addf %21, %320 : vector<2x32xf32>
    %c0_92 = arith.constant 0 : index
    %c4 = arith.constant 4 : index
    %c0_93 = arith.constant 0 : index
    %322 = vector.load %arg5[%c0_92, %c4, %c0_93] : memref<2x8x32xf32, #tpu.memory_space<vmem>>, vector<2x1x32xf32>
    %323 = vector.shape_cast %322 : vector<2x1x32xf32> to vector<2x32xf32>
    %324 = arith.mulf %321, %323 : vector<2x32xf32>
    %cst_94 = arith.constant dense<0.000000e+00> : vector<2xf32>
    %325 = vector.multi_reduction <add>, %324, %cst_94 [1] : vector<2x32xf32> to vector<2xf32>
    %326 = vector.shape_cast %325 : vector<2xf32> to vector<2x1xf32>
    %c0_95 = arith.constant 0 : index
    %c4_96 = arith.constant 4 : index
    %c0_97 = arith.constant 0 : index
    %327 = vector.load %arg6[%c0_95, %c4_96, %c0_97] : memref<2x8x32xf32, #tpu.memory_space<vmem>>, vector<2x1x32xf32>
    %328 = vector.shape_cast %327 : vector<2x1x32xf32> to vector<2x32xf32>
    %329 = arith.mulf %321, %328 : vector<2x32xf32>
    %cst_98 = arith.constant dense<0.000000e+00> : vector<2xf32>
    %330 = vector.multi_reduction <add>, %329, %cst_98 [1] : vector<2x32xf32> to vector<2xf32>
    %331 = vector.shape_cast %330 : vector<2xf32> to vector<2x1xf32>
    %cst_99 = arith.constant dense<0.000000e+00> : vector<2x96xf32>
    %332 = tpu.matmul %302, %29, %cst_99 {dimension_numbers = #tpu.dot_dimension_numbers<[1], [0], [0], [1], [0, 0, 1, 1], [], []>} : vector<2x32xf32>, vector<32x96xf32>, vector<2x96xf32> -> vector<2x96xf32>
    %333 = vector.broadcast %30 : vector<1x96xf32> to vector<2x96xf32>
    %334 = arith.addf %332, %333 : vector<2x96xf32>
    %335 = vector.extract_strided_slice %28 {offsets = [0, 5, 0], sizes = [2, 1, 96], strides = [1, 1, 1]} : vector<2x8x96xf32> to vector<2x1x96xf32>
    %336 = vector.shape_cast %335 : vector<2x1x96xf32> to vector<2x96xf32>
    %337 = vector.extract_strided_slice %336 {offsets = [0, 0], sizes = [2, 32], strides = [1, 1]} : vector<2x96xf32> to vector<2x32xf32>
    %338 = vector.extract_strided_slice %334 {offsets = [0, 0], sizes = [2, 32], strides = [1, 1]} : vector<2x96xf32> to vector<2x32xf32>
    %339 = arith.addf %337, %338 : vector<2x32xf32>
    %340 = arith.negf %339 : vector<2x32xf32>
    %341 = math.exp %340 : vector<2x32xf32>
    %cst_100 = arith.constant 1.000000e+00 : f32
    %342 = vector.broadcast %cst_100 : f32 to vector<2x32xf32>
    %343 = arith.addf %342, %341 : vector<2x32xf32>
    %344 = arith.divf %342, %343 : vector<2x32xf32>
    %345 = vector.extract_strided_slice %336 {offsets = [0, 32], sizes = [2, 32], strides = [1, 1]} : vector<2x96xf32> to vector<2x32xf32>
    %346 = vector.extract_strided_slice %334 {offsets = [0, 32], sizes = [2, 32], strides = [1, 1]} : vector<2x96xf32> to vector<2x32xf32>
    %347 = arith.addf %345, %346 : vector<2x32xf32>
    %348 = arith.negf %347 : vector<2x32xf32>
    %349 = math.exp %348 : vector<2x32xf32>
    %cst_101 = arith.constant 1.000000e+00 : f32
    %350 = vector.broadcast %cst_101 : f32 to vector<2x32xf32>
    %351 = arith.addf %350, %349 : vector<2x32xf32>
    %352 = arith.divf %350, %351 : vector<2x32xf32>
    %353 = vector.extract_strided_slice %336 {offsets = [0, 64], sizes = [2, 32], strides = [1, 1]} : vector<2x96xf32> to vector<2x32xf32>
    %354 = vector.extract_strided_slice %334 {offsets = [0, 64], sizes = [2, 32], strides = [1, 1]} : vector<2x96xf32> to vector<2x32xf32>
    %355 = arith.mulf %344, %354 : vector<2x32xf32>
    %356 = arith.addf %353, %355 : vector<2x32xf32>
    %357 = math.tanh %356 : vector<2x32xf32>
    %cst_102 = arith.constant 1.000000e+00 : f32
    %358 = vector.broadcast %cst_102 : f32 to vector<2x32xf32>
    %359 = arith.subf %358, %352 : vector<2x32xf32>
    %360 = arith.mulf %359, %357 : vector<2x32xf32>
    %361 = arith.mulf %352, %302 : vector<2x32xf32>
    %362 = arith.addf %360, %361 : vector<2x32xf32>
    %cst_103 = arith.constant dense<0.000000e+00> : vector<2xf32>
    %363 = vector.multi_reduction <add>, %362, %cst_103 [1] : vector<2x32xf32> to vector<2xf32>
    %364 = vector.shape_cast %363 : vector<2xf32> to vector<2x1xf32>
    %cst_104 = arith.constant 3.200000e+01 : f32
    %365 = vector.broadcast %cst_104 : f32 to vector<2x1xf32>
    %366 = arith.divf %364, %365 : vector<2x1xf32>
    %367 = vector.broadcast %366 : vector<2x1xf32> to vector<2x32xf32>
    %368 = arith.subf %362, %367 : vector<2x32xf32>
    %369 = arith.mulf %368, %368 : vector<2x32xf32>
    %cst_105 = arith.constant dense<0.000000e+00> : vector<2xf32>
    %370 = vector.multi_reduction <add>, %369, %cst_105 [1] : vector<2x32xf32> to vector<2xf32>
    %371 = vector.shape_cast %370 : vector<2xf32> to vector<2x1xf32>
    %cst_106 = arith.constant 3.200000e+01 : f32
    %372 = vector.broadcast %cst_106 : f32 to vector<2x1xf32>
    %373 = arith.divf %371, %372 : vector<2x1xf32>
    %374 = vector.broadcast %366 : vector<2x1xf32> to vector<2x32xf32>
    %375 = arith.subf %362, %374 : vector<2x32xf32>
    %cst_107 = arith.constant 9.99999993E-9 : f32
    %376 = vector.broadcast %cst_107 : f32 to vector<2x1xf32>
    %377 = arith.addf %373, %376 : vector<2x1xf32>
    %378 = math.rsqrt %377 : vector<2x1xf32>
    %379 = vector.broadcast %378 : vector<2x1xf32> to vector<2x32xf32>
    %380 = arith.mulf %375, %379 : vector<2x32xf32>
    %381 = arith.addf %21, %380 : vector<2x32xf32>
    %c0_108 = arith.constant 0 : index
    %c5 = arith.constant 5 : index
    %c0_109 = arith.constant 0 : index
    %382 = vector.load %arg5[%c0_108, %c5, %c0_109] : memref<2x8x32xf32, #tpu.memory_space<vmem>>, vector<2x1x32xf32>
    %383 = vector.shape_cast %382 : vector<2x1x32xf32> to vector<2x32xf32>
    %384 = arith.mulf %381, %383 : vector<2x32xf32>
    %cst_110 = arith.constant dense<0.000000e+00> : vector<2xf32>
    %385 = vector.multi_reduction <add>, %384, %cst_110 [1] : vector<2x32xf32> to vector<2xf32>
    %386 = vector.shape_cast %385 : vector<2xf32> to vector<2x1xf32>
    %c0_111 = arith.constant 0 : index
    %c5_112 = arith.constant 5 : index
    %c0_113 = arith.constant 0 : index
    %387 = vector.load %arg6[%c0_111, %c5_112, %c0_113] : memref<2x8x32xf32, #tpu.memory_space<vmem>>, vector<2x1x32xf32>
    %388 = vector.shape_cast %387 : vector<2x1x32xf32> to vector<2x32xf32>
    %389 = arith.mulf %381, %388 : vector<2x32xf32>
    %cst_114 = arith.constant dense<0.000000e+00> : vector<2xf32>
    %390 = vector.multi_reduction <add>, %389, %cst_114 [1] : vector<2x32xf32> to vector<2xf32>
    %391 = vector.shape_cast %390 : vector<2xf32> to vector<2x1xf32>
    %cst_115 = arith.constant dense<0.000000e+00> : vector<2x96xf32>
    %392 = tpu.matmul %362, %29, %cst_115 {dimension_numbers = #tpu.dot_dimension_numbers<[1], [0], [0], [1], [0, 0, 1, 1], [], []>} : vector<2x32xf32>, vector<32x96xf32>, vector<2x96xf32> -> vector<2x96xf32>
    %393 = vector.broadcast %30 : vector<1x96xf32> to vector<2x96xf32>
    %394 = arith.addf %392, %393 : vector<2x96xf32>
    %395 = vector.extract_strided_slice %28 {offsets = [0, 6, 0], sizes = [2, 1, 96], strides = [1, 1, 1]} : vector<2x8x96xf32> to vector<2x1x96xf32>
    %396 = vector.shape_cast %395 : vector<2x1x96xf32> to vector<2x96xf32>
    %397 = vector.extract_strided_slice %396 {offsets = [0, 0], sizes = [2, 32], strides = [1, 1]} : vector<2x96xf32> to vector<2x32xf32>
    %398 = vector.extract_strided_slice %394 {offsets = [0, 0], sizes = [2, 32], strides = [1, 1]} : vector<2x96xf32> to vector<2x32xf32>
    %399 = arith.addf %397, %398 : vector<2x32xf32>
    %400 = arith.negf %399 : vector<2x32xf32>
    %401 = math.exp %400 : vector<2x32xf32>
    %cst_116 = arith.constant 1.000000e+00 : f32
    %402 = vector.broadcast %cst_116 : f32 to vector<2x32xf32>
    %403 = arith.addf %402, %401 : vector<2x32xf32>
    %404 = arith.divf %402, %403 : vector<2x32xf32>
    %405 = vector.extract_strided_slice %396 {offsets = [0, 32], sizes = [2, 32], strides = [1, 1]} : vector<2x96xf32> to vector<2x32xf32>
    %406 = vector.extract_strided_slice %394 {offsets = [0, 32], sizes = [2, 32], strides = [1, 1]} : vector<2x96xf32> to vector<2x32xf32>
    %407 = arith.addf %405, %406 : vector<2x32xf32>
    %408 = arith.negf %407 : vector<2x32xf32>
    %409 = math.exp %408 : vector<2x32xf32>
    %cst_117 = arith.constant 1.000000e+00 : f32
    %410 = vector.broadcast %cst_117 : f32 to vector<2x32xf32>
    %411 = arith.addf %410, %409 : vector<2x32xf32>
    %412 = arith.divf %410, %411 : vector<2x32xf32>
    %413 = vector.extract_strided_slice %396 {offsets = [0, 64], sizes = [2, 32], strides = [1, 1]} : vector<2x96xf32> to vector<2x32xf32>
    %414 = vector.extract_strided_slice %394 {offsets = [0, 64], sizes = [2, 32], strides = [1, 1]} : vector<2x96xf32> to vector<2x32xf32>
    %415 = arith.mulf %404, %414 : vector<2x32xf32>
    %416 = arith.addf %413, %415 : vector<2x32xf32>
    %417 = math.tanh %416 : vector<2x32xf32>
    %cst_118 = arith.constant 1.000000e+00 : f32
    %418 = vector.broadcast %cst_118 : f32 to vector<2x32xf32>
    %419 = arith.subf %418, %412 : vector<2x32xf32>
    %420 = arith.mulf %419, %417 : vector<2x32xf32>
    %421 = arith.mulf %412, %362 : vector<2x32xf32>
    %422 = arith.addf %420, %421 : vector<2x32xf32>
    %cst_119 = arith.constant dense<0.000000e+00> : vector<2xf32>
    %423 = vector.multi_reduction <add>, %422, %cst_119 [1] : vector<2x32xf32> to vector<2xf32>
    %424 = vector.shape_cast %423 : vector<2xf32> to vector<2x1xf32>
    %cst_120 = arith.constant 3.200000e+01 : f32
    %425 = vector.broadcast %cst_120 : f32 to vector<2x1xf32>
    %426 = arith.divf %424, %425 : vector<2x1xf32>
    %427 = vector.broadcast %426 : vector<2x1xf32> to vector<2x32xf32>
    %428 = arith.subf %422, %427 : vector<2x32xf32>
    %429 = arith.mulf %428, %428 : vector<2x32xf32>
    %cst_121 = arith.constant dense<0.000000e+00> : vector<2xf32>
    %430 = vector.multi_reduction <add>, %429, %cst_121 [1] : vector<2x32xf32> to vector<2xf32>
    %431 = vector.shape_cast %430 : vector<2xf32> to vector<2x1xf32>
    %cst_122 = arith.constant 3.200000e+01 : f32
    %432 = vector.broadcast %cst_122 : f32 to vector<2x1xf32>
    %433 = arith.divf %431, %432 : vector<2x1xf32>
    %434 = vector.broadcast %426 : vector<2x1xf32> to vector<2x32xf32>
    %435 = arith.subf %422, %434 : vector<2x32xf32>
    %cst_123 = arith.constant 9.99999993E-9 : f32
    %436 = vector.broadcast %cst_123 : f32 to vector<2x1xf32>
    %437 = arith.addf %433, %436 : vector<2x1xf32>
    %438 = math.rsqrt %437 : vector<2x1xf32>
    %439 = vector.broadcast %438 : vector<2x1xf32> to vector<2x32xf32>
    %440 = arith.mulf %435, %439 : vector<2x32xf32>
    %441 = arith.addf %21, %440 : vector<2x32xf32>
    %c0_124 = arith.constant 0 : index
    %c6 = arith.constant 6 : index
    %c0_125 = arith.constant 0 : index
    %442 = vector.load %arg5[%c0_124, %c6, %c0_125] : memref<2x8x32xf32, #tpu.memory_space<vmem>>, vector<2x1x32xf32>
    %443 = vector.shape_cast %442 : vector<2x1x32xf32> to vector<2x32xf32>
    %444 = arith.mulf %441, %443 : vector<2x32xf32>
    %cst_126 = arith.constant dense<0.000000e+00> : vector<2xf32>
    %445 = vector.multi_reduction <add>, %444, %cst_126 [1] : vector<2x32xf32> to vector<2xf32>
    %446 = vector.shape_cast %445 : vector<2xf32> to vector<2x1xf32>
    %c0_127 = arith.constant 0 : index
    %c6_128 = arith.constant 6 : index
    %c0_129 = arith.constant 0 : index
    %447 = vector.load %arg6[%c0_127, %c6_128, %c0_129] : memref<2x8x32xf32, #tpu.memory_space<vmem>>, vector<2x1x32xf32>
    %448 = vector.shape_cast %447 : vector<2x1x32xf32> to vector<2x32xf32>
    %449 = arith.mulf %441, %448 : vector<2x32xf32>
    %cst_130 = arith.constant dense<0.000000e+00> : vector<2xf32>
    %450 = vector.multi_reduction <add>, %449, %cst_130 [1] : vector<2x32xf32> to vector<2xf32>
    %451 = vector.shape_cast %450 : vector<2xf32> to vector<2x1xf32>
    %cst_131 = arith.constant dense<0.000000e+00> : vector<2x96xf32>
    %452 = tpu.matmul %422, %29, %cst_131 {dimension_numbers = #tpu.dot_dimension_numbers<[1], [0], [0], [1], [0, 0, 1, 1], [], []>} : vector<2x32xf32>, vector<32x96xf32>, vector<2x96xf32> -> vector<2x96xf32>
    %453 = vector.broadcast %30 : vector<1x96xf32> to vector<2x96xf32>
    %454 = arith.addf %452, %453 : vector<2x96xf32>
    %455 = vector.extract_strided_slice %28 {offsets = [0, 7, 0], sizes = [2, 1, 96], strides = [1, 1, 1]} : vector<2x8x96xf32> to vector<2x1x96xf32>
    %456 = vector.shape_cast %455 : vector<2x1x96xf32> to vector<2x96xf32>
    %457 = vector.extract_strided_slice %456 {offsets = [0, 0], sizes = [2, 32], strides = [1, 1]} : vector<2x96xf32> to vector<2x32xf32>
    %458 = vector.extract_strided_slice %454 {offsets = [0, 0], sizes = [2, 32], strides = [1, 1]} : vector<2x96xf32> to vector<2x32xf32>
    %459 = arith.addf %457, %458 : vector<2x32xf32>
    %460 = arith.negf %459 : vector<2x32xf32>
    %461 = math.exp %460 : vector<2x32xf32>
    %cst_132 = arith.constant 1.000000e+00 : f32
    %462 = vector.broadcast %cst_132 : f32 to vector<2x32xf32>
    %463 = arith.addf %462, %461 : vector<2x32xf32>
    %464 = arith.divf %462, %463 : vector<2x32xf32>
    %465 = vector.extract_strided_slice %456 {offsets = [0, 32], sizes = [2, 32], strides = [1, 1]} : vector<2x96xf32> to vector<2x32xf32>
    %466 = vector.extract_strided_slice %454 {offsets = [0, 32], sizes = [2, 32], strides = [1, 1]} : vector<2x96xf32> to vector<2x32xf32>
    %467 = arith.addf %465, %466 : vector<2x32xf32>
    %468 = arith.negf %467 : vector<2x32xf32>
    %469 = math.exp %468 : vector<2x32xf32>
    %cst_133 = arith.constant 1.000000e+00 : f32
    %470 = vector.broadcast %cst_133 : f32 to vector<2x32xf32>
    %471 = arith.addf %470, %469 : vector<2x32xf32>
    %472 = arith.divf %470, %471 : vector<2x32xf32>
    %473 = vector.extract_strided_slice %456 {offsets = [0, 64], sizes = [2, 32], strides = [1, 1]} : vector<2x96xf32> to vector<2x32xf32>
    %474 = vector.extract_strided_slice %454 {offsets = [0, 64], sizes = [2, 32], strides = [1, 1]} : vector<2x96xf32> to vector<2x32xf32>
    %475 = arith.mulf %464, %474 : vector<2x32xf32>
    %476 = arith.addf %473, %475 : vector<2x32xf32>
    %477 = math.tanh %476 : vector<2x32xf32>
    %cst_134 = arith.constant 1.000000e+00 : f32
    %478 = vector.broadcast %cst_134 : f32 to vector<2x32xf32>
    %479 = arith.subf %478, %472 : vector<2x32xf32>
    %480 = arith.mulf %479, %477 : vector<2x32xf32>
    %481 = arith.mulf %472, %422 : vector<2x32xf32>
    %482 = arith.addf %480, %481 : vector<2x32xf32>
    %cst_135 = arith.constant dense<0.000000e+00> : vector<2xf32>
    %483 = vector.multi_reduction <add>, %482, %cst_135 [1] : vector<2x32xf32> to vector<2xf32>
    %484 = vector.shape_cast %483 : vector<2xf32> to vector<2x1xf32>
    %cst_136 = arith.constant 3.200000e+01 : f32
    %485 = vector.broadcast %cst_136 : f32 to vector<2x1xf32>
    %486 = arith.divf %484, %485 : vector<2x1xf32>
    %487 = vector.broadcast %486 : vector<2x1xf32> to vector<2x32xf32>
    %488 = arith.subf %482, %487 : vector<2x32xf32>
    %489 = arith.mulf %488, %488 : vector<2x32xf32>
    %cst_137 = arith.constant dense<0.000000e+00> : vector<2xf32>
    %490 = vector.multi_reduction <add>, %489, %cst_137 [1] : vector<2x32xf32> to vector<2xf32>
    %491 = vector.shape_cast %490 : vector<2xf32> to vector<2x1xf32>
    %cst_138 = arith.constant 3.200000e+01 : f32
    %492 = vector.broadcast %cst_138 : f32 to vector<2x1xf32>
    %493 = arith.divf %491, %492 : vector<2x1xf32>
    %494 = vector.broadcast %486 : vector<2x1xf32> to vector<2x32xf32>
    %495 = arith.subf %482, %494 : vector<2x32xf32>
    %cst_139 = arith.constant 9.99999993E-9 : f32
    %496 = vector.broadcast %cst_139 : f32 to vector<2x1xf32>
    %497 = arith.addf %493, %496 : vector<2x1xf32>
    %498 = math.rsqrt %497 : vector<2x1xf32>
    %499 = vector.broadcast %498 : vector<2x1xf32> to vector<2x32xf32>
    %500 = arith.mulf %495, %499 : vector<2x32xf32>
    %501 = arith.addf %21, %500 : vector<2x32xf32>
    %c0_140 = arith.constant 0 : index
    %c7 = arith.constant 7 : index
    %c0_141 = arith.constant 0 : index
    %502 = vector.load %arg5[%c0_140, %c7, %c0_141] : memref<2x8x32xf32, #tpu.memory_space<vmem>>, vector<2x1x32xf32>
    %503 = vector.shape_cast %502 : vector<2x1x32xf32> to vector<2x32xf32>
    %504 = arith.mulf %501, %503 : vector<2x32xf32>
    %cst_142 = arith.constant dense<0.000000e+00> : vector<2xf32>
    %505 = vector.multi_reduction <add>, %504, %cst_142 [1] : vector<2x32xf32> to vector<2xf32>
    %506 = vector.shape_cast %505 : vector<2xf32> to vector<2x1xf32>
    %c0_143 = arith.constant 0 : index
    %c7_144 = arith.constant 7 : index
    %c0_145 = arith.constant 0 : index
    %507 = vector.load %arg6[%c0_143, %c7_144, %c0_145] : memref<2x8x32xf32, #tpu.memory_space<vmem>>, vector<2x1x32xf32>
    %508 = vector.shape_cast %507 : vector<2x1x32xf32> to vector<2x32xf32>
    %509 = arith.mulf %501, %508 : vector<2x32xf32>
    %cst_146 = arith.constant dense<0.000000e+00> : vector<2xf32>
    %510 = vector.multi_reduction <add>, %509, %cst_146 [1] : vector<2x32xf32> to vector<2xf32>
    %511 = vector.shape_cast %510 : vector<2xf32> to vector<2x1xf32>
    %512 = tpu.concatenate %86, %146, %206, %266, %326, %386, %446, %506, %91, %151, %211, %271, %331, %391, %451, %511 in 1 : vector<2x1xf32>, vector<2x1xf32>, vector<2x1xf32>, vector<2x1xf32>, vector<2x1xf32>, vector<2x1xf32>, vector<2x1xf32>, vector<2x1xf32>, vector<2x1xf32>, vector<2x1xf32>, vector<2x1xf32>, vector<2x1xf32>, vector<2x1xf32>, vector<2x1xf32>, vector<2x1xf32>, vector<2x1xf32> -> vector<2x16xf32>
    %c0_147 = arith.constant 0 : index
    %c0_148 = arith.constant 0 : index
    %513 = vector.load %arg7[%c0_147, %c0_148] : memref<2x16xf32, #tpu.memory_space<vmem>>, vector<2x16xf32>
    tpu.vector_store %arg7[%c0_147, %c0_148], %512 {strides = array<i32>} : memref<2x16xf32, #tpu.memory_space<vmem>>, vector<2x16xf32>,
    %c0_149 = arith.constant 0 : index
    %c0_150 = arith.constant 0 : index
    %514 = vector.load %arg8[%c0_149, %c0_150] : memref<2x32xf32, #tpu.memory_space<vmem>>, vector<2x32xf32>
    tpu.vector_store %arg8[%c0_149, %c0_150], %482 {strides = array<i32>} : memref<2x32xf32, #tpu.memory_space<vmem>>, vector<2x32xf32>,
    return
  }
}

</mosaic_0001>

<bundles_post_ra>
// kernel: htp_forward.2
= control target key start
LH: loop header
LB: loop body
LE: loop exit
PB: predicated region body
PF: predicated region fallthrough
CT: control target
= control target key end

     0   :  { %11 = vsyncpa [#allocation3], 0  ;;  %s1368_s0 = inlined_call_operand.vmem [shape: f32[2,24,24], index: 0, kind: input, shape index: {}]   ;;  %s1369_s1 = inlined_call_operand.vmem [shape: f32[2,24,32], index: 1, kind: input, shape index: {}]   ;;  %s1370_s2 = inlined_call_operand.vmem [shape: f32[2,2,32,32], index: 2, kind: input, shape index: {}]   ;;  %s1371_s3 = inlined_call_operand.vmem [shape: f32[2,2,1,32], index: 3, kind: input, shape index: {}]   ;;  %s1372_s4 = inlined_call_operand.hbm [shape: f32[2,2,32,32], index: 4, kind: input, shape index: {}]   ;;  %s1373_s5 = inlined_call_operand.vmem [shape: f32[2,2,1,32], index: 5, kind: input, shape index: {}]   ;;  %s1374_s6 = inlined_call_operand.vmem [shape: f32[2,24,32], index: 6, kind: output, shape index: {}]  }
   0x1   :  { %13 = vsyncpa [#allocation3 + $0x1], 0  ;;  %s1110_s21 = smov 0   ;;  %s1112_s22 = smov 0  }
   0x2   :  { %s1114_s23 = smov 0   ;;  %s1116_s24 = smov 0  }
   0x3 LB: > { %s1129_s25 = sadd.s32 4294967295, %s1071_s24   ;;  %s1132_s26 = sadd.s32 1, %s1071_s24   ;;  %s1071_s24 = sphi %s1116_s24, %s1381_s24   ;;  %s1067_s23 = sphi %s1114_s23, %s1380_s23   ;;  %s1063_s22 = sphi %s1112_s22, %s1379_s22   ;;  %s1059_s21 = sphi %s1110_s21, %s1378_s21  }
   0x4   : > { %s127_s27 = ssub.s32 %s1071_s24, %s1132_s26  ;;  %s130_s28 = sadd.s32 1, %s1067_s23 }
   0x5   : > { %p128_p0 = scmp.eq.s32.totalorder %s127_s27, 0  ;;  %p137_p1 = scmp.ne.s32.totalorder %s1067_s23, %s1063_s22 }
   0x6   : > { %p138_p2 = scmp.eq.s32.totalorder %s1071_s24, 0  ;;  %p143_p3 = scmp.ne.s32.totalorder %s1063_s22, %s1059_s21 }
   0x7   : > { %s1142_s29 = scalar_select %p128_p0, %s1067_s23, %s130_s28  }
   0x8   : > { %p1144_p4 = por %p138_p2, %p137_p1  ;;  %p144_p5 = scmp.eq.s32.totalorder %s1129_s25, 0 }
   0x9   : > { %p956_p6 = scmp.lt.s32.totalorder %s1071_s24, 2  ;;  %s250_s8 = sand.u32 1, %s1067_s23  }
   0xa   : > { %p1150_p7 = por %p144_p5, %p143_p3  ;;  %s899_s9 = sshll.u32 %s250_s8, 6 }
   0xb   : > { %s941_s10 = sshll.u32 %s1071_s24, 6  ;;  %s254_s14 = scalar_lea.vmem [#allocation2], %s899_s9 }
   0xc   : > { %s259_s13 = scalar_lea.hbm %s1372_s4, %s941_s10  ;;  %s262_s15 = sshll.u32 %s254_s14, 4  ;;  %s263_s15 = int_to_ptr.vmem [resolvable:$true] %s262_s15 }
   0xd   : > { %s260_s16 = sshll.u32 %s259_s13, 4  ;;  %p1161_p8 = pnand %p956_p6, %p1144_p4  ;;  %s261_s16 = int_to_ptr.hbm [resolvable:$true] %s260_s16 }
   0xe   : > { %p902_p9 = scmp.ge.s32.totalorder %s1071_s24, 1  ;;  %s251_s18 = scalar_lea.sflag [#allocation3], %s250_s8 }
   0xf   : > { %s1007_s19 = sshra.s32 %s261_s16, 4  ;;  %p1011_p11 = pneg %p1161_p8  ;;  %s1008_s19 = int_to_ptr.hbm [resolvable:$true] %s1007_s19 }
  0x10   : > { %s1009_s20 = scalar_lea.hbm %s1008_s19, 64  ;;  %s1014_s28 = scalar_lea.hbm %s1372_s4, 128 }
  0x11   : > { %p1010_p10 = scmp.ne.s32.totalorder %s1008_s19, %s1009_s20  ;;  %p1015_p0 = scmp.lt.s32.totalorder %s1008_s19, %s1372_s4 }
  0x12   : > { %p1016_p1 = scmp.lt.s32.totalorder %s1014_s28, %s1009_s20 }
  0x13   : > { %p1012_p12 = pnand %p1011_p11, %p1010_p10 }
  0x14   : > { %p1017_p2 = por %p1016_p1, %p1015_p0 }
  0x15   : > { %p1013_p13 = pneg %p1012_p12 }
  0x17   : > { %p1018_p3 = pnand %p1017_p2, %p1013_p13 }
  0x19   : > { %1021 = shalt.err (!%p1018_p3)
}
  0x1a   : > { %s1073_s8 = smov 128   ;;  %s1074_s10 = smov 8  }
  0x1b   : > { %955 = dma.hbm_to_vmem [thread:$0]  (!%p1161_p8), %s261_s16, 1024, %s263_s15, %s251_s18, %s1073_s8, %s1073_s8, %s1074_s10  }
  0x1c   : > { %p277_p4 = scmp.lt.s32.totalorder %s1071_s24, 3 }
  0x1e   : > { %p278_p5 = pnand %p902_p9, %p277_p4 }
  0x1f   : > { %s283_s11 = sand.u32 (!%p278_p5), 1, %s1063_s22  }
  0x20   : > { %281 = sbr.rel (%p278_p5) target bundleno = 773 (0x305), region = 44  ;;  %s903_s12 = sshll.u32 (!%p278_p5), %s283_s11, 6 }
  0x21   : > { %s284_s13 = scalar_lea.sflag (!%p278_p5), [#allocation3], %s283_s11  ;;  %s1180_s14 = scalar_lea.vmem (!%p278_p5), [#allocation2], %s903_s12 }
  0x25   : > { %1054 = dma.done.wait (%p1150_p7), %s284_s13, 1024  }
  0x26   : > { %1056 = vsyncadd (%p1150_p7), %s284_s13, 4294966272  ;;  %p340_p6 = scmp.lt.s32.totalorder %s1129_s25, 1  ;;  %v469_v3 = vld [vmem:[%s1180_s14 + $0x18] sm:$0xff]  ;;  %vm374_vm0 = vcmask 195584   ;;  %v468_v7 = vld [vmem:[%s1180_s14 + $0x10] sm:$0xff]  ;;  %vm418_vm1 = vcmask 261120  }
  0x27   : > { %495 = vmatpush.msra.mxu2 %v469_v3  ;;  %v467_v12 = vld [vmem:[%s1180_s14 + $0x8] sm:$0xff]  ;;  %v466_v13 = vld [vmem:[%s1180_s14] sm:$0xff]  ;;  %v934_v56 = vld [vmem:[%s1180_s14 + $0x38] sm:$0xff] }
  0x28   : > { %s1383_s25 = smov (!%p340_p6, %s1129_s25), 1  ;;  %v933_v58 = vld [vmem:[%s1180_s14 + $0x30] sm:$0xff]  ;;  %v932_v60 = vld [vmem:[%s1180_s14 + $0x28] sm:$0xff]  ;;  %v931_v62 = vld [vmem:[%s1180_s14 + $0x20] sm:$0xff] }
  0x29   : > { %s1191_s24 = smul.u32 24, %s1383_s25  ;;  %s942_s15 = sshll.u32 %s1383_s25, 6  ;;  %496 = vmatpush.msra.mxu2 %v468_v7 }
  0x2a   : > { %s1211_s28 = scalar_lea.vmem %s1370_s2, %s942_s15  ;;  %s908_s30 = sshll.u32 %s1383_s25, 1 }
  0x2b   : > { %s349_s18 = scalar_lea.vmem %s1369_s1, %s1191_s24  ;;  %s344_s20 = scalar_lea.vmem %s1368_s0, %s1191_s24  ;;  %v413_v6 = vld [vmem:[%s1211_s28 + $0x18] sm:$0xff]  ;;  %v412_v8 = vld [vmem:[%s1211_s28 + $0x10] sm:$0xff]  ;;  %v411_v9 = vld [vmem:[%s1211_s28 + $0x8] sm:$0xff]  ;;  %497 = vmatpush.msra.mxu2 %v467_v12 }
  0x2c   : > { %v1198_v0 = vld [vmem:[%s349_s18 + $0x10] sm:$0xff]  ;;  %v1200_v1 = vld [vmem:[%s349_s18 + $0x8] sm:$0xff]  ;;  %v1213_v2 = vld [vmem:[%s349_s18] sm:$0xff]  ;;  %s1240_s10 = scalar_lea.vmem %s1371_s3, %s908_s30  ;;  %s1251_s12 = scalar_lea.vmem %s1373_s5, %s908_s30 }
  0x2d   : > { %397 = vmatpush.msra.mxu0 %v1198_v0  ;;  %943 = vmatpush.msra.mxu1 %v1198_v0  ;;  %v1217_v4 = vld [vmem:[%s344_s20] sm:$0xff]  ;;  %v1220_v5 = vld [vmem:[%s344_s20 + $0x8] sm:$0xff]  ;;  %v1232_v10 = vld [vmem:[%s344_s20 + $0x10] sm:$0xff]  ;;  %s1337_s15 = scalar_lea.vmem %s1374_s6, %s1191_s24 }
  0x2e   : > { %v410_v11 = vld [vmem:[%s1211_s28] sm:$0xff]  ;;  %498 = vmatpush.msra.mxu2 %v466_v13  ;;  %v926_v55 = vld [vmem:[%s1211_s28 + $0x38] sm:$0xff]  ;;  %v925_v57 = vld [vmem:[%s1211_s28 + $0x30] sm:$0xff] }
  0x2f   : > { %398 = vmatpush.msra.mxu0 %v1200_v1  ;;  %944 = vmatpush.msra.mxu1 %v1200_v1  ;;  %v991_v21 = vld [vmem:[%s1240_s10] ss:$0 sm:$0xff]  ;;  %v924_v59 = vld [vmem:[%s1211_s28 + $0x28] sm:$0xff] }
  0x30   : > { %v992_v23 = vld [vmem:[%s1251_s12] ss:$0 sm:$0xff] }
  0x31   : > { %399 = vmatpush.msra.mxu0 %v1213_v2  ;;  %945 = vmatpush.msra.mxu1 %v1213_v2  ;;  %v923_v61 = vld [vmem:[%s1211_s28 + $0x20] sm:$0xff] }
  0x32   : > { %911 = vmatmul.msk.f32.vlgmr.msra.gmra.mxu0 %vm374_vm0, %v1217_v4  ;;  %912 = vmatmul.msk.f32.vlgmr.msra.gmra.mxu1 %vm374_vm0, %v1220_v5 }
  0x33   : > { %440 = vmatpush.msrb.mxu1 %v413_v6  ;;  %629 = vmatpush.msrb.mxu0 %v926_v55 }
  0x35   : > { %441 = vmatpush.msrb.mxu1 %v412_v8  ;;  %630 = vmatpush.msrb.mxu0 %v925_v57 }
  0x37   : > { %442 = vmatpush.msrb.mxu1 %v411_v9  ;;  %631 = vmatpush.msrb.mxu0 %v924_v59  ;;  %v993_v9 = vld [vmem:[%s1240_s10 + $0x1] ss:$0 sm:$0xff] }
  0x39   : > { %443 = vmatpush.msrb.mxu1 %v410_v11  ;;  %632 = vmatpush.msrb.mxu0 %v923_v61  ;;  %v994_v11 = vld [vmem:[%s1251_s12 + $0x1] ss:$0 sm:$0xff] }
  0x3a   : > { %913 = vmatmul.msk.f32.gmra.mxu1 %vm374_vm0, %v1232_v10 }
  0xaf   : > { %v401_v14 = vpop.f32.mrf.mxu0  ;;  %v404_v16 = vpop.f32.mrf.mxu1 }
  0xb0   : > { %v463_v15 = vmul.f32 %v401_v14, %v1213_v2  ;;  %914 = vmatmul.msk.f32.vlgmr.msrb.gmra.mxu1 %vm418_vm1, %v401_v14  ;;  %v464_v17 = vmul.f32 %v404_v16, %v1200_v1 }
  0xb2   : > { %917 = vmatmul.msk.f32.vlgmr.msra.gmra.mxu2 %vm418_vm1, %v463_v15 }
  0xb7   : > { %v407_v18 = vpop.f32.mrf.mxu1 }
  0xb8   : > { %915 = vmatmul.msk.f32.gmra.mxu1 %vm418_vm1, %v404_v16  ;;  %v465_v19 = vmul.f32 %v407_v18, %v1198_v0 }
  0xba   : > { %918 = vmatmul.msk.f32.gmra.mxu2 %vm418_vm1, %v464_v17 }
  0xc0   : > { %916 = vmatmul.msk.f32.gmra.mxu1 %vm418_vm1, %v407_v18 }
  0xc2   : > { %919 = vmatmul.msk.f32.gmra.mxu2 %vm418_vm1, %v465_v19 }
 0x12d   : > { %v445_v20 = vpop.f32.mrf.mxu1 }
 0x12e   : > { %v446_v22 = vadd.f32 %v991_v21, %v445_v20 }
 0x130   : > { %v457_v26 = vmul.f32 0.01, %v446_v22  ;;  %vm454_vm2 = vcmp.ge.f32.partialorder %v446_v22, 0.0 }
 0x132   : > { %v460_v29 = vsel %vm454_vm2, %v446_v22, %v457_v26 }
 0x135   : > { %v448_v24 = vpop.f32.mrf.mxu1  ;;  %v500_v25 = vpop.f32.mrf.mxu2 }
 0x136   : > { %v501_v27 = vadd.f32 %v992_v23, %v500_v25  ;;  %v449_v30 = vadd.f32 %v991_v21, %v448_v24 }
 0x138   : > { %vm509_vm3 = vcmp.ge.f32.partialorder %v501_v27, 0.0  ;;  %v512_v28 = vmul.f32 0.01, %v501_v27  ;;  %v458_v35 = vmul.f32 0.01, %v449_v30  ;;  %vm455_vm4 = vcmp.ge.f32.partialorder %v449_v30, 0.0 }
 0x13a   : > { %v515_v31 = vsel %vm509_vm3, %v501_v27, %v512_v28  ;;  %v461_v40 = vsel %vm455_vm4, %v449_v30, %v458_v35 }
 0x13b   : > { %v1261_v32 = vadd.f32 %v515_v31, %v460_v29 }
 0x13d   : > { %v503_v33 = vpop.f32.mrf.mxu2  ;;  %v521_v34 = vmul.f32 %v1261_v32, %v1261_v32  ;;  %v451_v37 = vpop.f32.mrf.mxu1 }
 0x13e   : > { %v504_v36 = vadd.f32 %v992_v23, %v503_v33  ;;  %v452_v41 = vadd.f32 %v991_v21, %v451_v37 }
 0x13f   : > { %v524_v38 = vsel %vm418_vm1, %v521_v34, 0.0 }
 0x140   : > { %vm510_vm5 = vcmp.ge.f32.partialorder %v504_v36, 0.0  ;;  %v513_v39 = vmul.f32 0.01, %v504_v36  ;;  %525 = vadd.xlane.f32.xlu0 %v524_v38  ;;  %v459_v46 = vmul.f32 0.01, %v452_v41  ;;  %vm456_vm6 = vcmp.ge.f32.partialorder %v452_v41, 0.0 }
 0x142   : > { %v516_v42 = vsel %vm510_vm5, %v504_v36, %v513_v39  ;;  %v462_v50 = vsel %vm456_vm6, %v452_v41, %v459_v46 }
 0x143   : > { %v1266_v43 = vadd.f32 %v516_v42, %v461_v40 }
 0x145   : > { %v506_v44 = vpop.f32.mrf.mxu2  ;;  %v522_v45 = vmul.f32 %v1266_v43, %v1266_v43 }
 0x146   : > { %v507_v47 = vadd.f32 %v992_v23, %v506_v44 }
 0x147   : > { %v527_v48 = vsel %vm418_vm1, %v522_v45, 0.0 }
 0x148   : > { %vm511_vm7 = vcmp.ge.f32.partialorder %v507_v47, 0.0  ;;  %v514_v49 = vmul.f32 0.01, %v507_v47  ;;  %528 = vadd.xlane.f32.xlu0 %v527_v48 }
 0x14a   : > { %v517_v51 = vsel %vm511_vm7, %v507_v47, %v514_v49 }
 0x14b   : > { %v1271_v52 = vadd.f32 %v517_v51, %v462_v50 }
 0x14d   : > { %585 = vmatpush.msrb.mxu2 %v1271_v52  ;;  %946 = vmatpush.msra.mxu3 %v1271_v52  ;;  %v523_v53 = vmul.f32 %v1271_v52, %v1271_v52 }
 0x14f   : > { %586 = vmatpush.msrb.mxu2 %v1266_v43  ;;  %947 = vmatpush.msra.mxu3 %v1266_v43  ;;  %v530_v54 = vsel %vm418_vm1, %v523_v53, 0.0 }
 0x150   : > { %531 = vadd.xlane.f32.xlu1 %v530_v54 }
 0x151   : > { %587 = vmatpush.msrb.mxu2 %v1261_v32  ;;  %948 = vmatpush.msra.mxu3 %v1261_v32 }
 0x152   : > { %920 = vmatmul.msk.f32.vlgmr.msrb.gmra.mxu2 %vm374_vm0, %v1217_v4  ;;  %921 = vmatmul.msk.f32.vlgmr.msra.gmra.mxu3 %vm374_vm0, %v1220_v5 }
 0x153   : > { %686 = vmatpush.msrb.mxu3 %v934_v56 }
 0x155   : > { %687 = vmatpush.msrb.mxu3 %v933_v58 }
 0x157   : > { %688 = vmatpush.msrb.mxu3 %v932_v60 }
 0x159   : > { %689 = vmatpush.msrb.mxu3 %v931_v62 }
 0x15a   : > { %922 = vmatmul.msk.f32.gmra.mxu3 %vm374_vm0, %v1232_v10 }
 0x1b3   : > { %v526_v45 = vpop.xlane.xlu0 %525 }
 0x1b4   : > { %v533_v46 = vmax.f32 %v526_v45, 1e-24 }
 0x1b6   : > { %995 = vrsqrt.f32 %v533_v46  ;;  %vm542_vm15 = vweird.f32 %v533_v46 }
 0x1bb   : > { %v529_v47 = vpop.xlane.xlu0 %528 }
 0x1bc   : > { %v534_v48 = vmax.f32 %v529_v47, 1e-24  ;;  %v996_v49 = vpop.eup %995 }
 0x1bd   : > { %v537_v51 = vmul.f32 %v996_v49, %v533_v46  ;;  %vm543_vm14 = vweird.f32 %v996_v49 }
 0x1be   : > { %997 = vrsqrt.f32 %v534_v48  ;;  %vm544_vm0 = vmor %vm542_vm15, %vm543_vm14  ;;  %vm552_vm6 = vweird.f32 %v534_v48 }
 0x1bf   : > { %v538_v55 = vmul.f32 %v996_v49, %v537_v51 }
 0x1c1   : > { %v539_v59 = vmul.f32 0.5, %v538_v55 }
 0x1c3   : > { %v532_v50 = vpop.xlane.xlu1 %531  ;;  %v540_v61 = vsub.f32 1.5, %v539_v59 }
 0x1c4   : > { %v1322_v53 = vmax.f32 %v532_v50, 1e-24  ;;  %v998_v54 = vpop.eup %997 }
 0x1c5   : > { %v547_v57 = vmul.f32 %v998_v54, %v534_v48  ;;  %vm553_vm3 = vweird.f32 %v998_v54 }
 0x1c6   : > { %999 = vrsqrt.f32 %v1322_v53  ;;  %vm554_vm7 = vmor %vm552_vm6, %vm553_vm3 }
 0x1c7   : > { %v548_v60 = vmul.f32 %v998_v54, %v547_v57 }
 0x1cc   : > { %v1325_v62 = vpop.eup %999 }
 0x1d5   : > { %v589_v63 = vpop.f32.mrf.mxu2  ;;  %v592_v4 = vpop.f32.mrf.mxu3 }
 0x1d6   : > { %v652_v3 = vmul.f32 %v589_v63, %v1261_v32  ;;  %928 = vmatmul.msk.f32.vlgmr.msrb.gmra.mxu0 %vm418_vm1, %v589_v63  ;;  %v653_v5 = vmul.f32 %v592_v4, %v1266_v43 }
 0x1d8   : > { %936 = vmatmul.msk.f32.vlgmr.msrb.gmra.mxu3 %vm418_vm1, %v652_v3 }
 0x1dd   : > { %v595_v6 = vpop.f32.mrf.mxu3 }
 0x1de   : > { %929 = vmatmul.msk.f32.gmra.mxu0 %vm418_vm1, %v592_v4  ;;  %v654_v7 = vmul.f32 %v595_v6, %v1271_v52  ;;  %v549_v4 = vmul.f32 0.5, %v548_v60 }
 0x1e0   : > { %937 = vmatmul.msk.f32.gmra.mxu3 %vm418_vm1, %v653_v5 }
 0x1e6   : > { %930 = vmatmul.msk.f32.gmra.mxu0 %vm418_vm1, %v595_v6  ;;  %v541_v6 = vmul.f32 %v996_v49, %v540_v61 }
 0x1e8   : > { %938 = vmatmul.msk.f32.gmra.mxu3 %vm418_vm1, %v654_v7  ;;  %v557_v7 = vmul.f32 %v1325_v62, %v1322_v53 }
 0x253   : > { %v634_v8 = vpop.f32.mrf.mxu0 }
 0x254   : > { %v635_v10 = vadd.f32 %v993_v9, %v634_v8 }
 0x256   : > { %v646_v14 = vmul.f32 0.01, %v635_v10  ;;  %vm643_vm8 = vcmp.ge.f32.partialorder %v635_v10, 0.0 }
 0x258   : > { %v649_v17 = vsel %vm643_vm8, %v635_v10, %v646_v14  ;;  %v550_v10 = vsub.f32 1.5, %v549_v4 }
 0x25b   : > { %v691_v12 = vpop.f32.mrf.mxu3  ;;  %v637_v13 = vpop.f32.mrf.mxu0 }
 0x25c   : > { %v692_v15 = vadd.f32 %v994_v11, %v691_v12  ;;  %v638_v19 = vadd.f32 %v993_v9, %v637_v13  ;;  %v558_v12 = vmul.f32 %v1325_v62, %v557_v7 }
 0x25e   : > { %vm700_vm9 = vcmp.ge.f32.partialorder %v692_v15, 0.0  ;;  %v703_v16 = vmul.f32 0.01, %v692_v15  ;;  %v647_v23 = vmul.f32 0.01, %v638_v19  ;;  %vm644_vm10 = vcmp.ge.f32.partialorder %v638_v19, 0.0 }
 0x260   : > { %v706_v18 = vsel %vm700_vm9, %v692_v15, %v703_v16  ;;  %v650_v29 = vsel %vm644_vm10, %v638_v19, %v647_v23  ;;  %vm563_vm9 = vweird.f32 %v1325_v62 }
 0x261   : > { %v1307_v20 = vadd.f32 %v706_v18, %v649_v17  ;;  %v551_v18 = vmul.f32 %v998_v54, %v550_v10 }
 0x263   : > { %v694_v21 = vpop.f32.mrf.mxu3  ;;  %v712_v22 = vmul.f32 %v1307_v20, %v1307_v20  ;;  %v640_v26 = vpop.f32.mrf.mxu0 }
 0x264   : > { %v695_v24 = vadd.f32 %v994_v11, %v694_v21  ;;  %v641_v28 = vadd.f32 %v993_v9, %v640_v26  ;;  %v559_v21 = vmul.f32 0.5, %v558_v12 }
 0x265   : > { %v715_v25 = vsel %vm418_vm1, %v712_v22, 0.0 }
 0x266   : > { %vm701_vm11 = vcmp.ge.f32.partialorder %v695_v24, 0.0  ;;  %v704_v27 = vmul.f32 0.01, %v695_v24  ;;  %716 = vadd.xlane.f32.xlu1 %v715_v25  ;;  %v648_v35 = vmul.f32 0.01, %v641_v28  ;;  %vm645_vm12 = vcmp.ge.f32.partialorder %v641_v28, 0.0 }
 0x268   : > { %v707_v30 = vsel %vm701_vm11, %v695_v24, %v704_v27  ;;  %v651_v39 = vsel %vm645_vm12, %v641_v28, %v648_v35  ;;  %v555_v28 = vsel %vm554_vm7, %v998_v54, %v551_v18  ;;  %vm562_vm12 = vweird.f32 %v1322_v53 }
 0x269   : > { %v1312_v31 = vadd.f32 %v707_v30, %v650_v29  ;;  %v567_v35 = vmul.f32 %v555_v28, %v1266_v43 }
 0x26b   : > { %v697_v33 = vpop.f32.mrf.mxu3  ;;  %v713_v34 = vmul.f32 %v1312_v31, %v1312_v31 }
 0x26c   : > { %v698_v36 = vadd.f32 %v994_v11, %v697_v33  ;;  %v545_v11 = vsel %vm544_vm0, %v996_v49, %v541_v6 }
 0x26d   : > { %v718_v37 = vsel %vm418_vm1, %v713_v34, 0.0  ;;  %v566_v17 = vmul.f32 %v545_v11, %v1261_v32  ;;  %v560_v32 = vsub.f32 1.5, %v559_v21 }
 0x26e   : > { %vm702_vm13 = vcmp.ge.f32.partialorder %v698_v36, 0.0  ;;  %v705_v38 = vmul.f32 0.01, %v698_v36  ;;  %719 = vadd.xlane.f32.xlu2 %v718_v37 }
 0x26f   : > { %v569_v26 = vadd.f32 %v566_v17, %v1213_v2 }
 0x270   : > { %v708_v40 = vsel %vm702_vm13, %v698_v36, %v705_v38  ;;  %vm564_vm13 = vmor %vm562_vm12, %vm563_vm9 }
 0x271   : > { %v1317_v41 = vadd.f32 %v708_v40, %v651_v39  ;;  %v570_v40 = vadd.f32 %v567_v35, %v1200_v1 }
 0x273   : > { %v714_v42 = vmul.f32 %v1317_v41, %v1317_v41 }
 0x275   : > { %v721_v44 = vsel %vm418_vm1, %v714_v42, 0.0 }
 0x276   : > { %722 = vadd.xlane.f32.xlu2 %v721_v44 }
 0x2d9   : > { %v717_v56 = vpop.xlane.xlu1 %716 }
 0x2da   : > { %v724_v58 = vmax.f32 %v717_v56, 1e-24 }
 0x2dc   : > { %1001 = vrsqrt.f32 %v724_v58  ;;  %vm733_vm4 = vweird.f32 %v724_v58 }
 0x2e1   : > { %v720_v63 = vpop.xlane.xlu2 %719 }
 0x2e2   : > { %v1002_v3 = vpop.eup %1001  ;;  %v725_v5 = vmax.f32 %v720_v63, 1e-24 }
 0x2e3   : > { %v728_v8 = vmul.f32 %v1002_v3, %v724_v58  ;;  %vm734_vm2 = vweird.f32 %v1002_v3 }
 0x2e4   : > { %1003 = vrsqrt.f32 %v725_v5  ;;  %vm735_vm5 = vmor %vm733_vm4, %vm734_vm2  ;;  %vm743_vm10 = vweird.f32 %v725_v5 }
 0x2e5   : > { %v729_v9 = vmul.f32 %v1002_v3, %v728_v8 }
 0x2e7   : > { %v730_v13 = vmul.f32 0.5, %v729_v9 }
 0x2e9   : > { %v731_v14 = vsub.f32 1.5, %v730_v13  ;;  %v723_v15 = vpop.xlane.xlu2 %722 }
 0x2ea   : > { %v1004_v16 = vpop.eup %1003  ;;  %v726_v19 = vmax.f32 %v723_v15, 1e-24 }
 0x2eb   : > { %v732_v22 = vmul.f32 %v1002_v3, %v731_v14  ;;  %v738_v23 = vmul.f32 %v1004_v16, %v725_v5  ;;  %vm744_vm8 = vweird.f32 %v1004_v16 }
 0x2ec   : > { %1005 = vrsqrt.f32 %v726_v19  ;;  %vm745_vm11 = vmor %vm743_vm10, %vm744_vm8  ;;  %vm753_vm15 = vweird.f32 %v726_v19 }
 0x2ed   : > { %v736_v24 = vsel %vm735_vm5, %v1002_v3, %v732_v22  ;;  %v739_v25 = vmul.f32 %v1004_v16, %v738_v23 }
 0x2ee   : > { %v757_v27 = vmul.f32 %v736_v24, %v1307_v20  ;;  %v561_v20 = vmul.f32 %v1325_v62, %v560_v32 }
 0x2ef   : > { %v740_v29 = vmul.f32 0.5, %v739_v25 }
 0x2f0   : > { %v760_v30 = vadd.f32 %v757_v27, %v569_v26  ;;  %v565_v42 = vsel %vm564_vm13, %v1325_v62, %v561_v20 }
 0x2f1   : > { %v741_v33 = vsub.f32 1.5, %v740_v29  ;;  %v568_v47 = vmul.f32 %v565_v42, %v1271_v52 }
 0x2f2   : > { %v1006_v34 = vpop.eup %1005  ;;  %v763_v2 = vmul.f32 0.33333334, %v760_v30 }
 0x2f3   : > { %v742_v36 = vmul.f32 %v1004_v16, %v741_v33  ;;  %v748_v37 = vmul.f32 %v1006_v34, %v726_v19  ;;  %vm754_vm14 = vweird.f32 %v1006_v34  ;;  %v571_v1 = vadd.f32 %v568_v47, %v1198_v0 }
 0x2f4   : > { %766 = vst.msk [vmem:[%s1337_s15] sm:$0xff] %vm418_vm1, %v763_v2  ;;  %vm755_vm0 = vmor %vm753_vm15, %vm754_vm14 }
 0x2f5   : > { %v746_v38 = vsel %vm745_vm11, %v1004_v16, %v742_v36  ;;  %v749_v39 = vmul.f32 %v1006_v34, %v748_v37 }
 0x2f6   : > { %v758_v43 = vmul.f32 %v746_v38, %v1312_v31 }
 0x2f7   : > { %v750_v44 = vmul.f32 0.5, %v749_v39 }
 0x2f8   : > { %v761_v45 = vadd.f32 %v758_v43, %v570_v40 }
 0x2f9   : > { %v751_v46 = vsub.f32 1.5, %v750_v44 }
 0x2fa   : > { %v764_v48 = vmul.f32 0.33333334, %v761_v45 }
 0x2fb   : > { %v752_v49 = vmul.f32 %v1006_v34, %v751_v46 }
 0x2fc   : > { %767 = vst.msk [vmem:[%s1337_s15 + $0x8] sm:$0xff] %vm418_vm1, %v764_v48 }
 0x2fd   : > { %v756_v50 = vsel %vm755_vm0, %v1006_v34, %v752_v49 }
 0x2fe   : > { %v759_v31 = vmul.f32 %v756_v50, %v1317_v41 }
 0x300   : > { %v762_v51 = vadd.f32 %v759_v31, %v571_v1 }
 0x302   : > { %v765_v53 = vmul.f32 0.33333334, %v762_v51 }
 0x304   : > { %768 = vst.msk [vmem:[%s1337_s15 + $0x10] sm:$0xff] %vm418_vm1, %v765_v53 }
 0x305 PF: > { %p16_p7 = scmp.ge.s32.totalorder %s1132_s26, 4   ;;  %s1378_s21 = smov %s1063_s22 }
 0x306   : > { %s1379_s22 = smov %s1067_s23  ;;  %s1380_s23 = smov %s1142_s29 }
 0x307   : > { %s1381_s24 = smov %s1132_s26  ;;  %18 = sbr.rel (!%p16_p7) target bundleno = 3 (0x3), region = 103 }
 0x30c   :  { %790 = vsyncpa [#allocation3], 1 }
 0x30d   :  { %792 = vsyncpa [#allocation3 + $0x1], 1 }

// kernel: htp_forward.3
= control target key start
LH: loop header
LB: loop body
LE: loop exit
PB: predicated region body
PF: predicated region fallthrough
CT: control target
= control target key end

     0   :  { %vm30_vm0 = vcmask 261120   ;;  %v1921_v9 = vmov 0.0   ;;  %s1922_s25 = smov 64   ;;  %vm56_vm9 = vcmask 1041409   ;;  %s2568_s1 = inlined_call_operand.vmem [shape: f32[32,96], index: 1, kind: input, shape index: {}]   ;;  %s2569_s3 = inlined_call_operand.vmem [shape: f32[32,96], index: 3, kind: input, shape index: {}]   ;;  %s2570_s0 = inlined_call_operand.vmem [shape: f32[2,8,32], index: 0, kind: input, shape index: {}]   ;;  %s2571_s2 = inlined_call_operand.vmem [shape: f32[1,96], index: 2, kind: input, shape index: {}]   ;;  %s2572_s4 = inlined_call_operand.vmem [shape: f32[1,96], index: 4, kind: input, shape index: {}]   ;;  %s2573_s5 = inlined_call_operand.vmem [shape: f32[2,8,32], index: 5, kind: input, shape index: {}]   ;;  %s2574_s6 = inlined_call_operand.vmem [shape: f32[2,8,32], index: 6, kind: input, shape index: {}]   ;;  %s2575_s8 = inlined_call_operand.vmem [shape: f32[2,32], index: 8, kind: output, shape index: {1}]   ;;  %s2576_s7 = inlined_call_operand.vmem [shape: f32[2,16], index: 7, kind: output, shape index: {0}]  }
   0x1   :  { %v108_v0 = vld [vmem:[%s2568_s1 + $0x18] sm:$0xff]  ;;  %v107_v2 = vld [vmem:[%s2568_s1 + $0x10] sm:$0xff]  ;;  %v106_v4 = vld [vmem:[%s2568_s1 + $0x8] sm:$0xff] }
   0x2   :  { %v145_v1 = vld [vmem:[%s2569_s3 + $0x18] sm:$0xff]  ;;  %131 = vmatpush.msra.mxu0 %v108_v0  ;;  %v144_v3 = vld [vmem:[%s2569_s3 + $0x10] sm:$0xff]  ;;  %v143_v5 = vld [vmem:[%s2569_s3 + $0x8] sm:$0xff] }
   0x3   :  { %165 = vmatpush.msra.mxu1 %v145_v1  ;;  %348 = vmatpush.msra.mxu2 %v145_v1  ;;  %v105_v6 = vld [vmem:[%s2568_s1] sm:$0xff]  ;;  %v29_v10 = vld [vmem:[%s2570_s0 + $0x8] sm:$0xff] }
   0x4   :  { %542 = vmatpush.msra.mxu3 %v145_v1  ;;  %132 = vmatpush.msra.mxu0 %v107_v2  ;;  %v142_v7 = vld [vmem:[%s2569_s3] sm:$0xff] }
   0x5   :  { %166 = vmatpush.msra.mxu1 %v144_v3  ;;  %349 = vmatpush.msra.mxu2 %v144_v3  ;;  %v28_v8 = vld [vmem:[%s2570_s0] sm:$0xff] }
   0x6   :  { %543 = vmatpush.msra.mxu3 %v144_v3  ;;  %133 = vmatpush.msra.mxu0 %v106_v4  ;;  %v2006_v11 = vld [vmem:[%s2572_s4] ss:$0 sm:$0xff] }
   0x7   :  { %167 = vmatpush.msra.mxu1 %v143_v5  ;;  %350 = vmatpush.msra.mxu2 %v143_v5  ;;  %v1796_v17 = vld [vmem:[%s2571_s2] ss:$0 sm:$0xff]  ;;  %s1923_s2 = smov 96  }
   0x8   :  { %544 = vmatpush.msra.mxu3 %v143_v5  ;;  %134 = vmatpush.msra.mxu0 %v105_v6 }
   0x9   :  { %168 = vmatpush.msra.mxu1 %v142_v7  ;;  %1766 = vmatmul.msk.f32.vlgmr.msra.gmra.mxu0 %vm30_vm0, %v28_v8 }
   0xa   :  { %169 = vmatmul.f32.vlgmr.msra.gmra.mxu1 %v1921_v9  ;;  %351 = vmatpush.msra.mxu2 %v142_v7 }
   0xb   :  { %545 = vmatpush.msra.mxu3 %v142_v7  ;;  %738 = vmatpush.msrb.mxu1 %v145_v1 }
   0xc   :  { %934 = vmatpush.msrb.mxu2 %v145_v1  ;;  %1326 = vmatpush.msrb.mxu0 %v145_v1 }
   0xd   :  { %1130 = vmatpush.msrb.mxu3 %v145_v1  ;;  %739 = vmatpush.msrb.mxu1 %v144_v3 }
   0xe   :  { %935 = vmatpush.msrb.mxu2 %v144_v3  ;;  %1327 = vmatpush.msrb.mxu0 %v144_v3 }
   0xf   :  { %1131 = vmatpush.msrb.mxu3 %v144_v3  ;;  %740 = vmatpush.msrb.mxu1 %v143_v5 }
  0x10   :  { %936 = vmatpush.msrb.mxu2 %v143_v5  ;;  %1328 = vmatpush.msrb.mxu0 %v143_v5 }
  0x11   :  { %1132 = vmatpush.msrb.mxu3 %v143_v5  ;;  %1767 = vmatmul.msk.f32.gmra.mxu0 %vm30_vm0, %v29_v10 }
  0x12   :  { %741 = vmatpush.msrb.mxu1 %v142_v7  ;;  %937 = vmatpush.msrb.mxu2 %v142_v7 }
  0x13   :  { %1133 = vmatpush.msrb.mxu3 %v142_v7  ;;  %1329 = vmatpush.msrb.mxu0 %v142_v7 }
  0x14   :  { %1522 = vmatpush.msra.mxu1 %v145_v1 }
  0x16   :  { %1523 = vmatpush.msra.mxu1 %v144_v3 }
  0x18   :  { %1524 = vmatpush.msra.mxu1 %v143_v5 }
  0x1a   :  { %1525 = vmatpush.msra.mxu1 %v142_v7 }
  0x86   :  { %v136_v15 = vpop.f32.mrf.mxu0 }
  0x87   :  { %v170_v12 = vpop.f32.mrf.mxu1  ;;  %v2017_v20 = vadd.f32 %v1796_v17, %v136_v15 }
  0x88   :  { %v171_v13 = vadd.f32 %v2006_v11, %v170_v12 }
  0x8a   :  { %v174_v14 = vrot.slane %v171_v13, 1  ;;  %v177_v22 = vadd.f32 %v171_v13, %v2017_v20 }
  0x8c   :  { %219 = vrot.lane.b32.xlu0 %v174_v14, %s1922_s25  ;;  %v1768_v23 = vmul.f32 -1.442695, %v177_v22 }
  0x8e   :  { %v139_v16 = vpop.f32.mrf.mxu0 }
  0x8f   :  { %v2014_v18 = vadd.f32 %v1796_v17, %v139_v16 }
  0x91   :  { %v178_v19 = vadd.f32 %v174_v14, %v2014_v18 }
  0x93   :  { %v1769_v21 = vmul.f32 -1.442695, %v178_v19 }
  0x94   :  { %217 = vrot.lane.b32.xlu0 %v171_v13, %s1922_s25 }
  0x95   :  { %1798 = vpow2.f32 %v1769_v21 }
  0x96   :  { %1800 = vpow2.f32 %v1768_v23 }
  0x9b   :  { %v1799_v24 = vpop.eup %1798 }
  0x9c   :  { %v186_v25 = vadd.f32 1.0, %v1799_v24  ;;  %v1801_v26 = vpop.eup %1800 }
  0x9d   :  { %v185_v27 = vadd.f32 1.0, %v1801_v26 }
  0x9e   :  { %1802 = vrcp.f32 %v186_v25  ;;  %v213_v36 = vand.u32 2147483648, %v186_v25  ;;  %vm207_vm2 = vweird.f32 %v186_v25  ;;  %v211_v37 = vand.u32 2147483647, %v186_v25 }
  0x9f   :  { %1804 = vrcp.f32 %v185_v27  ;;  %v198_v45 = vand.u32 2147483648, %v185_v27  ;;  %vm192_vm6 = vweird.f32 %v185_v27  ;;  %v196_v46 = vand.u32 2147483647, %v185_v27 }
  0xa0   :  { %v214_v40 = vor.u32 1.1754944e-38, %v213_v36  ;;  %vm212_vm4 = vcmp.eq.f32.partialorder %v211_v37, 8.507059e+37 }
  0xa1   :  { %v199_v48 = vor.u32 1.1754944e-38, %v198_v45  ;;  %vm197_vm8 = vcmp.eq.f32.partialorder %v196_v46, 8.507059e+37 }
  0xa4   :  { %v1803_v28 = vpop.eup %1802 }
  0xa5   :  { %v203_v29 = vmul.f32 %v1803_v28, %v186_v25  ;;  %v1805_v31 = vpop.eup %1804  ;;  %vm208_vm1 = vweird.f32 %v1803_v28 }
  0xa6   :  { %v188_v33 = vmul.f32 %v1805_v31, %v185_v27  ;;  %vm209_vm3 = vmor %vm207_vm2, %vm208_vm1  ;;  %vm193_vm5 = vweird.f32 %v1805_v31 }
  0xa7   :  { %v204_v30 = vsub.f32 1.0, %v203_v29  ;;  %vm194_vm7 = vmor %vm192_vm6, %vm193_vm5 }
  0xa8   :  { %v189_v35 = vsub.f32 1.0, %v188_v33 }
  0xa9   :  { %v205_v32 = vmul.f32 %v1803_v28, %v204_v30 }
  0xaa   :  { %v190_v39 = vmul.f32 %v1805_v31, %v189_v35 }
  0xab   :  { %v206_v34 = vadd.f32 %v1803_v28, %v205_v32 }
  0xac   :  { %v191_v44 = vadd.f32 %v1805_v31, %v190_v39 }
  0xad   :  { %v210_v38 = vsel %vm209_vm3, %v1803_v28, %v206_v34 }
  0xae   :  { %v215_v42 = vsel %vm212_vm4, %v214_v40, %v210_v38  ;;  %v195_v47 = vsel %vm194_vm7, %v1805_v31, %v191_v44 }
  0xaf   :  { %v200_v50 = vsel %vm197_vm8, %v199_v48, %v195_v47  ;;  %v238_v59 = vsub.f32 1.0, %v215_v42  ;;  %v250_v61 = vmul.f32 0.0, %v215_v42 }
  0xb0   :  { %v237_v63 = vsub.f32 1.0, %v200_v50  ;;  %v249_v1 = vmul.f32 0.0, %v200_v50 }
  0xfe   :  { %v220_v41 = vpop.permute.xlu0 %219 }
  0xff   :  { %v224_v43 = vmul.f32 %v220_v41, %v215_v42 }
 0x101   :  { %229 = vrot.lane.b32.xlu1 %v224_v43, %s1922_s25 }
 0x106   :  { %v218_v49 = vpop.permute.xlu0 %217 }
 0x107   :  { %v223_v51 = vmul.f32 %v218_v49, %v200_v50 }
 0x109   :  { %227 = vrot.lane.b32.xlu1 %v223_v51, %s1922_s25 }
 0x173   :  { %v230_v52 = vpop.permute.xlu1 %229 }
 0x174   :  { %v234_v53 = vadd.f32 %v230_v52, %v2014_v18 }
 0x176   :  { %1806 = vtanh.f32 %v234_v53 }
 0x17b   :  { %v228_v54 = vpop.permute.xlu1 %227 }
 0x17c   :  { %v1807_v55 = vpop.eup %1806  ;;  %v233_v56 = vadd.f32 %v228_v54, %v2017_v20 }
 0x17d   :  { %243 = vrot.lane.b32.xlu2 %v1807_v55, %s1923_s2 }
 0x17e   :  { %1808 = vtanh.f32 %v233_v56 }
 0x184   :  { %v1809_v57 = vpop.eup %1808 }
 0x185   :  { %241 = vrot.lane.b32.xlu2 %v1809_v57, %s1923_s2 }
 0x1d7   :  { %v244_v58 = vpop.permute.xlu2 %243 }
 0x1d8   :  { %v248_v60 = vmul.f32 %v244_v58, %v238_v59 }
 0x1da   :  { %v2026_v62 = vadd.f32 %v250_v61, %v248_v60 }
 0x1dc   :  { %v255_v3 = vrot.slane %v2026_v62, 7 }
 0x1df   :  { %v242_v0 = vpop.permute.xlu2 %241 }
 0x1e0   :  { %v247_v2 = vmul.f32 %v242_v0, %v237_v63 }
 0x1e2   :  { %v2029_v4 = vadd.f32 %v249_v1, %v247_v2 }
 0x1e4   :  { %v256_v5 = vsel %vm56_vm9, %v255_v3, %v2029_v4  ;;  %v432_v54 = vrot.slane %v2029_v4, 7 }
 0x1e5   :  { %257 = vrot.lane.b32.xlu0 %v256_v5, %s1923_s2 }
 0x257   :  { %v2036_v6 = vpop.permute.xlu0 %257 }
 0x258   :  { %1770 = vmatmul.msk.f32.vlgmr.msra.gmra.mxu2 %vm30_vm0, %v2036_v6 }
 0x2db   :  { %v353_v7 = vpop.f32.mrf.mxu2 }
 0x2dc   :  { %v354_v8 = vadd.f32 %v2006_v11, %v353_v7 }
 0x2de   :  { %402 = vrot.lane.b32.xlu2 %v354_v8, %s1922_s25  ;;  %v357_v9 = vrot.slane %v354_v8, 7  ;;  %v361_v10 = vadd.f32 %v354_v8, %v2014_v18 }
 0x2e0   :  { %400 = vrot.lane.b32.xlu1 %v357_v9, %s1922_s25  ;;  %v1772_v12 = vmul.f32 -1.442695, %v361_v10  ;;  %v360_v15 = vadd.f32 %v357_v9, %v2017_v20 }
 0x2e2   :  { %1810 = vpow2.f32 %v1772_v12  ;;  %v1771_v17 = vmul.f32 -1.442695, %v360_v15 }
 0x2e8   :  { %v1811_v13 = vpop.eup %1810 }
 0x2e9   :  { %v369_v14 = vadd.f32 1.0, %v1811_v13 }
 0x2eb   :  { %1812 = vrcp.f32 %v369_v14  ;;  %v396_v26 = vand.u32 2147483648, %v369_v14  ;;  %vm390_vm11 = vweird.f32 %v369_v14  ;;  %v394_v27 = vand.u32 2147483647, %v369_v14 }
 0x2ec   :  { %1814 = vpow2.f32 %v1771_v17 }
 0x2ed   :  { %v397_v29 = vor.u32 1.1754944e-38, %v396_v26  ;;  %vm395_vm13 = vcmp.eq.f32.partialorder %v394_v27, 8.507059e+37 }
 0x2f1   :  { %v1813_v16 = vpop.eup %1812 }
 0x2f2   :  { %v386_v19 = vmul.f32 %v1813_v16, %v369_v14  ;;  %v1815_v23 = vpop.eup %1814  ;;  %vm391_vm10 = vweird.f32 %v1813_v16 }
 0x2f3   :  { %v368_v25 = vadd.f32 1.0, %v1815_v23  ;;  %vm392_vm12 = vmor %vm390_vm11, %vm391_vm10 }
 0x2f4   :  { %v387_v21 = vsub.f32 1.0, %v386_v19 }
 0x2f5   :  { %1816 = vrcp.f32 %v368_v25  ;;  %v381_v38 = vand.u32 2147483648, %v368_v25  ;;  %vm375_vm15 = vweird.f32 %v368_v25  ;;  %v379_v39 = vand.u32 2147483647, %v368_v25 }
 0x2f6   :  { %v388_v22 = vmul.f32 %v1813_v16, %v387_v21 }
 0x2f7   :  { %v382_v41 = vor.u32 1.1754944e-38, %v381_v38  ;;  %vm380_vm2 = vcmp.eq.f32.partialorder %v379_v39, 8.507059e+37 }
 0x2f8   :  { %v389_v24 = vadd.f32 %v1813_v16, %v388_v22 }
 0x2fa   :  { %v393_v28 = vsel %vm392_vm12, %v1813_v16, %v389_v24 }
 0x2fb   :  { %v398_v31 = vsel %vm395_vm13, %v397_v29, %v393_v28  ;;  %v1817_v33 = vpop.eup %1816 }
 0x2fc   :  { %v371_v34 = vmul.f32 %v1817_v33, %v368_v25  ;;  %vm376_vm14 = vweird.f32 %v1817_v33  ;;  %v421_v52 = vsub.f32 1.0, %v398_v31  ;;  %v436_v59 = vmul.f32 %v398_v31, %v255_v3 }
 0x2fd   :  { %vm377_vm1 = vmor %vm375_vm15, %vm376_vm14 }
 0x2fe   :  { %v372_v35 = vsub.f32 1.0, %v371_v34 }
 0x300   :  { %v373_v36 = vmul.f32 %v1817_v33, %v372_v35 }
 0x302   :  { %v374_v37 = vadd.f32 %v1817_v33, %v373_v36 }
 0x304   :  { %v378_v40 = vsel %vm377_vm1, %v1817_v33, %v374_v37 }
 0x305   :  { %v383_v43 = vsel %vm380_vm2, %v382_v41, %v378_v40 }
 0x306   :  { %v420_v53 = vsub.f32 1.0, %v383_v43  ;;  %v435_v57 = vmul.f32 %v432_v54, %v383_v43 }
 0x338   :  { %v403_v30 = vpop.permute.xlu2 %402 }
 0x339   :  { %v407_v32 = vmul.f32 %v403_v30, %v398_v31 }
 0x33b   :  { %412 = vrot.lane.b32.xlu1 %v407_v32, %s1922_s25 }
 0x352   :  { %v401_v42 = vpop.permute.xlu1 %400 }
 0x353   :  { %v406_v44 = vmul.f32 %v401_v42, %v383_v43 }
 0x355   :  { %410 = vrot.lane.b32.xlu0 %v406_v44, %s1922_s25 }
 0x3ad   :  { %v413_v45 = vpop.permute.xlu1 %412 }
 0x3ae   :  { %v417_v46 = vadd.f32 %v413_v45, %v2014_v18 }
 0x3b0   :  { %1818 = vtanh.f32 %v417_v46 }
 0x3b6   :  { %v1819_v47 = vpop.eup %1818 }
 0x3b7   :  { %426 = vrot.lane.b32.xlu0 %v1819_v47, %s1923_s2 }
 0x3c7   :  { %v411_v48 = vpop.permute.xlu0 %410 }
 0x3c8   :  { %v416_v49 = vadd.f32 %v411_v48, %v2017_v20 }
 0x3ca   :  { %1820 = vtanh.f32 %v416_v49 }
 0x3d0   :  { %v1821_v50 = vpop.eup %1820 }
 0x3d1   :  { %424 = vrot.lane.b32.xlu2 %v1821_v50, %s1923_s2 }
 0x429   :  { %v427_v51 = vpop.permute.xlu0 %426 }
 0x42a   :  { %v431_v56 = vmul.f32 %v427_v51, %v421_v52 }
 0x42b   :  { %v425_v55 = vpop.permute.xlu2 %424 }
 0x42c   :  { %v430_v58 = vmul.f32 %v425_v55, %v420_v53  ;;  %v2056_v61 = vadd.f32 %v436_v59, %v431_v56 }
 0x42e   :  { %v2054_v60 = vadd.f32 %v435_v57, %v430_v58  ;;  %v441_v50 = vrot.slane %v2056_v61, 7 }
 0x430   :  { %v524_v63 = vrot.slane %v2054_v60, 1  ;;  %v627_v52 = vrot.slane %v2054_v60, 7 }
 0x432   :  { %v525_v0 = vsel %vm56_vm9, %v2056_v61, %v524_v63 }
 0x433   :  { %526 = vrot.lane.b32.xlu1 %v525_v0, %s1923_s2 }
 0x4a5   :  { %v527_v1 = vpop.permute.xlu1 %526 }
 0x4a6   :  { %1773 = vmatmul.msk.f32.vlgmr.msra.gmra.mxu3 %vm30_vm0, %v527_v1 }
 0x529   :  { %v547_v2 = vpop.f32.mrf.mxu3 }
 0x52a   :  { %v548_v5 = vadd.f32 %v2006_v11, %v547_v2 }
 0x52c   :  { %v551_v7 = vrot.slane %v548_v5, 6  ;;  %v552_v8 = vrot.slane %v548_v5, 7 }
 0x52e   :  { %597 = vrot.lane.b32.xlu0 %v552_v8, %s1922_s25  ;;  %595 = vrot.lane.b32.xlu2 %v551_v7, %s1922_s25  ;;  %v555_v3 = vadd.f32 %v551_v7, %v2017_v20  ;;  %v556_v13 = vadd.f32 %v552_v8, %v2014_v18 }
 0x530   :  { %v1774_v9 = vmul.f32 -1.442695, %v555_v3  ;;  %v1775_v15 = vmul.f32 -1.442695, %v556_v13 }
 0x532   :  { %1822 = vpow2.f32 %v1774_v9 }
 0x538   :  { %v1823_v10 = vpop.eup %1822 }
 0x539   :  { %v563_v12 = vadd.f32 1.0, %v1823_v10 }
 0x53b   :  { %1824 = vrcp.f32 %v563_v12  ;;  %v576_v24 = vand.u32 2147483648, %v563_v12  ;;  %vm570_vm4 = vweird.f32 %v563_v12  ;;  %v574_v25 = vand.u32 2147483647, %v563_v12 }
 0x53c   :  { %1826 = vpow2.f32 %v1775_v15 }
 0x53d   :  { %v577_v27 = vor.u32 1.1754944e-38, %v576_v24  ;;  %vm575_vm6 = vcmp.eq.f32.partialorder %v574_v25, 8.507059e+37 }
 0x541   :  { %v1825_v14 = vpop.eup %1824 }
 0x542   :  { %v566_v16 = vmul.f32 %v1825_v14, %v563_v12  ;;  %v1827_v19 = vpop.eup %1826  ;;  %vm571_vm3 = vweird.f32 %v1825_v14 }
 0x543   :  { %v564_v22 = vadd.f32 1.0, %v1827_v19  ;;  %vm572_vm5 = vmor %vm570_vm4, %vm571_vm3 }
 0x544   :  { %v567_v17 = vsub.f32 1.0, %v566_v16 }
 0x545   :  { %1828 = vrcp.f32 %v564_v22  ;;  %v591_v36 = vand.u32 2147483648, %v564_v22  ;;  %vm585_vm8 = vweird.f32 %v564_v22  ;;  %v589_v37 = vand.u32 2147483647, %v564_v22 }
 0x546   :  { %v568_v21 = vmul.f32 %v1825_v14, %v567_v17 }
 0x547   :  { %v592_v39 = vor.u32 1.1754944e-38, %v591_v36  ;;  %vm590_vm11 = vcmp.eq.f32.partialorder %v589_v37, 8.507059e+37 }
 0x548   :  { %v569_v23 = vadd.f32 %v1825_v14, %v568_v21 }
 0x54a   :  { %v573_v26 = vsel %vm572_vm5, %v1825_v14, %v569_v23 }
 0x54b   :  { %v578_v29 = vsel %vm575_vm6, %v577_v27, %v573_v26  ;;  %v1829_v31 = vpop.eup %1828 }
 0x54c   :  { %v581_v32 = vmul.f32 %v1829_v31, %v564_v22  ;;  %vm586_vm7 = vweird.f32 %v1829_v31  ;;  %v615_v51 = vsub.f32 1.0, %v578_v29  ;;  %v630_v57 = vmul.f32 %v627_v52, %v578_v29 }
 0x54d   :  { %vm587_vm10 = vmor %vm585_vm8, %vm586_vm7 }
 0x54e   :  { %v582_v33 = vsub.f32 1.0, %v581_v32 }
 0x550   :  { %v583_v34 = vmul.f32 %v1829_v31, %v582_v33 }
 0x552   :  { %v584_v35 = vadd.f32 %v1829_v31, %v583_v34 }
 0x554   :  { %v588_v38 = vsel %vm587_vm10, %v1829_v31, %v584_v35 }
 0x555   :  { %v593_v41 = vsel %vm590_vm11, %v592_v39, %v588_v38 }
 0x556   :  { %v616_v49 = vsub.f32 1.0, %v593_v41  ;;  %v631_v56 = vmul.f32 %v593_v41, %v441_v50 }
 0x588   :  { %v596_v28 = vpop.permute.xlu2 %595 }
 0x589   :  { %v601_v30 = vmul.f32 %v596_v28, %v578_v29 }
 0x58b   :  { %605 = vrot.lane.b32.xlu1 %v601_v30, %s1922_s25 }
 0x5a0   :  { %v598_v40 = vpop.permute.xlu0 %597 }
 0x5a1   :  { %v602_v42 = vmul.f32 %v598_v40, %v593_v41 }
 0x5a3   :  { %607 = vrot.lane.b32.xlu2 %v602_v42, %s1922_s25 }
 0x5fd   :  { %v608_v43 = vpop.permute.xlu2 %607  ;;  %v606_v44 = vpop.permute.xlu1 %605 }
 0x5fe   :  { %v612_v45 = vadd.f32 %v608_v43, %v2014_v18  ;;  %v611_v46 = vadd.f32 %v606_v44, %v2017_v20 }
 0x600   :  { %1830 = vtanh.f32 %v612_v45 }
 0x601   :  { %1832 = vtanh.f32 %v611_v46 }
 0x606   :  { %v1831_v47 = vpop.eup %1830 }
 0x607   :  { %v1833_v48 = vpop.eup %1832  ;;  %621 = vrot.lane.b32.xlu1 %v1831_v47, %s1923_s2 }
 0x608   :  { %619 = vrot.lane.b32.xlu0 %v1833_v48, %s1923_s2 }
 0x679   :  { %v622_v53 = vpop.permute.xlu1 %621 }
 0x67a   :  { %v620_v54 = vpop.permute.xlu0 %619  ;;  %v626_v55 = vmul.f32 %v622_v53, %v616_v49 }
 0x67b   :  { %v625_v58 = vmul.f32 %v620_v54, %v615_v51 }
 0x67c   :  { %v2078_v59 = vadd.f32 %v631_v56, %v626_v55 }
 0x67d   :  { %v2080_v63 = vadd.f32 %v630_v57, %v625_v58 }
 0x67e   :  { %v720_v0 = vrot.slane %v2078_v59, 1  ;;  %v636_v55 = vrot.slane %v2078_v59, 7 }
 0x67f   :  { %v719_v1 = vrot.slane %v2080_v63, 2  ;;  %v823_v53 = vrot.slane %v2080_v63, 7 }
 0x681   :  { %v721_v2 = vsel %vm56_vm9, %v720_v0, %v719_v1 }
 0x682   :  { %722 = vrot.lane.b32.xlu2 %v721_v2, %s1923_s2 }
 0x6dc   :  { %v723_v5 = vpop.permute.xlu2 %722 }
 0x6dd   :  { %1776 = vmatmul.msk.f32.vlgmr.msrb.gmra.mxu1 %vm30_vm0, %v723_v5 }
 0x75a   :  { %v743_v7 = vpop.f32.mrf.mxu1 }
 0x75b   :  { %v744_v8 = vadd.f32 %v2006_v11, %v743_v7 }
 0x75d   :  { %v747_v3 = vrot.slane %v744_v8, 5  ;;  %v748_v9 = vrot.slane %v744_v8, 6 }
 0x75f   :  { %793 = vrot.lane.b32.xlu1 %v748_v9, %s1922_s25  ;;  %791 = vrot.lane.b32.xlu0 %v747_v3, %s1922_s25  ;;  %v751_v10 = vadd.f32 %v747_v3, %v2017_v20  ;;  %v752_v12 = vadd.f32 %v748_v9, %v2014_v18 }
 0x761   :  { %v1777_v13 = vmul.f32 -1.442695, %v751_v10  ;;  %v1778_v14 = vmul.f32 -1.442695, %v752_v12 }
 0x763   :  { %1834 = vpow2.f32 %v1777_v13 }
 0x764   :  { %1836 = vpow2.f32 %v1778_v14 }
 0x769   :  { %v1835_v15 = vpop.eup %1834 }
 0x76a   :  { %v1837_v16 = vpop.eup %1836  ;;  %v759_v17 = vadd.f32 1.0, %v1835_v15 }
 0x76b   :  { %v760_v19 = vadd.f32 1.0, %v1837_v16 }
 0x76c   :  { %1838 = vrcp.f32 %v759_v17  ;;  %vm766_vm14 = vweird.f32 %v759_v17  ;;  %v772_v32 = vand.u32 2147483648, %v759_v17  ;;  %v770_v34 = vand.u32 2147483647, %v759_v17 }
 0x76d   :  { %1840 = vrcp.f32 %v760_v19  ;;  %v787_v31 = vand.u32 2147483648, %v760_v19  ;;  %vm781_vm15 = vweird.f32 %v760_v19  ;;  %v785_v33 = vand.u32 2147483647, %v760_v19 }
 0x76e   :  { %v773_v38 = vor.u32 1.1754944e-38, %v772_v32  ;;  %vm771_vm4 = vcmp.eq.f32.partialorder %v770_v34, 8.507059e+37 }
 0x76f   :  { %v788_v37 = vor.u32 1.1754944e-38, %v787_v31  ;;  %vm786_vm3 = vcmp.eq.f32.partialorder %v785_v33, 8.507059e+37 }
 0x772   :  { %v1839_v21 = vpop.eup %1838 }
 0x773   :  { %v1841_v22 = vpop.eup %1840  ;;  %v762_v24 = vmul.f32 %v1839_v21, %v759_v17  ;;  %vm767_vm12 = vweird.f32 %v1839_v21 }
 0x774   :  { %v777_v23 = vmul.f32 %v1841_v22, %v760_v19  ;;  %vm782_vm13 = vweird.f32 %v1841_v22  ;;  %vm768_vm1 = vmor %vm766_vm14, %vm767_vm12 }
 0x775   :  { %v763_v26 = vsub.f32 1.0, %v762_v24  ;;  %vm783_vm2 = vmor %vm781_vm15, %vm782_vm13 }
 0x776   :  { %v778_v25 = vsub.f32 1.0, %v777_v23 }
 0x777   :  { %v764_v28 = vmul.f32 %v1839_v21, %v763_v26 }
 0x778   :  { %v779_v27 = vmul.f32 %v1841_v22, %v778_v25 }
 0x779   :  { %v765_v30 = vadd.f32 %v1839_v21, %v764_v28 }
 0x77a   :  { %v780_v29 = vadd.f32 %v1841_v22, %v779_v27 }
 0x77b   :  { %v769_v36 = vsel %vm768_vm1, %v1839_v21, %v765_v30 }
 0x77c   :  { %v784_v35 = vsel %vm783_vm2, %v1841_v22, %v780_v29  ;;  %v774_v42 = vsel %vm771_vm4, %v773_v38, %v769_v36 }
 0x77d   :  { %v789_v40 = vsel %vm786_vm3, %v788_v37, %v784_v35  ;;  %v811_v52 = vsub.f32 1.0, %v774_v42  ;;  %v826_v58 = vmul.f32 %v823_v53, %v774_v42 }
 0x77e   :  { %v812_v54 = vsub.f32 1.0, %v789_v40  ;;  %v827_v2 = vmul.f32 %v789_v40, %v636_v55 }
 0x7d1   :  { %v794_v39 = vpop.permute.xlu1 %793  ;;  %v792_v41 = vpop.permute.xlu0 %791 }
 0x7d2   :  { %v798_v43 = vmul.f32 %v794_v39, %v789_v40  ;;  %v797_v44 = vmul.f32 %v792_v41, %v774_v42 }
 0x7d4   :  { %803 = vrot.lane.b32.xlu0 %v798_v43, %s1922_s25  ;;  %801 = vrot.lane.b32.xlu2 %v797_v44, %s1922_s25 }
 0x82e   :  { %v802_v45 = vpop.permute.xlu2 %801 }
 0x82f   :  { %v807_v46 = vadd.f32 %v802_v45, %v2017_v20 }
 0x831   :  { %1842 = vtanh.f32 %v807_v46 }
 0x837   :  { %v1843_v47 = vpop.eup %1842 }
 0x838   :  { %815 = vrot.lane.b32.xlu1 %v1843_v47, %s1923_s2 }
 0x846   :  { %v804_v48 = vpop.permute.xlu0 %803 }
 0x847   :  { %v808_v49 = vadd.f32 %v804_v48, %v2014_v18 }
 0x849   :  { %1844 = vtanh.f32 %v808_v49 }
 0x84f   :  { %v1845_v51 = vpop.eup %1844 }
 0x850   :  { %817 = vrot.lane.b32.xlu2 %v1845_v51, %s1923_s2 }
 0x8aa   :  { %v816_v56 = vpop.permute.xlu1 %815  ;;  %v818_v57 = vpop.permute.xlu2 %817 }
 0x8ab   :  { %v821_v0 = vmul.f32 %v816_v56, %v811_v52  ;;  %v822_v1 = vmul.f32 %v818_v57, %v812_v54 }
 0x8ad   :  { %v2102_v5 = vadd.f32 %v826_v58, %v821_v0  ;;  %v2104_v7 = vadd.f32 %v827_v2, %v822_v1 }
 0x8af   :  { %v915_v8 = vrot.slane %v2102_v5, 3  ;;  %v916_v3 = vrot.slane %v2104_v7, 2  ;;  %v1019_v0 = vrot.slane %v2102_v5, 7  ;;  %v832_v2 = vrot.slane %v2104_v7, 7 }
 0x8b1   :  { %v917_v9 = vsel %vm56_vm9, %v916_v3, %v915_v8 }
 0x8b2   :  { %918 = vrot.lane.b32.xlu0 %v917_v9, %s1923_s2 }
 0x924   :  { %v919_v10 = vpop.permute.xlu0 %918 }
 0x925   :  { %1779 = vmatmul.msk.f32.vlgmr.msrb.gmra.mxu2 %vm30_vm0, %v919_v10 }
 0x9a8   :  { %v939_v12 = vpop.f32.mrf.mxu2 }
 0x9a9   :  { %v940_v13 = vadd.f32 %v2006_v11, %v939_v12 }
 0x9ab   :  { %v943_v14 = vrot.slane %v940_v13, 4  ;;  %v944_v15 = vrot.slane %v940_v13, 5 }
 0x9ad   :  { %989 = vrot.lane.b32.xlu2 %v944_v15, %s1922_s25  ;;  %987 = vrot.lane.b32.xlu1 %v943_v14, %s1922_s25  ;;  %v948_v16 = vadd.f32 %v944_v15, %v2014_v18  ;;  %v947_v22 = vadd.f32 %v943_v14, %v2017_v20 }
 0x9af   :  { %v1781_v17 = vmul.f32 -1.442695, %v948_v16  ;;  %v1780_v24 = vmul.f32 -1.442695, %v947_v22 }
 0x9b1   :  { %1846 = vpow2.f32 %v1781_v17 }
 0x9b7   :  { %v1847_v19 = vpop.eup %1846 }
 0x9b8   :  { %v956_v21 = vadd.f32 1.0, %v1847_v19 }
 0x9ba   :  { %1848 = vrcp.f32 %v956_v21  ;;  %v983_v31 = vand.u32 2147483648, %v956_v21  ;;  %vm977_vm6 = vweird.f32 %v956_v21  ;;  %v981_v32 = vand.u32 2147483647, %v956_v21 }
 0x9bb   :  { %1850 = vpow2.f32 %v1780_v24 }
 0x9bc   :  { %v984_v34 = vor.u32 1.1754944e-38, %v983_v31  ;;  %vm982_vm8 = vcmp.eq.f32.partialorder %v981_v32, 8.507059e+37 }
 0x9c0   :  { %v1849_v23 = vpop.eup %1848 }
 0x9c1   :  { %v973_v25 = vmul.f32 %v1849_v23, %v956_v21  ;;  %v1851_v27 = vpop.eup %1850  ;;  %vm978_vm5 = vweird.f32 %v1849_v23 }
 0x9c2   :  { %v955_v29 = vadd.f32 1.0, %v1851_v27  ;;  %vm979_vm7 = vmor %vm977_vm6, %vm978_vm5 }
 0x9c3   :  { %v974_v26 = vsub.f32 1.0, %v973_v25 }
 0x9c4   :  { %1852 = vrcp.f32 %v955_v29  ;;  %v968_v43 = vand.u32 2147483648, %v955_v29  ;;  %vm962_vm11 = vweird.f32 %v955_v29  ;;  %v966_v44 = vand.u32 2147483647, %v955_v29 }
 0x9c5   :  { %v975_v28 = vmul.f32 %v1849_v23, %v974_v26 }
 0x9c6   :  { %v969_v46 = vor.u32 1.1754944e-38, %v968_v43  ;;  %vm967_vm13 = vcmp.eq.f32.partialorder %v966_v44, 8.507059e+37 }
 0x9c7   :  { %v976_v30 = vadd.f32 %v1849_v23, %v975_v28 }
 0x9c9   :  { %v980_v33 = vsel %vm979_vm7, %v1849_v23, %v976_v30 }
 0x9ca   :  { %v985_v36 = vsel %vm982_vm8, %v984_v34, %v980_v33  ;;  %v1853_v38 = vpop.eup %1852 }
 0x9cb   :  { %v958_v39 = vmul.f32 %v1853_v38, %v955_v29  ;;  %vm963_vm10 = vweird.f32 %v1853_v38  ;;  %v1008_v1 = vsub.f32 1.0, %v985_v36  ;;  %v1023_v13 = vmul.f32 %v985_v36, %v832_v2 }
 0x9cc   :  { %vm964_vm12 = vmor %vm962_vm11, %vm963_vm10 }
 0x9cd   :  { %v959_v40 = vsub.f32 1.0, %v958_v39 }
 0x9cf   :  { %v960_v41 = vmul.f32 %v1853_v38, %v959_v40 }
 0x9d1   :  { %v961_v42 = vadd.f32 %v1853_v38, %v960_v41 }
 0x9d3   :  { %v965_v45 = vsel %vm964_vm12, %v1853_v38, %v961_v42 }
 0x9d4   :  { %v970_v48 = vsel %vm967_vm13, %v969_v46, %v965_v45 }
 0x9d5   :  { %v1007_v58 = vsub.f32 1.0, %v970_v48  ;;  %v1022_v9 = vmul.f32 %v1019_v0, %v970_v48 }
 0xa07   :  { %v990_v35 = vpop.permute.xlu2 %989 }
 0xa08   :  { %v994_v37 = vmul.f32 %v990_v35, %v985_v36 }
 0xa0a   :  { %999 = vrot.lane.b32.xlu1 %v994_v37, %s1922_s25 }
 0xa1f   :  { %v988_v47 = vpop.permute.xlu1 %987 }
 0xa20   :  { %v993_v49 = vmul.f32 %v988_v47, %v970_v48 }
 0xa22   :  { %997 = vrot.lane.b32.xlu0 %v993_v49, %s1922_s25 }
 0xa7c   :  { %v1000_v51 = vpop.permute.xlu1 %999 }
 0xa7d   :  { %v1004_v52 = vadd.f32 %v1000_v51, %v2014_v18 }
 0xa7f   :  { %1854 = vtanh.f32 %v1004_v52 }
 0xa85   :  { %v1855_v53 = vpop.eup %1854 }
 0xa86   :  { %1013 = vrot.lane.b32.xlu0 %v1855_v53, %s1923_s2 }
 0xa94   :  { %v998_v54 = vpop.permute.xlu0 %997 }
 0xa95   :  { %v1003_v56 = vadd.f32 %v998_v54, %v2017_v20 }
 0xa97   :  { %1856 = vtanh.f32 %v1003_v56 }
 0xa9d   :  { %v1857_v57 = vpop.eup %1856 }
 0xa9e   :  { %1011 = vrot.lane.b32.xlu2 %v1857_v57, %s1923_s2 }
 0xaf8   :  { %v1012_v8 = vpop.permute.xlu2 %1011  ;;  %v1014_v3 = vpop.permute.xlu0 %1013 }
 0xaf9   :  { %v1017_v10 = vmul.f32 %v1012_v8, %v1007_v58  ;;  %v1018_v12 = vmul.f32 %v1014_v3, %v1008_v1 }
 0xafb   :  { %v2126_v14 = vadd.f32 %v1022_v9, %v1017_v10  ;;  %v2128_v15 = vadd.f32 %v1023_v13, %v1018_v12 }
 0xafd   :  { %v1111_v16 = vrot.slane %v2126_v14, 4  ;;  %v1112_v17 = vrot.slane %v2128_v15, 3 }
 0xaff   :  { %v1113_v19 = vsel %vm56_vm9, %v1112_v17, %v1111_v16  ;;  %v1028_v16 = vrot.slane %v2128_v15, 7 }
 0xb00   :  { %1114 = vrot.lane.b32.xlu1 %v1113_v19, %s1923_s2  ;;  %v1215_v19 = vrot.slane %v2126_v14, 7 }
 0xb72   :  { %v1115_v21 = vpop.permute.xlu1 %1114 }
 0xb73   :  { %1782 = vmatmul.msk.f32.vlgmr.msrb.gmra.mxu3 %vm30_vm0, %v1115_v21 }
 0xbf6   :  { %v1135_v22 = vpop.f32.mrf.mxu3 }
 0xbf7   :  { %v1136_v23 = vadd.f32 %v2006_v11, %v1135_v22 }
 0xbf9   :  { %v1139_v24 = vrot.slane %v1136_v23, 3  ;;  %v1140_v25 = vrot.slane %v1136_v23, 4 }
 0xbfb   :  { %1185 = vrot.lane.b32.xlu0 %v1140_v25, %s1922_s25  ;;  %1183 = vrot.lane.b32.xlu2 %v1139_v24, %s1922_s25  ;;  %v1143_v26 = vadd.f32 %v1139_v24, %v2017_v20  ;;  %v1144_v30 = vadd.f32 %v1140_v25, %v2014_v18 }
 0xbfd   :  { %v1783_v27 = vmul.f32 -1.442695, %v1143_v26  ;;  %v1784_v32 = vmul.f32 -1.442695, %v1144_v30 }
 0xbff   :  { %1858 = vpow2.f32 %v1783_v27 }
 0xc05   :  { %v1859_v28 = vpop.eup %1858 }
 0xc06   :  { %v1151_v29 = vadd.f32 1.0, %v1859_v28 }
 0xc08   :  { %1860 = vrcp.f32 %v1151_v29  ;;  %v1164_v39 = vand.u32 2147483648, %v1151_v29  ;;  %vm1158_vm15 = vweird.f32 %v1151_v29  ;;  %v1162_v40 = vand.u32 2147483647, %v1151_v29 }
 0xc09   :  { %1862 = vpow2.f32 %v1784_v32 }
 0xc0a   :  { %v1165_v42 = vor.u32 1.1754944e-38, %v1164_v39  ;;  %vm1163_vm2 = vcmp.eq.f32.partialorder %v1162_v40, 8.507059e+37 }
 0xc0e   :  { %v1861_v31 = vpop.eup %1860 }
 0xc0f   :  { %v1154_v33 = vmul.f32 %v1861_v31, %v1151_v29  ;;  %v1863_v35 = vpop.eup %1862  ;;  %vm1159_vm14 = vweird.f32 %v1861_v31 }
 0xc10   :  { %v1152_v37 = vadd.f32 1.0, %v1863_v35  ;;  %vm1160_vm1 = vmor %vm1158_vm15, %vm1159_vm14 }
 0xc11   :  { %v1155_v34 = vsub.f32 1.0, %v1154_v33 }
 0xc12   :  { %1864 = vrcp.f32 %v1152_v37  ;;  %v1179_v52 = vand.u32 2147483648, %v1152_v37  ;;  %vm1173_vm4 = vweird.f32 %v1152_v37  ;;  %v1177_v53 = vand.u32 2147483647, %v1152_v37 }
 0xc13   :  { %v1156_v36 = vmul.f32 %v1861_v31, %v1155_v34 }
 0xc14   :  { %v1180_v56 = vor.u32 1.1754944e-38, %v1179_v52  ;;  %vm1178_vm6 = vcmp.eq.f32.partialorder %v1177_v53, 8.507059e+37 }
 0xc15   :  { %v1157_v38 = vadd.f32 %v1861_v31, %v1156_v36 }
 0xc17   :  { %v1161_v41 = vsel %vm1160_vm1, %v1861_v31, %v1157_v38 }
 0xc18   :  { %v1166_v44 = vsel %vm1163_vm2, %v1165_v42, %v1161_v41  ;;  %v1865_v46 = vpop.eup %1864  ;;  %vm59_vm2 = vcmask 254976  }
 0xc19   :  { %v1169_v47 = vmul.f32 %v1865_v46, %v1152_v37  ;;  %vm1174_vm3 = vweird.f32 %v1865_v46  ;;  %v1203_v17 = vsub.f32 1.0, %v1166_v44  ;;  %v1218_v25 = vmul.f32 %v1215_v19, %v1166_v44 }
 0xc1a   :  { %vm1175_vm5 = vmor %vm1173_vm4, %vm1174_vm3 }
 0xc1b   :  { %v1170_v48 = vsub.f32 1.0, %v1169_v47 }
 0xc1d   :  { %v1171_v49 = vmul.f32 %v1865_v46, %v1170_v48 }
 0xc1f   :  { %v1172_v51 = vadd.f32 %v1865_v46, %v1171_v49 }
 0xc21   :  { %v1176_v54 = vsel %vm1175_vm5, %v1865_v46, %v1172_v51 }
 0xc22   :  { %v1181_v58 = vsel %vm1178_vm6, %v1180_v56, %v1176_v54  ;;  %vm442_vm6 = vcmask 1042434  }
 0xc23   :  { %v1204_v13 = vsub.f32 1.0, %v1181_v58  ;;  %v1219_v24 = vmul.f32 %v1181_v58, %v1028_v16 }
 0xc55   :  { %v1184_v43 = vpop.permute.xlu2 %1183 }
 0xc56   :  { %v1189_v45 = vmul.f32 %v1184_v43, %v1166_v44 }
 0xc58   :  { %1193 = vrot.lane.b32.xlu1 %v1189_v45, %s1922_s25 }
 0xc6d   :  { %v1186_v57 = vpop.permute.xlu0 %1185 }
 0xc6e   :  { %v1190_v0 = vmul.f32 %v1186_v57, %v1181_v58 }
 0xc70   :  { %1195 = vrot.lane.b32.xlu2 %v1190_v0, %s1922_s25 }
 0xcca   :  { %v1196_v1 = vpop.permute.xlu2 %1195  ;;  %v1194_v8 = vpop.permute.xlu1 %1193 }
 0xccb   :  { %v1200_v3 = vadd.f32 %v1196_v1, %v2014_v18  ;;  %v1199_v9 = vadd.f32 %v1194_v8, %v2017_v20 }
 0xccd   :  { %1866 = vtanh.f32 %v1200_v3 }
 0xcce   :  { %1868 = vtanh.f32 %v1199_v9 }
 0xcd3   :  { %v1867_v10 = vpop.eup %1866 }
 0xcd4   :  { %v1869_v12 = vpop.eup %1868  ;;  %1209 = vrot.lane.b32.xlu1 %v1867_v10, %s1923_s2 }
 0xcd5   :  { %1207 = vrot.lane.b32.xlu0 %v1869_v12, %s1923_s2 }
 0xd46   :  { %v1210_v21 = vpop.permute.xlu1 %1209 }
 0xd47   :  { %v1208_v22 = vpop.permute.xlu0 %1207  ;;  %v1214_v23 = vmul.f32 %v1210_v21, %v1204_v13 }
 0xd48   :  { %v1213_v26 = vmul.f32 %v1208_v22, %v1203_v17 }
 0xd49   :  { %v2150_v27 = vadd.f32 %v1219_v24, %v1214_v23 }
 0xd4a   :  { %v2152_v28 = vadd.f32 %v1218_v25, %v1213_v26  ;;  %v1924_v25 = vmov 8.0   ;;  %v1918_v26 = vld [vmem:[%s2570_s0] sm:$0xff] }
 0xd4b   :  { %v1308_v29 = vrot.slane %v2150_v27, 4 }
 0xd4c   :  { %v1307_v30 = vrot.slane %v2152_v28, 5 }
 0xd4e   :  { %v1309_v31 = vsel %vm56_vm9, %v1308_v29, %v1307_v30  ;;  %v31_v29 = vsel %vm30_vm0, %v1918_v26, 0.0  ;;  %v1919_v30 = vld [vmem:[%s2570_s0 + $0x8] sm:$0xff] }
 0xd4f   :  { %1310 = vrot.lane.b32.xlu2 %v1309_v31, %s1923_s2  ;;  %v38_v31 = vsel %vm30_vm0, %v1919_v30, 0.0 }
 0xda9   :  { %v1311_v32 = vpop.permute.xlu2 %1310 }
 0xdaa   :  { %1785 = vmatmul.msk.f32.vlgmr.msrb.gmra.mxu0 %vm30_vm0, %v1311_v32  ;;  %v32_v32 = vrot.slane %v31_v29, 4 }
 0xe27   :  { %v1331_v33 = vpop.f32.mrf.mxu0 }
 0xe28   :  { %v1332_v34 = vadd.f32 %v2006_v11, %v1331_v33  ;;  %v39_v33 = vrot.slane %v38_v31, 4 }
 0xe2a   :  { %v1335_v35 = vrot.slane %v1332_v34, 2  ;;  %v1336_v36 = vrot.slane %v1332_v34, 3 }
 0xe2c   :  { %1381 = vrot.lane.b32.xlu1 %v1336_v36, %s1922_s25  ;;  %1379 = vrot.lane.b32.xlu0 %v1335_v35, %s1922_s25  ;;  %v1339_v37 = vadd.f32 %v1335_v35, %v2017_v20  ;;  %v1340_v38 = vadd.f32 %v1336_v36, %v2014_v18  ;;  %v33_v35 = vadd.f32 %v32_v32, %v31_v29  ;;  %v1925_v29 = vmov 32.0  }
 0xe2d   :  { %v40_v36 = vadd.f32 %v39_v33, %v38_v31 }
 0xe2e   :  { %v1786_v39 = vmul.f32 -1.442695, %v1339_v37  ;;  %v1787_v40 = vmul.f32 -1.442695, %v1340_v38 }
 0xe30   :  { %1870 = vpow2.f32 %v1786_v39 }
 0xe31   :  { %1872 = vpow2.f32 %v1787_v40  ;;  %v34_v40 = vrot.slane %v33_v35, 2 }
 0xe36   :  { %v1871_v41 = vpop.eup %1870 }
 0xe37   :  { %v1873_v42 = vpop.eup %1872  ;;  %v1347_v43 = vadd.f32 1.0, %v1871_v41  ;;  %v41_v41 = vrot.slane %v40_v36, 2 }
 0xe38   :  { %v1348_v44 = vadd.f32 1.0, %v1873_v42 }
 0xe39   :  { %1874 = vrcp.f32 %v1347_v43  ;;  %vm1354_vm10 = vweird.f32 %v1347_v43  ;;  %v1360_v57 = vand.u32 2147483648, %v1347_v43  ;;  %v1358_v0 = vand.u32 2147483647, %v1347_v43 }
 0xe3a   :  { %1876 = vrcp.f32 %v1348_v44  ;;  %v1375_v56 = vand.u32 2147483648, %v1348_v44  ;;  %vm1369_vm11 = vweird.f32 %v1348_v44  ;;  %v1373_v58 = vand.u32 2147483647, %v1348_v44 }
 0xe3b   :  { %v1361_v9 = vor.u32 1.1754944e-38, %v1360_v57  ;;  %vm1359_vm15 = vcmp.eq.f32.partialorder %v1358_v0, 8.507059e+37  ;;  %v1411_v0 = vrot.slane %v2152_v28, 7 }
 0xe3c   :  { %v1376_v3 = vor.u32 1.1754944e-38, %v1375_v56  ;;  %vm1374_vm14 = vcmp.eq.f32.partialorder %v1373_v58, 8.507059e+37 }
 0xe3f   :  { %v1875_v11 = vpop.eup %1874 }
 0xe40   :  { %v1877_v45 = vpop.eup %1876  ;;  %v1350_v47 = vmul.f32 %v1875_v11, %v1347_v43  ;;  %vm1355_vm7 = vweird.f32 %v1875_v11  ;;  %v35_v43 = vadd.f32 %v34_v40, %v33_v35 }
 0xe41   :  { %v1365_v46 = vmul.f32 %v1877_v45, %v1348_v44  ;;  %vm1370_vm8 = vweird.f32 %v1877_v45  ;;  %vm1356_vm12 = vmor %vm1354_vm10, %vm1355_vm7  ;;  %v42_v44 = vadd.f32 %v41_v41, %v40_v36 }
 0xe42   :  { %v1351_v49 = vsub.f32 1.0, %v1350_v47  ;;  %vm1371_vm13 = vmor %vm1369_vm11, %vm1370_vm8  ;;  %vm447_vm11 = vcmask 256001  }
 0xe43   :  { %v1366_v48 = vsub.f32 1.0, %v1365_v46  ;;  %v36_v46 = vrot.slane %v35_v43, 1  ;;  %v43_v47 = vrot.slane %v42_v44, 1 }
 0xe44   :  { %v1352_v52 = vmul.f32 %v1875_v11, %v1351_v49 }
 0xe45   :  { %v1367_v51 = vmul.f32 %v1877_v45, %v1366_v48  ;;  %v37_v49 = vadd.f32 %v36_v46, %v35_v43 }
 0xe46   :  { %v1353_v54 = vadd.f32 %v1875_v11, %v1352_v52 }
 0xe47   :  { %v1368_v53 = vadd.f32 %v1877_v45, %v1367_v51  ;;  %v44_v51 = vadd.f32 %v43_v47, %v42_v44 }
 0xe48   :  { %v1357_v8 = vsel %vm1356_vm12, %v1875_v11, %v1353_v54 }
 0xe49   :  { %v1372_v1 = vsel %vm1371_vm13, %v1877_v45, %v1368_v53  ;;  %v1362_v17 = vsel %vm1359_vm15, %v1361_v9, %v1357_v8  ;;  %v1224_v8 = vrot.slane %v2150_v27, 7  ;;  %vm637_vm15 = vcmask 1043459  }
 0xe4a   :  { %v1377_v12 = vsel %vm1374_vm14, %v1376_v3, %v1372_v1  ;;  %v1399_v58 = vsub.f32 1.0, %v1362_v17 }
 0xe4b   :  { %v1400_v1 = vsub.f32 1.0, %v1377_v12 }
 0xe9e   :  { %v1382_v10 = vpop.permute.xlu1 %1381  ;;  %v1380_v13 = vpop.permute.xlu0 %1379 }
 0xe9f   :  { %v1386_v19 = vmul.f32 %v1382_v10, %v1377_v12  ;;  %v1385_v21 = vmul.f32 %v1380_v13, %v1362_v17  ;;  %v1414_v10 = vmul.f32 %v1411_v0, %v1362_v17 }
 0xea1   :  { %1391 = vrot.lane.b32.xlu0 %v1386_v19, %s1922_s25  ;;  %1389 = vrot.lane.b32.xlu2 %v1385_v21, %s1922_s25  ;;  %v1415_v21 = vmul.f32 %v1377_v12, %v1224_v8 }
 0xefb   :  { %v1390_v22 = vpop.permute.xlu2 %1389 }
 0xefc   :  { %v1395_v23 = vadd.f32 %v1390_v22, %v2017_v20 }
 0xefe   :  { %1878 = vtanh.f32 %v1395_v23 }
 0xeff   :  { %1880 = vrcp.f32 %v1924_v25 }
 0xf04   :  { %v1879_v24 = vpop.eup %1878 }
 0xf05   :  { %1403 = vrot.lane.b32.xlu1 %v1879_v24, %s1923_s2  ;;  %v1881_v34 = vpop.eup %1880 }
 0xf06   :  { %v46_v37 = vmul.f32 8.0, %v1881_v34  ;;  %vm50_vm1 = vweird.f32 %v1881_v34 }
 0xf08   :  { %v47_v42 = vsub.f32 1.0, %v46_v37 }
 0xf0a   :  { %v48_v11 = vmul.f32 %v1881_v34, %v47_v42 }
 0xf0c   :  { %v49_v48 = vadd.f32 %v1881_v34, %v48_v11 }
 0xf0e   :  { %v51_v52 = vsel %vm50_vm1, %v1881_v34, %v49_v48  ;;  %vm642_vm1 = vcmask 257026  }
 0xf0f   :  { %v52_v53 = vmul.f32 %v51_v52, %v37_v49  ;;  %v53_v54 = vmul.f32 %v51_v52, %v44_v51 }
 0xf11   :  { %v57_v56 = vsel %vm56_vm9, %v53_v54, %v52_v53 }
 0xf12   :  { %v60_v57 = vsel %vm59_vm2, %v57_v56, 0.0 }
 0xf13   :  { %v1392_v38 = vpop.permute.xlu0 %1391 }
 0xf14   :  { %v1396_v39 = vadd.f32 %v1392_v38, %v2014_v18 }
 0xf16   :  { %1882 = vtanh.f32 %v1396_v39  ;;  %v260_v39 = vsel %vm59_vm2, %v2036_v6, 0.0 }
 0xf17   :  { %1884 = vrcp.f32 %v1925_v29 }
 0xf1c   :  { %v1883_v45 = vpop.eup %1882 }
 0xf1d   :  { %1405 = vrot.lane.b32.xlu2 %v1883_v45, %s1923_s2  ;;  %v1885_v17 = vpop.eup %1884 }
 0xf1e   :  { %v64_v30 = vmul.f32 32.0, %v1885_v17  ;;  %vm68_vm3 = vweird.f32 %v1885_v17 }
 0xf20   :  { %v65_v31 = vsub.f32 1.0, %v64_v30 }
 0xf22   :  { %v66_v32 = vmul.f32 %v1885_v17, %v65_v31 }
 0xf24   :  { %v67_v33 = vadd.f32 %v1885_v17, %v66_v32 }
 0xf26   :  { %v2192_v12 = vsel %vm68_vm3, %v1885_v17, %v67_v33 }
 0xf2f   :  { %61 = vadd.xlane.f32.xlu1 %v60_v57 }
 0xf77   :  { %v1404_v3 = vpop.permute.xlu1 %1403  ;;  %v1406_v9 = vpop.permute.xlu2 %1405 }
 0xf78   :  { %v1409_v13 = vmul.f32 %v1404_v3, %v1399_v58  ;;  %v1410_v19 = vmul.f32 %v1406_v9, %v1400_v1 }
 0xf7a   :  { %v2184_v22 = vadd.f32 %v1414_v10, %v1409_v13  ;;  %v2186_v23 = vadd.f32 %v1415_v21, %v1410_v19 }
 0xf7c   :  { %v1503_v24 = vrot.slane %v2184_v22, 6  ;;  %v1504_v25 = vrot.slane %v2186_v23, 5 }
 0xf7e   :  { %v1505_v26 = vsel %vm56_vm9, %v1504_v25, %v1503_v24 }
 0xf7f   :  { %1506 = vrot.lane.b32.xlu0 %v1505_v26, %s1923_s2  ;;  %v443_v26 = vsel %vm442_vm6, %v441_v50, %v2054_v60 }
 0xfa2   :  { %v62_v34 = vpop.xlane.xlu1 %61 }
 0xfa3   :  { %v70_v35 = vmul.f32 %v2192_v12, %v62_v34 }
 0xfa5   :  { %v72_v36 = vrot.slane %v70_v35, 1  ;;  %v2195_v37 = vsub.f32 %v52_v53, %v70_v35 }
 0xfa7   :  { %v2197_v38 = vsub.f32 %v53_v54, %v72_v36  ;;  %v77_v40 = vmul.f32 %v2195_v37, %v2195_v37 }
 0xfa9   :  { %261 = vadd.xlane.f32.xlu0 %v260_v39  ;;  %v78_v41 = vmul.f32 %v2197_v38, %v2197_v38 }
 0xfab   :  { %v81_v42 = vrot.slane %v78_v41, 7 }
 0xfad   :  { %v82_v43 = vsel %vm56_vm9, %v81_v42, %v77_v40  ;;  %v311_v42 = vld [vmem:[%s2573_s5 + $0x8] sm:$0x1] }
 0xfae   :  { %v84_v44 = vsel %vm59_vm2, %v82_v43, 0.0  ;;  %v323_v43 = vld [vmem:[%s2574_s6 + $0x8] sm:$0x1] }
 0xfaf   :  { %85 = vadd.xlane.f32.xlu2 %v84_v44 }
 0xff1   :  { %v1507_v11 = vpop.permute.xlu0 %1506 }
 0xff2   :  { %1788 = vmatmul.msk.f32.vlgmr.msra.gmra.mxu1 %vm30_vm0, %v1507_v11 }
0x101c   :  { %v262_v45 = vpop.xlane.xlu0 %261 }
0x101d   :  { %v263_v46 = vmul.f32 %v262_v45, %v2192_v12 }
0x101f   :  { %v265_v6 = vrot.slane %v263_v46, 1  ;;  %v268_v47 = vsub.f32 %v2029_v4, %v263_v46 }
0x1021   :  { %v269_v48 = vsub.f32 %v2026_v62, %v265_v6  ;;  %v270_v51 = vmul.f32 %v268_v47, %v268_v47 }
0x1022   :  { %v86_v54 = vpop.xlane.xlu2 %85 }
0x1023   :  { %v271_v49 = vmul.f32 %v269_v48, %v269_v48  ;;  %v87_v29 = vmul.f32 %v86_v54, %v2192_v12 }
0x1025   :  { %v274_v52 = vrot.slane %v271_v49, 7  ;;  %v88_v17 = vadd.f32 1e-08, %v87_v29 }
0x1027   :  { %v275_v53 = vsel %vm56_vm9, %v274_v52, %v270_v51  ;;  %vm95_vm7 = vweird.f32 %v88_v17 }
0x1028   :  { %276 = vrot.lane.b32.xlu2 %v275_v53, %s1923_s2 }
0x1082   :  { %v277_v56 = vpop.permute.xlu2 %276 }
0x1083   :  { %v279_v57 = vsel %vm59_vm2, %v277_v56, 0.0 }
0x1084   :  { %280 = vadd.xlane.f32.xlu1 %v279_v57 }
0x10f7   :  { %v281_v58 = vpop.xlane.xlu1 %280 }
0x10f8   :  { %v282_v0 = vmul.f32 %v281_v58, %v2192_v12 }
0x10fa   :  { %v283_v1 = vadd.f32 1e-08, %v282_v0 }
0x10fc   :  { %1886 = vrsqrt.f32 %v283_v1  ;;  %vm290_vm4 = vweird.f32 %v283_v1 }
0x10fd   :  { %1888 = vrsqrt.f32 %v88_v17 }
0x1102   :  { %v1887_v4 = vpop.eup %1886 }
0x1103   :  { %v285_v3 = vmul.f32 %v1887_v4, %v283_v1  ;;  %vm291_vm0 = vweird.f32 %v1887_v4  ;;  %v1889_v30 = vpop.eup %1888 }
0x1104   :  { %vm292_vm5 = vmor %vm290_vm4, %vm291_vm0  ;;  %v90_v31 = vmul.f32 %v1889_v30, %v88_v17  ;;  %vm96_vm8 = vweird.f32 %v1889_v30 }
0x1105   :  { %v286_v62 = vmul.f32 %v1887_v4, %v285_v3  ;;  %vm97_vm10 = vmor %vm95_vm7, %vm96_vm8  ;;  %vm833_vm8 = vcmask 1044484  }
0x1106   :  { %v91_v32 = vmul.f32 %v1889_v30, %v90_v31 }
0x1107   :  { %v287_v9 = vmul.f32 0.5, %v286_v62 }
0x1108   :  { %v92_v33 = vmul.f32 0.5, %v91_v32 }
0x1109   :  { %v288_v10 = vsub.f32 1.5, %v287_v9 }
0x110a   :  { %v93_v34 = vsub.f32 1.5, %v92_v33 }
0x110b   :  { %v289_v13 = vmul.f32 %v1887_v4, %v288_v10 }
0x110c   :  { %v94_v35 = vmul.f32 %v1889_v30, %v93_v34 }
0x110d   :  { %v293_v19 = vsel %vm292_vm5, %v1887_v4, %v289_v13 }
0x110e   :  { %v298_v21 = vmul.f32 %v293_v19, %v268_v47  ;;  %v295_v24 = vrot.slane %v293_v19, 1  ;;  %v98_v36 = vsel %vm97_vm10, %v1889_v30, %v94_v35 }
0x110f   :  { %v100_v39 = vrot.slane %v98_v36, 1  ;;  %v2224_v50 = vmul.f32 %v98_v36, %v2195_v37  ;;  %v310_v37 = vld [vmem:[%s2573_s5] sm:$0x1] }
0x1110   :  { %302 = vrot.lane.b32.xlu0 %v298_v21, %s1923_s2  ;;  %v299_v25 = vmul.f32 %v295_v24, %v269_v48 }
0x1111   :  { %v2227_v41 = vmul.f32 %v100_v39, %v2197_v38  ;;  %v322_v38 = vld [vmem:[%s2574_s6] sm:$0x1] }
0x1112   :  { %304 = vrot.lane.b32.xlu1 %v299_v25, %s1923_s2 }
0x111a   :  { %444 = vrot.lane.b32.xlu1 %v443_v26, %s1923_s2 }
0x1182   :  { %v303_v40 = vpop.permute.xlu0 %302 }
0x1183   :  { %v308_v11 = vadd.f32 %v303_v40, %v2224_v50 }
0x1184   :  { %v305_v44 = vpop.permute.xlu1 %304 }
0x1185   :  { %v309_v45 = vadd.f32 %v305_v44, %v2227_v41  ;;  %v312_v47 = vmul.f32 %v310_v37, %v308_v11  ;;  %v324_v48 = vmul.f32 %v322_v38, %v308_v11  ;;  %v638_v44 = vsel %vm637_vm15, %v636_v55, %v2080_v63  ;;  %v513_v37 = vld [vmem:[%s2574_s6 + $0x9] sm:$0x1]  ;;  %v500_v55 = vld [vmem:[%s2573_s5 + $0x1] sm:$0x1] }
0x1187   :  { %v313_v46 = vmul.f32 %v311_v42, %v309_v45  ;;  %v325_v6 = vmul.f32 %v323_v43, %v309_v45  ;;  %v501_v45 = vld [vmem:[%s2573_s5 + $0x9] sm:$0x1] }
0x1189   :  { %v316_v49 = vrot.slane %v313_v46, 7  ;;  %v328_v51 = vrot.slane %v325_v6, 7 }
0x118b   :  { %v329_v52 = vsel %vm56_vm9, %v328_v51, %v324_v48  ;;  %v317_v53 = vsel %vm56_vm9, %v316_v49, %v312_v47  ;;  %v512_v47 = vld [vmem:[%s2574_s6 + $0x1] sm:$0x1] }
0x118c   :  { %v445_v54 = vpop.permute.xlu1 %444  ;;  %v331_v56 = vsel %vm59_vm2, %v329_v52, 0.0  ;;  %v319_v57 = vsel %vm59_vm2, %v317_v53, 0.0 }
0x118d   :  { %332 = vadd.xlane.f32.xlu0 %v331_v56  ;;  %320 = vadd.xlane.f32.xlu2 %v319_v57  ;;  %v448_v58 = vsel %vm447_vm11, %v445_v54, 0.0 }
0x118e   :  { %449 = vadd.xlane.f32.xlu1 %v448_v58 }
0x1200   :  { %v2253_v21 = vpop.xlane.xlu2 %320  ;;  %v2256_v26 = vpop.xlane.xlu0 %332 }
0x1201   :  { %v450_v0 = vpop.xlane.xlu1 %449 }
0x1202   :  { %v451_v1 = vmul.f32 %v450_v0, %v2192_v12 }
0x1204   :  { %v453_v4 = vrot.slane %v451_v1, 1  ;;  %v456_v3 = vsub.f32 %v2054_v60, %v451_v1 }
0x1206   :  { %v457_v62 = vsub.f32 %v2056_v61, %v453_v4  ;;  %v458_v10 = vmul.f32 %v456_v3, %v456_v3 }
0x1208   :  { %v459_v9 = vmul.f32 %v457_v62, %v457_v62 }
0x120a   :  { %v462_v13 = vrot.slane %v459_v9, 7 }
0x120c   :  { %v463_v19 = vsel %vm442_vm6, %v462_v13, %v458_v10 }
0x120d   :  { %464 = vrot.lane.b32.xlu2 %v463_v19, %s1923_s2 }
0x1267   :  { %v465_v24 = vpop.permute.xlu2 %464 }
0x1268   :  { %v467_v25 = vsel %vm447_vm11, %v465_v24, 0.0 }
0x1269   :  { %468 = vadd.xlane.f32.xlu0 %v467_v25 }
0x12dc   :  { %v469_v29 = vpop.xlane.xlu0 %468 }
0x12dd   :  { %v470_v60 = vmul.f32 %v469_v29, %v2192_v12 }
0x12df   :  { %v471_v17 = vadd.f32 1e-08, %v470_v60 }
0x12e1   :  { %1890 = vrsqrt.f32 %v471_v17  ;;  %vm478_vm13 = vweird.f32 %v471_v17 }
0x12e7   :  { %v1891_v61 = vpop.eup %1890 }
0x12e8   :  { %v473_v30 = vmul.f32 %v1891_v61, %v471_v17  ;;  %vm479_vm12 = vweird.f32 %v1891_v61 }
0x12e9   :  { %vm480_vm14 = vmor %vm478_vm13, %vm479_vm12 }
0x12ea   :  { %v474_v31 = vmul.f32 %v1891_v61, %v473_v30 }
0x12ec   :  { %v475_v32 = vmul.f32 0.5, %v474_v31 }
0x12ee   :  { %v476_v33 = vsub.f32 1.5, %v475_v32 }
0x12f0   :  { %v477_v34 = vmul.f32 %v1891_v61, %v476_v33 }
0x12f2   :  { %v481_v35 = vsel %vm480_vm14, %v1891_v61, %v477_v34 }
0x12f3   :  { %v486_v36 = vmul.f32 %v481_v35, %v456_v3  ;;  %v483_v39 = vrot.slane %v481_v35, 1  ;;  %v1527_v3 = vpop.f32.mrf.mxu1 }
0x12f5   :  { %v490_v40 = vrot.slane %v486_v36, 1  ;;  %v487_v42 = vmul.f32 %v483_v39, %v457_v62  ;;  %v1920_v62 = vld [vmem:[%s2572_s4] ss:$0 sm:$0xff] }
0x12f6   :  { %v1528_v9 = vadd.f32 %v1920_v62, %v1527_v3 }
0x12f7   :  { %492 = vrot.lane.b32.xlu0 %v490_v40, %s1923_s2  ;;  %v491_v43 = vrot.slane %v487_v42, 1 }
0x12f8   :  { %v1532_v10 = vrot.slane %v1528_v9, 2  ;;  %v1531_v13 = vrot.slane %v1528_v9, 1 }
0x12f9   :  { %494 = vrot.lane.b32.xlu1 %v491_v43, %s1923_s2 }
0x12fa   :  { %v1535_v35 = vadd.f32 %v1531_v13, %v2017_v20 }
0x12fc   :  { %v1789_v36 = vmul.f32 -1.442695, %v1535_v35 }
0x12fe   :  { %1892 = vpow2.f32 %v1789_v36 }
0x1301   :  { %639 = vrot.lane.b32.xlu1 %v638_v44, %s1923_s2 }
0x1304   :  { %v1893_v39 = vpop.eup %1892 }
0x1305   :  { %v1543_v43 = vadd.f32 1.0, %v1893_v39 }
0x1307   :  { %vm1550_vm6 = vweird.f32 %v1543_v43 }
0x1369   :  { %v493_v11 = vpop.permute.xlu0 %492 }
0x136a   :  { %v498_v46 = vadd.f32 %v493_v11, %v2224_v50 }
0x136b   :  { %v495_v38 = vpop.permute.xlu1 %494 }
0x136c   :  { %v499_v6 = vadd.f32 %v495_v38, %v2227_v41  ;;  %v502_v51 = vmul.f32 %v500_v55, %v498_v46  ;;  %v514_v52 = vmul.f32 %v512_v47, %v498_v46 }
0x136e   :  { %v503_v48 = vmul.f32 %v501_v45, %v499_v6  ;;  %v515_v49 = vmul.f32 %v513_v37, %v499_v6 }
0x1370   :  { %v506_v53 = vrot.slane %v503_v48, 7  ;;  %v518_v54 = vrot.slane %v515_v49, 7 }
0x1372   :  { %v519_v56 = vsel %vm56_vm9, %v518_v54, %v514_v52  ;;  %v507_v57 = vsel %vm56_vm9, %v506_v53, %v502_v51 }
0x1373   :  { %v640_v58 = vpop.permute.xlu1 %639  ;;  %v521_v0 = vsel %vm59_vm2, %v519_v56, 0.0  ;;  %v509_v1 = vsel %vm59_vm2, %v507_v57, 0.0 }
0x1374   :  { %522 = vadd.xlane.f32.xlu0 %v521_v0  ;;  %510 = vadd.xlane.f32.xlu2 %v509_v1  ;;  %v643_v4 = vsel %vm642_vm1, %v640_v58, 0.0 }
0x1375   :  { %644 = vadd.xlane.f32.xlu1 %v643_v4 }
0x138c   :  { %1577 = vrot.lane.b32.xlu2 %v1532_v10, %s1922_s25 }
0x1394   :  { %1575 = vrot.lane.b32.xlu2 %v1531_v13, %s1922_s25  ;;  %v1556_v13 = vand.u32 2147483648, %v1543_v43 }
0x13e7   :  { %v2295_v32 = vpop.xlane.xlu0 %522  ;;  %v2301_v46 = vpop.xlane.xlu2 %510 }
0x13e8   :  { %v645_v19 = vpop.xlane.xlu1 %644 }
0x13e9   :  { %v646_v24 = vmul.f32 %v645_v19, %v2192_v12 }
0x13eb   :  { %v648_v25 = vrot.slane %v646_v24, 1  ;;  %v651_v29 = vsub.f32 %v2080_v63, %v646_v24  ;;  %v1536_v63 = vadd.f32 %v1532_v10, %v2014_v18  ;;  %v1554_v24 = vand.u32 2147483647, %v1543_v43 }
0x13ed   :  { %v652_v60 = vsub.f32 %v2078_v59, %v648_v25  ;;  %v653_v61 = vmul.f32 %v651_v29, %v651_v29  ;;  %v1790_v59 = vmul.f32 -1.442695, %v1536_v63  ;;  %vm1555_vm11 = vcmp.eq.f32.partialorder %v1554_v24, 8.507059e+37 }
0x13ef   :  { %v654_v17 = vmul.f32 %v652_v60, %v652_v60  ;;  %1894 = vpow2.f32 %v1790_v59  ;;  %v1578_v56 = vpop.permute.xlu2 %1577 }
0x13f1   :  { %v657_v30 = vrot.slane %v654_v17, 7  ;;  %v1557_v17 = vor.u32 1.1754944e-38, %v1556_v13 }
0x13f3   :  { %v658_v31 = vsel %vm637_vm15, %v657_v30, %v653_v61  ;;  %vm838_vm15 = vcmask 258051  }
0x13f4   :  { %659 = vrot.lane.b32.xlu0 %v658_v31, %s1923_s2  ;;  %v834_v31 = vsel %vm833_vm8, %v832_v2, %v2102_v5 }
0x13f5   :  { %v1895_v11 = vpop.eup %1894 }
0x13f6   :  { %v1544_v45 = vadd.f32 1.0, %v1895_v11 }
0x13f8   :  { %vm1565_vm12 = vweird.f32 %v1544_v45 }
0x1466   :  { %v660_v33 = vpop.permute.xlu0 %659 }
0x1467   :  { %v662_v34 = vsel %vm642_vm1, %v660_v33, 0.0  ;;  %v1569_v33 = vand.u32 2147483647, %v1544_v45  ;;  %vm1225_vm1 = vcmask 1046534  }
0x1468   :  { %663 = vadd.xlane.f32.xlu1 %v662_v34 }
0x1469   :  { %vm1570_vm14 = vcmp.eq.f32.partialorder %v1569_v33, 8.507059e+37 }
0x14db   :  { %v664_v40 = vpop.xlane.xlu1 %663 }
0x14dc   :  { %v665_v42 = vmul.f32 %v664_v40, %v2192_v12  ;;  %v696_v40 = vld [vmem:[%s2573_s5 + $0xa] sm:$0x1] }
0x14de   :  { %v666_v44 = vadd.f32 1e-08, %v665_v42 }
0x14e0   :  { %1896 = vrsqrt.f32 %v666_v44  ;;  %vm673_vm0 = vweird.f32 %v666_v44 }
0x14e1   :  { %1898 = vrcp.f32 %v1543_v43 }
0x14e2   :  { %1900 = vrcp.f32 %v1544_v45 }
0x14e6   :  { %v1897_v37 = vpop.eup %1896 }
0x14e7   :  { %v1899_v38 = vpop.eup %1898  ;;  %v668_v6 = vmul.f32 %v1897_v37, %v666_v44  ;;  %vm674_vm3 = vweird.f32 %v1897_v37 }
0x14e8   :  { %v1546_v47 = vmul.f32 %v1899_v38, %v1543_v43  ;;  %v1901_v49 = vpop.eup %1900  ;;  %vm675_vm4 = vmor %vm673_vm0, %vm674_vm3  ;;  %vm1551_vm5 = vweird.f32 %v1899_v38  ;;  %v695_v43 = vld [vmem:[%s2573_s5 + $0x2] sm:$0x1]  ;;  %vm1724_vm3 = vcmask 7168   ;;  %vm1726_vm0 = vcmask 15360  }
0x14e9   :  { %v669_v55 = vmul.f32 %v1897_v37, %v668_v6  ;;  %v1561_v54 = vmul.f32 %v1901_v49, %v1544_v45  ;;  %vm1552_vm7 = vmor %vm1550_vm6, %vm1551_vm5  ;;  %vm1566_vm10 = vweird.f32 %v1901_v49  ;;  %v707_v6 = vld [vmem:[%s2574_s6 + $0x2] sm:$0x1] }
0x14ea   :  { %v1547_v52 = vsub.f32 1.0, %v1546_v47  ;;  %vm1567_vm13 = vmor %vm1565_vm12, %vm1566_vm10  ;;  %vm1034_vm10 = vcmask 259076   ;;  %vm1426_vm12 = vcmask 261126  }
0x14eb   :  { %v670_v48 = vmul.f32 0.5, %v669_v55  ;;  %v1562_v4 = vsub.f32 1.0, %v1561_v54 }
0x14ec   :  { %v1548_v58 = vmul.f32 %v1899_v38, %v1547_v52 }
0x14ed   :  { %v671_v51 = vsub.f32 1.5, %v670_v48  ;;  %v1563_v19 = vmul.f32 %v1901_v49, %v1562_v4 }
0x14ee   :  { %v1549_v9 = vadd.f32 %v1899_v38, %v1548_v58 }
0x14ef   :  { %v672_v53 = vmul.f32 %v1897_v37, %v671_v51  ;;  %v1564_v61 = vadd.f32 %v1901_v49, %v1563_v19 }
0x14f0   :  { %v1553_v25 = vsel %vm1552_vm7, %v1899_v38, %v1549_v9  ;;  %vm1029_vm7 = vcmask 1045509  }
0x14f1   :  { %v676_v57 = vsel %vm675_vm4, %v1897_v37, %v672_v53  ;;  %v2305_v30 = vsel %vm1555_vm11, %v1557_v17, %v1553_v25  ;;  %v1568_v35 = vsel %vm1567_vm13, %v1901_v49, %v1564_v61  ;;  %vm1230_vm11 = vcmask 260101  }
0x14f2   :  { %v681_v0 = vmul.f32 %v676_v57, %v651_v29  ;;  %v678_v1 = vrot.slane %v676_v57, 1  ;;  %v1576_v29 = vpop.permute.xlu2 %1575  ;;  %vm1623_vm13 = vcmask 261127  }
0x14f3   :  { %v1581_v34 = vmul.f32 %v1576_v29, %v2305_v30 }
0x14f4   :  { %v685_v3 = vrot.slane %v681_v0, 2  ;;  %v682_v62 = vmul.f32 %v678_v1, %v652_v60  ;;  %v1571_v60 = vand.u32 2147483648, %v1544_v45  ;;  %v708_v45 = vld [vmem:[%s2574_s6 + $0xa] sm:$0x1]  ;;  %v1226_v0 = vsel %vm1225_vm1, %v1224_v8, %v2152_v28 }
0x14f6   :  { %687 = vrot.lane.b32.xlu0 %v685_v3, %s1923_s2  ;;  %v686_v10 = vrot.slane %v682_v62, 2  ;;  %v1572_v36 = vor.u32 1.1754944e-38, %v1571_v60  ;;  %v1725_v3 = vsel %vm1724_vm3, %v2253_v21, %v2301_v46 }
0x14f8   :  { %689 = vrot.lane.b32.xlu2 %v686_v10, %s1923_s2  ;;  %v2314_v63 = vsel %vm1570_vm14, %v1572_v36, %v1568_v35  ;;  %vm1627_vm14 = vcmask 253952  }
0x14f9   :  { %v1582_v59 = vmul.f32 %v1578_v56, %v2314_v63 }
0x14fe   :  { %835 = vrot.lane.b32.xlu0 %v834_v31, %s1923_s2 }
0x1500   :  { %1585 = vrot.lane.b32.xlu2 %v1581_v34, %s1922_s25 }
0x1506   :  { %1587 = vrot.lane.b32.xlu0 %v1582_v59, %s1922_s25 }
0x1552   :  { %v690_v39 = vpop.permute.xlu2 %689 }
0x1553   :  { %v694_v2 = vadd.f32 %v690_v39, %v2227_v41 }
0x1555   :  { %v698_v42 = vmul.f32 %v696_v40, %v694_v2  ;;  %v710_v55 = vmul.f32 %v708_v45, %v694_v2  ;;  %v1030_v45 = vsel %vm1029_vm7, %v1028_v16, %v2126_v14  ;;  %v904_v16 = vld [vmem:[%s2574_s6 + $0xb] sm:$0x1] }
0x1557   :  { %v701_v37 = vrot.slane %v698_v42, 7  ;;  %v713_v52 = vrot.slane %v710_v55, 7 }
0x155a   :  { %v1586_v4 = vpop.permute.xlu2 %1585 }
0x155b   :  { %v1591_v25 = vadd.f32 %v1586_v4, %v2017_v20 }
0x1568   :  { %v688_v44 = vpop.permute.xlu0 %687 }
0x1569   :  { %v693_v11 = vadd.f32 %v688_v44, %v2224_v50 }
0x156b   :  { %v697_v38 = vmul.f32 %v695_v43, %v693_v11  ;;  %v709_v49 = vmul.f32 %v707_v6, %v693_v11 }
0x156d   :  { %v702_v47 = vsel %vm56_vm9, %v701_v37, %v697_v38  ;;  %v714_v54 = vsel %vm56_vm9, %v713_v52, %v709_v49  ;;  %v1420_v37 = vrot.slane %v2186_v23, 7 }
0x156e   :  { %v704_v48 = vsel %vm59_vm2, %v702_v47, 0.0  ;;  %v716_v56 = vsel %vm59_vm2, %v714_v54, 0.0  ;;  %v903_v54 = vld [vmem:[%s2574_s6 + $0x3] sm:$0x1] }
0x156f   :  { %705 = vadd.xlane.f32.xlu1 %v704_v48  ;;  %v892_v48 = vld [vmem:[%s2573_s5 + $0xb] sm:$0x1] }
0x1570   :  { %v836_v51 = vpop.permute.xlu0 %835 }
0x1571   :  { %v839_v53 = vsel %vm838_vm15, %v836_v51, 0.0 }
0x1572   :  { %840 = vadd.xlane.f32.xlu2 %v839_v53  ;;  %v891_v53 = vld [vmem:[%s2573_s5 + $0x3] sm:$0x1] }
0x1577   :  { %717 = vadd.xlane.f32.xlu1 %v716_v56 }
0x1578   :  { %v1588_v57 = vpop.permute.xlu0 %1587 }
0x1579   :  { %v1592_v58 = vadd.f32 %v1588_v57, %v2014_v18 }
0x157b   :  { %1902 = vtanh.f32 %v1592_v58 }
0x157c   :  { %1904 = vtanh.f32 %v1591_v25  ;;  %v1595_v25 = vsub.f32 1.0, %v2305_v30 }
0x1581   :  { %v1903_v1 = vpop.eup %1902 }
0x1582   :  { %v1905_v21 = vpop.eup %1904 }
0x158a   :  { %1227 = vrot.lane.b32.xlu2 %v1226_v0, %s1923_s2 }
0x1590   :  { %1601 = vrot.lane.b32.xlu1 %v1903_v1, %s1923_s2 }
0x15e2   :  { %v706_v62 = vpop.xlane.xlu1 %705 }
0x15e3   :  { %v2346_v18 = vsel %vm1726_vm0, %v1725_v3, %v706_v62 }
0x15e5   :  { %v841_v9 = vpop.xlane.xlu2 %840 }
0x15e6   :  { %v842_v10 = vmul.f32 %v841_v9, %v2192_v12 }
0x15e8   :  { %v844_v13 = vrot.slane %v842_v10, 1  ;;  %v847_v8 = vsub.f32 %v2102_v5, %v842_v10 }
0x15ea   :  { %v848_v19 = vsub.f32 %v2104_v7, %v844_v13  ;;  %v849_v17 = vmul.f32 %v847_v8, %v847_v8  ;;  %v2368_v6 = vpop.xlane.xlu1 %717 }
0x15ec   :  { %v850_v24 = vmul.f32 %v848_v19, %v848_v19 }
0x15ee   :  { %v853_v29 = vrot.slane %v850_v24, 7 }
0x15f0   :  { %v854_v61 = vsel %vm833_vm8, %v853_v29, %v849_v17  ;;  %vm1421_vm8 = vcmask 1047559   ;;  %v1607_v17 = vrot.slane %v2184_v22, 7 }
0x15f1   :  { %855 = vrot.lane.b32.xlu0 %v854_v61, %s1923_s2  ;;  %v1422_v38 = vsel %vm1421_vm8, %v1420_v37, %v2184_v22  ;;  %v1596_v61 = vsub.f32 1.0, %v2314_v63 }
0x15f9   :  { %1599 = vrot.lane.b32.xlu0 %v1905_v21, %s1923_s2  ;;  %v1610_v21 = vmul.f32 %v1607_v17, %v2305_v30 }
0x1602   :  { %v1602_v55 = vpop.permute.xlu1 %1601 }
0x1663   :  { %v856_v46 = vpop.permute.xlu0 %855 }
0x1664   :  { %v858_v60 = vsel %vm838_vm15, %v856_v46, 0.0  ;;  %v1606_v46 = vmul.f32 %v1602_v55, %v1596_v61 }
0x1665   :  { %859 = vadd.xlane.f32.xlu0 %v858_v60 }
0x166b   :  { %v1600_v5 = vpop.permute.xlu0 %1599 }
0x166c   :  { %v1605_v29 = vmul.f32 %v1600_v5, %v1595_v25 }
0x166e   :  { %v2394_v60 = vadd.f32 %v1610_v21, %v1605_v29 }
0x16d8   :  { %v860_v31 = vpop.xlane.xlu0 %859 }
0x16d9   :  { %v861_v7 = vmul.f32 %v860_v31, %v2192_v12  ;;  %v1611_v31 = vmul.f32 %v2314_v63, %v1420_v37 }
0x16db   :  { %v862_v33 = vadd.f32 1e-08, %v861_v7  ;;  %v1613_v7 = vadd.f32 %v1611_v31, %v1606_v46 }
0x16dd   :  { %1906 = vrsqrt.f32 %v862_v33  ;;  %vm869_vm5 = vweird.f32 %v862_v33 }
0x16e3   :  { %v1907_v20 = vpop.eup %1906 }
0x16e4   :  { %v864_v34 = vmul.f32 %v1907_v20, %v862_v33  ;;  %vm870_vm4 = vweird.f32 %v1907_v20  ;;  %v1616_v33 = vrot.slane %v1613_v7, 7 }
0x16e5   :  { %vm871_vm6 = vmor %vm869_vm5, %vm870_vm4 }
0x16e6   :  { %v865_v35 = vmul.f32 %v1907_v20, %v864_v34 }
0x16e8   :  { %v866_v36 = vmul.f32 0.5, %v865_v35 }
0x16ea   :  { %v867_v59 = vsub.f32 1.5, %v866_v36 }
0x16ec   :  { %v868_v39 = vmul.f32 %v1907_v20, %v867_v59 }
0x16ee   :  { %v872_v2 = vsel %vm871_vm6, %v1907_v20, %v868_v39 }
0x16ef   :  { %v877_v40 = vmul.f32 %v872_v2, %v847_v8  ;;  %v874_v42 = vrot.slane %v872_v2, 1 }
0x16f1   :  { %v881_v43 = vrot.slane %v877_v40, 3  ;;  %v878_v44 = vmul.f32 %v874_v42, %v848_v19  ;;  %v1228_v19 = vpop.permute.xlu2 %1227 }
0x16f2   :  { %v1231_v24 = vsel %vm1230_vm11, %v1228_v19, 0.0 }
0x16f3   :  { %883 = vrot.lane.b32.xlu1 %v881_v43, %s1923_s2  ;;  %v882_v11 = vrot.slane %v878_v44, 3 }
0x16f5   :  { %885 = vrot.lane.b32.xlu0 %v882_v11, %s1923_s2 }
0x16fb   :  { %1031 = vrot.lane.b32.xlu1 %v1030_v45, %s1923_s2 }
0x1703   :  { %1423 = vrot.lane.b32.xlu1 %v1422_v38, %s1923_s2 }
0x1765   :  { %v884_v47 = vpop.permute.xlu1 %883 }
0x1766   :  { %v889_v51 = vadd.f32 %v884_v47, %v2224_v50 }
0x1767   :  { %v886_v49 = vpop.permute.xlu0 %885 }
0x1768   :  { %v890_v52 = vadd.f32 %v886_v49, %v2227_v41  ;;  %v893_v58 = vmul.f32 %v891_v53, %v889_v51  ;;  %v905_v0 = vmul.f32 %v903_v54, %v889_v51 }
0x176a   :  { %v894_v56 = vmul.f32 %v892_v48, %v890_v52  ;;  %v906_v57 = vmul.f32 %v904_v16, %v890_v52 }
0x176c   :  { %v897_v1 = vrot.slane %v894_v56, 7  ;;  %v909_v4 = vrot.slane %v906_v57, 7 }
0x176d   :  { %v1032_v3 = vpop.permute.xlu1 %1031 }
0x176e   :  { %v1035_v62 = vsel %vm1034_vm10, %v1032_v3, 0.0  ;;  %v910_v9 = vsel %vm56_vm9, %v909_v4, %v905_v0  ;;  %v898_v10 = vsel %vm56_vm9, %v897_v1, %v893_v58 }
0x176f   :  { %1036 = vadd.xlane.f32.xlu0 %v1035_v62  ;;  %v912_v13 = vsel %vm59_vm2, %v910_v9, 0.0  ;;  %v900_v8 = vsel %vm59_vm2, %v898_v10, 0.0 }
0x1770   :  { %913 = vadd.xlane.f32.xlu1 %v912_v13  ;;  %901 = vadd.xlane.f32.xlu2 %v900_v8 }
0x1775   :  { %v1424_v20 = vpop.permute.xlu1 %1423 }
0x1776   :  { %v1427_v5 = vsel %vm1426_vm12, %v1424_v20, 0.0 }
0x1778   :  { %1232 = vadd.xlane.f32.xlu1 %v1231_v24 }
0x1791   :  { %1617 = vrot.lane.b32.xlu1 %v2394_v60, %s1923_s2 }
0x1799   :  { %1619 = vrot.lane.b32.xlu1 %v1616_v33, %s1923_s2 }
0x17c3   :  { %1428 = vadd.xlane.f32.xlu1 %v1427_v5 }
0x17e2   :  { %v1037_v34 = vpop.xlane.xlu0 %1036 }
0x17e3   :  { %v1038_v30 = vmul.f32 %v1037_v34, %v2192_v12  ;;  %v2406_v42 = vpop.xlane.xlu1 %913  ;;  %v2418_v45 = vpop.xlane.xlu2 %901 }
0x17e5   :  { %v1040_v35 = vrot.slane %v1038_v30, 1  ;;  %v1043_v36 = vsub.f32 %v2126_v14, %v1038_v30 }
0x17e7   :  { %v1044_v63 = vsub.f32 %v2128_v15, %v1040_v35  ;;  %v1045_v39 = vmul.f32 %v1043_v36, %v1043_v36 }
0x17e9   :  { %v1046_v59 = vmul.f32 %v1044_v63, %v1044_v63 }
0x17eb   :  { %v1049_v2 = vrot.slane %v1046_v59, 7  ;;  %v1233_v43 = vpop.xlane.xlu1 %1232  ;;  %v1088_v59 = vld [vmem:[%s2573_s5 + $0xc] sm:$0x1] }
0x17ec   :  { %v1234_v0 = vmul.f32 %v1233_v43, %v2192_v12  ;;  %v1087_v43 = vld [vmem:[%s2573_s5 + $0x4] sm:$0x1] }
0x17ed   :  { %v1050_v40 = vsel %vm1029_vm7, %v1049_v2, %v1045_v39  ;;  %v1100_v39 = vld [vmem:[%s2574_s6 + $0xc] sm:$0x1] }
0x17ee   :  { %1051 = vrot.lane.b32.xlu2 %v1050_v40, %s1923_s2  ;;  %v1236_v3 = vrot.slane %v1234_v0, 1  ;;  %v1239_v46 = vsub.f32 %v2152_v28, %v1234_v0 }
0x17f0   :  { %v2430_v19 = vsub.f32 %v2150_v27, %v1236_v3 }
0x17f2   :  { %v1242_v61 = vmul.f32 %v2430_v19, %v2430_v19 }
0x17f4   :  { %v1245_v27 = vrot.slane %v1242_v61, 7 }
0x1803   :  { %v1618_v44 = vpop.permute.xlu1 %1617 }
0x1804   :  { %1756 = vst.msk [vmem:[%s2575_s8 - $0x7] sm:$0x80] %vm1623_vm13, %v1618_v44  ;;  %v1624_v14 = vsel %vm1623_vm13, %v1618_v44, 0.0  ;;  %v1099_v44 = vld [vmem:[%s2574_s6 + $0x4] sm:$0x1] }
0x1805   :  { %1625 = vadd.xlane.f32.xlu1 %v1624_v14 }
0x180b   :  { %v1620_v15 = vpop.permute.xlu1 %1619 }
0x180c   :  { %1757 = vst.msk [vmem:[%s2575_s8 + $0x1] sm:$0x1] %vm1627_vm14, %v1620_v15  ;;  %v1628_v11 = vsel %vm1627_vm14, %v1620_v15, 0.0 }
0x180d   :  { %1629 = vadd.xlane.f32.xlu0 %v1628_v11 }
0x1836   :  { %v1429_v9 = vpop.xlane.xlu1 %1428 }
0x1837   :  { %v1430_v24 = vmul.f32 %v1429_v9, %v2192_v12 }
0x1839   :  { %v1432_v21 = vrot.slane %v1430_v24, 1  ;;  %v2446_v5 = vsub.f32 %v2184_v22, %v1430_v24 }
0x183b   :  { %v2439_v31 = vsub.f32 %v2186_v23, %v1432_v21  ;;  %v1437_v28 = vmul.f32 %v2446_v5, %v2446_v5 }
0x183d   :  { %v1438_v33 = vmul.f32 %v2439_v31, %v2439_v31 }
0x183f   :  { %v1441_v30 = vrot.slane %v1438_v33, 7 }
0x1841   :  { %v1442_v35 = vsel %vm1421_vm8, %v1441_v30, %v1437_v28 }
0x1848   :  { %v1052_v37 = vpop.permute.xlu2 %1051 }
0x1849   :  { %v1054_v38 = vsel %vm1034_vm10, %v1052_v37, 0.0 }
0x184a   :  { %1055 = vadd.xlane.f32.xlu2 %v1054_v38 }
0x1878   :  { %v1626_v34 = vpop.xlane.xlu1 %1625 }
0x1879   :  { %v1631_v23 = vmul.f32 %v1626_v34, %v2192_v12 }
0x1880   :  { %v1630_v55 = vpop.xlane.xlu0 %1629 }
0x1881   :  { %v1632_v47 = vmul.f32 %v1630_v55, %v2192_v12 }
0x1883   :  { %v1635_v48 = vrot.slane %v1632_v47, 1 }
0x1885   :  { %v2422_v16 = vsub.f32 %v1613_v7, %v1635_v48  ;;  %v1241_v7 = vmul.f32 %v1239_v46, %v1239_v46 }
0x1887   :  { %v1641_v49 = vmul.f32 %v2422_v16, %v2422_v16  ;;  %v1246_v20 = vsel %vm1225_vm1, %v1245_v27, %v1241_v7 }
0x1889   :  { %v1644_v51 = vrot.slane %v1641_v49, 7 }
0x188b   :  { %1647 = vrot.lane.b32.xlu2 %v1644_v51, %s1923_s2 }
0x18bd   :  { %v1056_v52 = vpop.xlane.xlu2 %1055 }
0x18be   :  { %v1057_v53 = vmul.f32 %v1056_v52, %v2192_v12 }
0x18c0   :  { %v1058_v54 = vadd.f32 1e-08, %v1057_v53 }
0x18c2   :  { %1908 = vrsqrt.f32 %v1058_v54  ;;  %vm1065_vm3 = vweird.f32 %v1058_v54 }
0x18c8   :  { %v1909_v56 = vpop.eup %1908 }
0x18c9   :  { %v1060_v57 = vmul.f32 %v1909_v56, %v1058_v54  ;;  %vm1066_vm15 = vweird.f32 %v1909_v56 }
0x18ca   :  { %vm1067_vm0 = vmor %vm1065_vm3, %vm1066_vm15  ;;  %vm1728_vm3 = vcmask 23552  }
0x18cb   :  { %v1061_v58 = vmul.f32 %v1909_v56, %v1060_v57 }
0x18cd   :  { %v1062_v1 = vmul.f32 0.5, %v1061_v58 }
0x18cf   :  { %v1063_v4 = vsub.f32 1.5, %v1062_v1 }
0x18d1   :  { %v1064_v62 = vmul.f32 %v1909_v56, %v1063_v4 }
0x18d3   :  { %v1068_v10 = vsel %vm1067_vm0, %v1909_v56, %v1064_v62  ;;  %vm1730_vm0 = vcmask 31744  }
0x18d4   :  { %v1073_v13 = vmul.f32 %v1068_v10, %v1043_v36  ;;  %v1070_v8 = vrot.slane %v1068_v10, 1  ;;  %v2454_v36 = vsub.f32 %v2394_v60, %v1631_v23 }
0x18d6   :  { %v1077_v25 = vrot.slane %v1073_v13, 4  ;;  %v1074_v17 = vmul.f32 %v1070_v8, %v1044_v63  ;;  %v1640_v63 = vmul.f32 %v2454_v36, %v2454_v36 }
0x18d8   :  { %1079 = vrot.lane.b32.xlu0 %v1077_v25, %s1923_s2  ;;  %v1078_v29 = vrot.slane %v1074_v17, 4 }
0x18da   :  { %1081 = vrot.lane.b32.xlu1 %v1078_v29, %s1923_s2 }
0x18e2   :  { %1247 = vrot.lane.b32.xlu1 %v1246_v20, %s1923_s2 }
0x18e5   :  { %v1648_v54 = vpop.permute.xlu2 %1647 }
0x18e6   :  { %v1654_v57 = vsel %vm1627_vm14, %v1648_v54, 0.0 }
0x18ea   :  { %1443 = vrot.lane.b32.xlu1 %v1442_v35, %s1923_s2  ;;  %v1296_v35 = vld [vmem:[%s2574_s6 + $0xd] sm:$0x1] }
0x18f2   :  { %1645 = vrot.lane.b32.xlu1 %v1640_v63, %s1923_s2 }
0x194a   :  { %v1080_v22 = vpop.permute.xlu0 %1079 }
0x194b   :  { %v1085_v40 = vadd.f32 %v1080_v22, %v2224_v50 }
0x194c   :  { %v1082_v2 = vpop.permute.xlu1 %1081 }
0x194d   :  { %v1086_v60 = vadd.f32 %v1082_v2, %v2227_v41  ;;  %v1089_v11 = vmul.f32 %v1087_v43, %v1085_v40  ;;  %v1101_v37 = vmul.f32 %v1099_v44, %v1085_v40 }
0x194f   :  { %v1090_v14 = vmul.f32 %v1088_v59, %v1086_v60  ;;  %v1102_v15 = vmul.f32 %v1100_v39, %v1086_v60  ;;  %v1295_v59 = vld [vmem:[%s2574_s6 + $0x5] sm:$0x1] }
0x1951   :  { %v1093_v38 = vrot.slane %v1090_v14, 7  ;;  %v1105_v55 = vrot.slane %v1102_v15, 7 }
0x1953   :  { %v1106_v47 = vsel %vm56_vm9, %v1105_v55, %v1101_v37  ;;  %v1094_v48 = vsel %vm56_vm9, %v1093_v38, %v1089_v11 }
0x1954   :  { %v1248_v49 = vpop.permute.xlu1 %1247  ;;  %v1108_v51 = vsel %vm59_vm2, %v1106_v47, 0.0  ;;  %v1096_v52 = vsel %vm59_vm2, %v1094_v48, 0.0 }
0x1955   :  { %1109 = vadd.xlane.f32.xlu1 %v1108_v51  ;;  %1097 = vadd.xlane.f32.xlu0 %v1096_v52  ;;  %v1250_v53 = vsel %vm1230_vm11, %v1248_v49, 0.0 }
0x1956   :  { %1251 = vadd.xlane.f32.xlu2 %v1250_v53 }
0x195c   :  { %v1444_v56 = vpop.permute.xlu1 %1443 }
0x195d   :  { %1655 = vadd.xlane.f32.xlu1 %v1654_v57  ;;  %v1446_v7 = vsel %vm1426_vm12, %v1444_v56, 0.0 }
0x1964   :  { %v1646_v58 = vpop.permute.xlu1 %1645 }
0x1965   :  { %v1651_v0 = vsel %vm1623_vm13, %v1646_v58, 0.0 }
0x1966   :  { %1652 = vadd.xlane.f32.xlu1 %v1651_v0 }
0x19c8   :  { %v2485_v33 = vpop.xlane.xlu0 %1097  ;;  %v2503_v44 = vpop.xlane.xlu1 %1109 }
0x19c9   :  { %v1252_v1 = vpop.xlane.xlu2 %1251 }
0x19ca   :  { %v1253_v4 = vmul.f32 %v1252_v1, %v2192_v12 }
0x19cc   :  { %v1254_v3 = vadd.f32 1e-08, %v1253_v4 }
0x19ce   :  { %1910 = vrsqrt.f32 %v1254_v3  ;;  %vm1261_vm4 = vweird.f32 %v1254_v3 }
0x19d0   :  { %v1656_v11 = vpop.xlane.xlu1 %1655 }
0x19d1   :  { %v1658_v37 = vmul.f32 %v1656_v11, %v2192_v12 }
0x19d3   :  { %v1660_v55 = vadd.f32 1e-08, %v1658_v37 }
0x19d4   :  { %v1911_v62 = vpop.eup %1910 }
0x19d5   :  { %v1256_v9 = vmul.f32 %v1911_v62, %v1254_v3  ;;  %vm1262_vm1 = vweird.f32 %v1911_v62  ;;  %1912 = vrsqrt.f32 %v1660_v55  ;;  %vm1677_vm8 = vweird.f32 %v1660_v55 }
0x19d6   :  { %vm1263_vm5 = vmor %vm1261_vm4, %vm1262_vm1  ;;  %vm1732_vm1 = vcmask 39936   ;;  %vm1734_vm4 = vcmask 48128  }
0x19d7   :  { %v1257_v10 = vmul.f32 %v1911_v62, %v1256_v9 }
0x19d9   :  { %v1258_v13 = vmul.f32 0.5, %v1257_v10  ;;  %v1653_v38 = vpop.xlane.xlu1 %1652 }
0x19da   :  { %v1657_v47 = vmul.f32 %v1653_v38, %v2192_v12  ;;  %v1701_v38 = vld [vmem:[%s2573_s5 + $0xf] sm:$0x1] }
0x19db   :  { %v1259_v8 = vsub.f32 1.5, %v1258_v13  ;;  %v1913_v49 = vpop.eup %1912 }
0x19dc   :  { %v1659_v48 = vadd.f32 1e-08, %v1657_v47  ;;  %v1672_v53 = vmul.f32 %v1913_v49, %v1660_v55  ;;  %vm1678_vm6 = vweird.f32 %v1913_v49  ;;  %v1713_v55 = vld [vmem:[%s2574_s6 + $0xf] sm:$0x1] }
0x19dd   :  { %v1260_v24 = vmul.f32 %v1911_v62, %v1259_v8  ;;  %vm1679_vm10 = vmor %vm1677_vm8, %vm1678_vm6  ;;  %vm1738_vm6 = vcmask 64512   ;;  %vm1742_vm8 = vcmask 80896  }
0x19de   :  { %1914 = vrsqrt.f32 %v1659_v48  ;;  %v1673_v57 = vmul.f32 %v1913_v49, %v1672_v53  ;;  %vm1667_vm14 = vweird.f32 %v1659_v48  ;;  %v1712_v53 = vld [vmem:[%s2574_s6 + $0x7] sm:$0x1] }
0x19df   :  { %v1264_v25 = vsel %vm1263_vm5, %v1911_v62, %v1260_v24  ;;  %vm1736_vm5 = vcmask 56320  }
0x19e0   :  { %v1269_v17 = vmul.f32 %v1264_v25, %v1239_v46  ;;  %v1266_v29 = vrot.slane %v1264_v25, 1  ;;  %v1284_v46 = vld [vmem:[%s2573_s5 + $0xd] sm:$0x1]  ;;  %v1674_v0 = vmul.f32 0.5, %v1673_v57 }
0x19e2   :  { %v1273_v61 = vrot.slane %v1269_v17, 5  ;;  %v1270_v21 = vmul.f32 %v1266_v29, %v2430_v19  ;;  %v1283_v19 = vld [vmem:[%s2573_s5 + $0x5] sm:$0x1]  ;;  %v1675_v62 = vsub.f32 1.5, %v1674_v0 }
0x19e4   :  { %1275 = vrot.lane.b32.xlu0 %v1273_v61, %s1923_s2  ;;  %v1274_v27 = vrot.slane %v1270_v21, 5  ;;  %v1915_v56 = vpop.eup %1914  ;;  %v1676_v8 = vmul.f32 %v1913_v49, %v1675_v62 }
0x19e5   :  { %v1662_v58 = vmul.f32 %v1915_v56, %v1659_v48  ;;  %vm1668_vm13 = vweird.f32 %v1915_v56 }
0x19e6   :  { %1277 = vrot.lane.b32.xlu2 %v1274_v27, %s1923_s2  ;;  %v1680_v29 = vsel %vm1679_vm10, %v1913_v49, %v1676_v8  ;;  %vm1669_vm15 = vmor %vm1667_vm14, %vm1668_vm13  ;;  %vm1744_vm10 = vcmask 89088   ;;  %vm1754_vm13 = vcmask 123904  }
0x19e7   :  { %v1663_v4 = vmul.f32 %v1915_v56, %v1662_v58 }
0x19e9   :  { %v1664_v10 = vmul.f32 0.5, %v1663_v4 }
0x1a0e   :  { %1447 = vadd.xlane.f32.xlu0 %v1446_v7 }
0x1a40   :  { %v1278_v20 = vpop.permute.xlu2 %1277 }
0x1a41   :  { %v1282_v34 = vadd.f32 %v1278_v20, %v2227_v41 }
0x1a43   :  { %v1286_v30 = vmul.f32 %v1284_v46, %v1282_v34  ;;  %v1298_v39 = vmul.f32 %v1296_v35, %v1282_v34  ;;  %v1683_v34 = vrot.slane %v1680_v29, 1 }
0x1a45   :  { %v1289_v63 = vrot.slane %v1286_v30, 7  ;;  %v1301_v43 = vrot.slane %v1298_v39, 7  ;;  %v1492_v39 = vld [vmem:[%s2574_s6 + $0xe] sm:$0x1] }
0x1a56   :  { %v1276_v28 = vpop.permute.xlu0 %1275 }
0x1a57   :  { %v1281_v23 = vadd.f32 %v1276_v28, %v2224_v50 }
0x1a59   :  { %v1285_v22 = vmul.f32 %v1283_v19, %v1281_v23  ;;  %v1297_v60 = vmul.f32 %v1295_v59, %v1281_v23  ;;  %v1687_v19 = vmul.f32 %v1683_v34, %v2422_v16 }
0x1a5b   :  { %v1290_v2 = vsel %vm56_vm9, %v1289_v63, %v1285_v22  ;;  %v1302_v14 = vsel %vm56_vm9, %v1301_v43, %v1297_v60 }
0x1a5c   :  { %v1292_v40 = vsel %vm59_vm2, %v1290_v2, 0.0  ;;  %v1304_v15 = vsel %vm59_vm2, %v1302_v14, 0.0 }
0x1a5d   :  { %1293 = vadd.xlane.f32.xlu1 %v1292_v40 }
0x1a65   :  { %1305 = vadd.xlane.f32.xlu1 %v1304_v15 }
0x1a81   :  { %v1448_v51 = vpop.xlane.xlu0 %1447 }
0x1a82   :  { %v1449_v52 = vmul.f32 %v1448_v51, %v2192_v12  ;;  %v1665_v12 = vsub.f32 1.5, %v1664_v10 }
0x1a84   :  { %v1450_v54 = vadd.f32 1e-08, %v1449_v52  ;;  %v1666_v27 = vmul.f32 %v1915_v56, %v1665_v12  ;;  %v1700_v52 = vld [vmem:[%s2573_s5 + $0x7] sm:$0x1] }
0x1a86   :  { %1916 = vrsqrt.f32 %v1450_v54  ;;  %vm1457_vm11 = vweird.f32 %v1450_v54  ;;  %v1670_v30 = vsel %vm1669_vm15, %v1915_v56, %v1666_v27 }
0x1a87   :  { %v1686_v28 = vmul.f32 %v1670_v30, %v2454_v36  ;;  %v1480_v36 = vld [vmem:[%s2573_s5 + $0xe] sm:$0x1] }
0x1a89   :  { %v1690_v23 = vrot.slane %v1686_v28, 7 }
0x1a8c   :  { %v1917_v1 = vpop.eup %1916 }
0x1a8d   :  { %v1452_v3 = vmul.f32 %v1917_v1, %v1450_v54  ;;  %vm1458_vm7 = vweird.f32 %v1917_v1 }
0x1a8e   :  { %vm1459_vm12 = vmor %vm1457_vm11, %vm1458_vm7  ;;  %vm1740_vm7 = vcmask 72704   ;;  %vm1748_vm11 = vcmask 105472  }
0x1a8f   :  { %v1453_v9 = vmul.f32 %v1917_v1, %v1452_v3 }
0x1a91   :  { %v1454_v13 = vmul.f32 0.5, %v1453_v9 }
0x1a93   :  { %v1455_v24 = vsub.f32 1.5, %v1454_v13 }
0x1a95   :  { %v1456_v25 = vmul.f32 %v1917_v1, %v1455_v24 }
0x1a97   :  { %v1460_v17 = vsel %vm1459_vm12, %v1917_v1, %v1456_v25  ;;  %vm1752_vm12 = vcmask 121856  }
0x1a98   :  { %v1465_v61 = vmul.f32 %v1460_v17, %v2446_v5  ;;  %v1462_v21 = vrot.slane %v1460_v17, 1  ;;  %v1691_v5 = vrot.slane %v1687_v19, 7 }
0x1a9a   :  { %v1469_v7 = vrot.slane %v1465_v61, 6  ;;  %v1466_v20 = vmul.f32 %v1462_v21, %v2439_v31  ;;  %v1729_v31 = vsel %vm1728_vm3, %v2346_v18, %v2418_v45  ;;  %v1479_v45 = vld [vmem:[%s2573_s5 + $0x6] sm:$0x1] }
0x1a9b   :  { %v1731_v35 = vsel %vm1730_vm0, %v1729_v31, %v2485_v33  ;;  %v1491_v33 = vld [vmem:[%s2574_s6 + $0x6] sm:$0x1] }
0x1a9c   :  { %1471 = vrot.lane.b32.xlu0 %v1469_v7, %s1923_s2  ;;  %v1470_v46 = vrot.slane %v1466_v20, 6 }
0x1a9e   :  { %1473 = vrot.lane.b32.xlu1 %v1470_v46, %s1923_s2 }
0x1aa4   :  { %1694 = vrot.lane.b32.xlu0 %v1691_v5, %s1923_s2 }
0x1aa6   :  { %1692 = vrot.lane.b32.xlu1 %v1690_v23, %s1923_s2 }
0x1ad0   :  { %v1294_v63 = vpop.xlane.xlu1 %1293 }
0x1ad1   :  { %v1733_v22 = vsel %vm1732_vm1, %v1731_v35, %v1294_v63 }
0x1ad8   :  { %v2521_v59 = vpop.xlane.xlu1 %1305 }
0x1b0e   :  { %v1472_v16 = vpop.permute.xlu0 %1471 }
0x1b0f   :  { %v1477_v40 = vadd.f32 %v1472_v16, %v2224_v50 }
0x1b10   :  { %v1474_v2 = vpop.permute.xlu1 %1473 }
0x1b11   :  { %v1478_v18 = vadd.f32 %v1474_v2, %v2227_v41  ;;  %v1481_v14 = vmul.f32 %v1479_v45, %v1477_v40  ;;  %v1493_v15 = vmul.f32 %v1491_v33, %v1477_v40 }
0x1b13   :  { %v1482_v60 = vmul.f32 %v1480_v36, %v1478_v18  ;;  %v1494_v43 = vmul.f32 %v1492_v39, %v1478_v18 }
0x1b15   :  { %v1485_v11 = vrot.slane %v1482_v60, 7  ;;  %v1497_v37 = vrot.slane %v1494_v43, 7 }
0x1b16   :  { %v1695_v47 = vpop.permute.xlu0 %1694 }
0x1b17   :  { %v1699_v48 = vadd.f32 %v1695_v47, %v2227_v41  ;;  %v1498_v49 = vsel %vm56_vm9, %v1497_v37, %v1493_v15  ;;  %v1486_v51 = vsel %vm56_vm9, %v1485_v11, %v1481_v14 }
0x1b18   :  { %v1693_v54 = vpop.permute.xlu1 %1692  ;;  %v1500_v56 = vsel %vm59_vm2, %v1498_v49, 0.0  ;;  %v1488_v57 = vsel %vm59_vm2, %v1486_v51, 0.0 }
0x1b19   :  { %v1703_v58 = vmul.f32 %v1701_v38, %v1699_v48  ;;  %v1715_v0 = vmul.f32 %v1713_v55, %v1699_v48  ;;  %v1698_v41 = vadd.f32 %v1693_v54, %v2224_v50  ;;  %1501 = vadd.xlane.f32.xlu0 %v1500_v56  ;;  %1489 = vadd.xlane.f32.xlu2 %v1488_v57 }
0x1b1b   :  { %v1706_v1 = vrot.slane %v1703_v58, 7  ;;  %v1718_v4 = vrot.slane %v1715_v0, 7  ;;  %v1702_v3 = vmul.f32 %v1700_v52, %v1698_v41  ;;  %v1714_v62 = vmul.f32 %v1712_v53, %v1698_v41 }
0x1b1d   :  { %v1707_v9 = vsel %vm56_vm9, %v1706_v1, %v1702_v3  ;;  %v1719_v10 = vsel %vm56_vm9, %v1718_v4, %v1714_v62  ;;  %vm1746_vm9 = vcmask 97280  }
0x1b1e   :  { %v1709_v13 = vsel %vm59_vm2, %v1707_v9, 0.0  ;;  %v1721_v8 = vsel %vm59_vm2, %v1719_v10, 0.0  ;;  %vm1750_vm2 = vcmask 113664  }
0x1b1f   :  { %1710 = vadd.xlane.f32.xlu1 %v1709_v13 }
0x1b21   :  { %1722 = vadd.xlane.f32.xlu2 %v1721_v8 }
0x1b8c   :  { %v1490_v24 = vpop.xlane.xlu2 %1489  ;;  %v1502_v7 = vpop.xlane.xlu0 %1501 }
0x1b8d   :  { %v1735_v50 = vsel %vm1734_vm4, %v1733_v22, %v1490_v24 }
0x1b92   :  { %v1711_v12 = vpop.xlane.xlu1 %1710 }
0x1b93   :  { %v1737_v25 = vsel %vm1736_vm5, %v1735_v50, %v1711_v12 }
0x1b94   :  { %v1739_v17 = vsel %vm1738_vm6, %v1737_v25, %v2256_v26  ;;  %v1723_v34 = vpop.xlane.xlu2 %1722 }
0x1b95   :  { %v1741_v29 = vsel %vm1740_vm7, %v1739_v17, %v2295_v32 }
0x1b96   :  { %v1743_v61 = vsel %vm1742_vm8, %v1741_v29, %v2368_v6 }
0x1b97   :  { %v1745_v21 = vsel %vm1744_vm10, %v1743_v61, %v2406_v42 }
0x1b98   :  { %v1747_v27 = vsel %vm1746_vm9, %v1745_v21, %v2503_v44 }
0x1b99   :  { %v1749_v20 = vsel %vm1748_vm11, %v1747_v27, %v2521_v59 }
0x1b9a   :  { %v1751_v46 = vsel %vm1750_vm2, %v1749_v20, %v1502_v7 }
0x1b9b   :  { %v1753_v26 = vsel %vm1752_vm12, %v1751_v46, %v1723_v34 }
0x1b9c   :  { %1755 = vst.msk [vmem:[%s2576_s7] sm:$0x3] %vm1754_vm13, %v1753_v26 }

</bundles_post_ra>
